<compile_context>
chip_gen: v7x
topology: tpu7x:2x2x1
jax: 0.10.0
libtpu: 0.0.40
codegen_flags: <defaults>
</compile_context>

<pallas_src>
import functools

import numpy as np
import jax
import jax.numpy as jnp
from jax import lax
from jax.experimental import pallas as pl
from jax.experimental.pallas import tpu as pltpu


# ---------------------------------------------------------------------------
# Fused kernel: MLP -> (fc + affine_grid folded) -> bilinear grid_sample
# ---------------------------------------------------------------------------
def _stn_kernel(x_ref, w1_ref, b1_ref, w2_ref, b2_ref,
                wx_ref, bx_ref, wy_ref, by_ref, img_ref, out_ref, *, H, W):
    # ---- localization MLP (M=1 matmuls; recomputed per tile, MXU is idle) ----
    xf = x_ref[0]                                                   # (1, D)
    h1 = jnp.dot(xf, w1_ref[...], preferred_element_type=jnp.float32) + b1_ref[...]
    h1 = jnp.maximum(h1, 0.0)
    h2 = jnp.dot(h1, w2_ref[...], preferred_element_type=jnp.float32) + b2_ref[...]
    h2 = jnp.maximum(h2, 0.0)                                       # (1, 128)

    # ---- fc + affine_grid, folded: sampling coords for this tile's T pixels ----
    gx = jnp.dot(h2, wx_ref[...], preferred_element_type=jnp.float32) + bx_ref[...]  # (1, T)
    gy = jnp.dot(h2, wy_ref[...], preferred_element_type=jnp.float32) + by_ref[...]  # (1, T)

    # ---- grid_sample: unnormalize (align_corners=False) + border padding ----
    ix = jnp.clip(((gx + 1.0) * W - 1.0) * 0.5, 0.0, float(W - 1))
    iy = jnp.clip(((gy + 1.0) * H - 1.0) * 0.5, 0.0, float(H - 1))
    ix0f = jnp.floor(ix)
    iy0f = jnp.floor(iy)
    wx1 = ix - ix0f
    wy1 = iy - iy0f
    wx0 = 1.0 - wx1
    wy0 = 1.0 - wy1
    ix0 = ix0f.astype(jnp.int32)
    iy0 = iy0f.astype(jnp.int32)
    ix1 = jnp.minimum(ix0 + 1, W - 1)
    iy1 = jnp.minimum(iy0 + 1, H - 1)

    # Separable one-hot bilinear weights (tiny: (W, T) and (H, T)).
    # Collapsed border corners still sum to the correct total weight.
    w_in = lax.broadcasted_iota(jnp.int32, (W, 1), 0)               # input cols
    h_in = lax.broadcasted_iota(jnp.int32, (H, 1), 0)               # input rows
    wx_sel = jnp.where(w_in == ix0, wx0, 0.0) + jnp.where(w_in == ix1, wx1, 0.0)  # (W, T)
    wy_sel = jnp.where(h_in == iy0, wy0, 0.0) + jnp.where(h_in == iy1, wy1, 0.0)  # (H, T)

    # out[c, p] = sum_h wy_sel[h, p] * ( sum_w img[c, h, w] * wx_sel[w, p] )
    img = img_ref[0]                                                # (C, H, W)
    C = img.shape[0]
    T = gx.shape[1]
    tmp = jnp.dot(img.reshape(C * H, W), wx_sel,
                  preferred_element_type=jnp.float32)               # (C*H, T) on MXU
    tmp = tmp.reshape(C, H, T)
    rows = [jnp.sum(tmp[c] * wy_sel, axis=0, keepdims=True) for c in range(C)]
    out_ref[0] = jnp.concatenate(rows, axis=0).astype(out_ref.dtype)  # (C, T), lane-dense


# ---------------------------------------------------------------------------
# Wrapper: host-side parameter folding + pallas_call
# ---------------------------------------------------------------------------
@functools.partial(jax.jit, static_argnames=("H", "W"))
def spatial_transformer_forward(params, batch_images, x, *, H, W):
    N, C = batch_images.shape[0], batch_images.shape[1]
    D = int(np.prod(x.shape[1:]))
    HW = H * W
    T = 128 if HW % 128 == 0 else HW          # lane-dense output tiles
    n_tiles = HW // T

    H1 = params["w1"].shape[1]                # 512
    H2 = params["w2"].shape[1]                # 128

    x3 = x.reshape(N, 1, D)                   # Flatten(), with a clean (1, D) block

    # Fold fc (w3, b3) and the affine_grid base coordinates into per-pixel
    # projection matrices: gx = h2 @ WX + BX, gy = h2 @ WY + BY.
    # (Parameter preprocessing only - depends on weights and H, W, not on data.)
    pi = jnp.arange(HW)
    ww = (pi % W).astype(jnp.float32)
    hh = (pi // W).astype(jnp.float32)
    xg = (2.0 * ww + 1.0) / W - 1.0           # align_corners=False base grid
    yg = (2.0 * hh + 1.0) / H - 1.0
    w3, b3 = params["w3"], params["b3"]       # (H2, 6), (6,)
    WX = w3[:, 0:1] * xg[None, :] + w3[:, 1:2] * yg[None, :] + w3[:, 2:3]   # (H2, HW)
    WY = w3[:, 3:4] * xg[None, :] + w3[:, 4:5] * yg[None, :] + w3[:, 5:6]   # (H2, HW)
    BX = (b3[0] * xg + b3[1] * yg + b3[2])[None, :]                         # (1, HW)
    BY = (b3[3] * xg + b3[4] * yg + b3[5])[None, :]                         # (1, HW)

    kernel = functools.partial(_stn_kernel, H=H, W=W)
    out = pl.pallas_call(
        kernel,
        out_shape=jax.ShapeDtypeStruct((N, C, HW), batch_images.dtype),
        grid=(N, n_tiles),
        in_specs=[
            pl.BlockSpec((1, 1, D), lambda n, t: (n, 0, 0)),        # x (flattened)
            pl.BlockSpec((D, H1), lambda n, t: (0, 0)),             # w1 (VMEM-resident)
            pl.BlockSpec((1, H1), lambda n, t: (0, 0)),             # b1
            pl.BlockSpec((H1, H2), lambda n, t: (0, 0)),            # w2 (VMEM-resident)
            pl.BlockSpec((1, H2), lambda n, t: (0, 0)),             # b2
            pl.BlockSpec((H2, T), lambda n, t: (0, t)),             # WX tile
            pl.BlockSpec((1, T), lambda n, t: (0, t)),              # BX tile
            pl.BlockSpec((H2, T), lambda n, t: (0, t)),             # WY tile
            pl.BlockSpec((1, T), lambda n, t: (0, t)),              # BY tile
            pl.BlockSpec((1, C, H, W), lambda n, t: (n, 0, 0, 0)),  # image to warp
        ],
        out_specs=pl.BlockSpec((1, C, T), lambda n, t: (n, 0, t)),
        compiler_params=pltpu.CompilerParams(
            dimension_semantics=("parallel", "parallel")),
    )(x3, params["w1"], params["b1"], params["w2"], params["b2"],
      WX, BX, WY, BY, batch_images)
    return out.reshape(N, C, H, W)


# ---------------------------------------------------------------------------
# Parameter init (synthetic, deterministic), mirroring the module's __init__
# ---------------------------------------------------------------------------
def init_params(key, in_channels, H, W):
    d = in_channels * H * W
    k1, k2 = jax.random.split(key)
    s1 = 1.0 / np.sqrt(d)
    s2 = 1.0 / np.sqrt(512)
    # weights stored pre-transposed as (in, out)
    w1 = jax.random.uniform(k1, (d, 512), jnp.float32, -s1, s1)
    b1 = jnp.zeros((1, 512), jnp.float32)
    w2 = jax.random.uniform(k2, (512, 128), jnp.float32, -s2, s2)
    b2 = jnp.zeros((1, 128), jnp.float32)
    # fc: weight zeroed, bias = identity affine transform (as in __init__)
    w3 = jnp.zeros((128, 6), jnp.float32)
    b3 = jnp.array([1.0, 0.0, 0.0, 0.0, 1.0, 0.0], jnp.float32)
    # NOTE: for large batches, casting x/w1/w2 to bfloat16 (keeping f32
    # accumulation) would ~3x the MLP matmuls on v6e/v7x; at N=2 it is noise,
    # so params stay f32 here to keep the identity-warp check exact.
    return {"w1": w1, "b1": b1, "w2": w2, "b2": b2, "w3": w3, "b3": b3}


if __name__ == "__main__":
    key = jax.random.PRNGKey(0)
    N, C, H, W = 2, 4, 16, 16
    k_img, k_loc, k_par = jax.random.split(key, 3)
    batch_images = jax.random.normal(k_img, (N, C, H, W), jnp.float32)
    x = jax.random.normal(k_loc, (N, C, H, W), jnp.float32)
    params = init_params(k_par, C, H, W)

    rois = spatial_transformer_forward(params, batch_images, x, H=H, W=W)
    rois = jax.block_until_ready(rois)

    assert rois.shape == (N, C, H, W)
    # fc weight is zero and its bias is the identity transform, so the STN
    # produces an identity warp: rois must equal batch_images.
    np.testing.assert_allclose(np.asarray(rois), np.asarray(batch_images), atol=1e-5)
    print("KERNEL_OK")
</pallas_src>

<mosaic_0001>
module attributes {stable_mosaic.version = 11 : i64} {
  func.func @_stn_kernel(%arg0: i32, %arg1: i32, %arg2: memref<1x1x1024xf32, #tpu.memory_space<vmem>>, %arg3: memref<1024x512xf32, #tpu.memory_space<vmem>>, %arg4: memref<1x512xf32, #tpu.memory_space<vmem>>, %arg5: memref<512x128xf32, #tpu.memory_space<vmem>>, %arg6: memref<1x128xf32, #tpu.memory_space<vmem>>, %arg7: memref<128x128xf32, #tpu.memory_space<vmem>>, %arg8: memref<1x128xf32, #tpu.memory_space<vmem>>, %arg9: memref<128x128xf32, #tpu.memory_space<vmem>>, %arg10: memref<1x128xf32, #tpu.memory_space<vmem>>, %arg11: memref<1x4x16x16xf32, #tpu.memory_space<vmem>>, %arg12: memref<1x4x128xf32, #tpu.memory_space<vmem>>) attributes {dimension_semantics = [#tpu.dimension_semantics<parallel>, #tpu.dimension_semantics<parallel>], iteration_bounds = array<i64: 2, 2>, scalar_prefetch = 0 : i64, scratch_operands = 0 : i64, tpu.core_type = #tpu.core_type<tc>, window_params = [{transform_indices = @transform_0, window_bounds = array<i64: 1, 1, 1024>}, {pipeline_mode = #tpu.pipeline_mode<synchronous>, transform_indices = @transform_1, window_bounds = array<i64: 1024, 512>}, {pipeline_mode = #tpu.pipeline_mode<synchronous>, transform_indices = @transform_2, window_bounds = array<i64: 1, 512>}, {pipeline_mode = #tpu.pipeline_mode<synchronous>, transform_indices = @transform_3, window_bounds = array<i64: 512, 128>}, {pipeline_mode = #tpu.pipeline_mode<synchronous>, transform_indices = @transform_4, window_bounds = array<i64: 1, 128>}, {transform_indices = @transform_5, window_bounds = array<i64: 128, 128>}, {transform_indices = @transform_6, window_bounds = array<i64: 1, 128>}, {transform_indices = @transform_7, window_bounds = array<i64: 128, 128>}, {transform_indices = @transform_8, window_bounds = array<i64: 1, 128>}, {transform_indices = @transform_9, window_bounds = array<i64: 1, 4, 16, 16>}, {transform_indices = @transform_10, window_bounds = array<i64: 1, 4, 128>}]} {
    %c0 = arith.constant 0 : index
    %c0_0 = arith.constant 0 : index
    %c0_1 = arith.constant 0 : index
    %0 = vector.load %arg2[%c0, %c0_0, %c0_1] : memref<1x1x1024xf32, #tpu.memory_space<vmem>>, vector<1x1x1024xf32>
    %1 = vector.shape_cast %0 : vector<1x1x1024xf32> to vector<1x1024xf32>
    %c0_2 = arith.constant 0 : index
    %c0_3 = arith.constant 0 : index
    %2 = vector.load %arg3[%c0_2, %c0_3] : memref<1024x512xf32, #tpu.memory_space<vmem>>, vector<1024x512xf32>
    %cst = arith.constant dense<0.000000e+00> : vector<1x512xf32>
    %3 = tpu.matmul %1, %2, %cst {dimension_numbers = #tpu.dot_dimension_numbers<[1], [0], [0], [1], [0, 0, 1, 1], [], []>} : vector<1x1024xf32>, vector<1024x512xf32>, vector<1x512xf32> -> vector<1x512xf32>
    %c0_4 = arith.constant 0 : index
    %c0_5 = arith.constant 0 : index
    %4 = vector.load %arg4[%c0_4, %c0_5] : memref<1x512xf32, #tpu.memory_space<vmem>>, vector<1x512xf32>
    %5 = arith.addf %3, %4 : vector<1x512xf32>
    %cst_6 = arith.constant 0.000000e+00 : f32
    %6 = vector.broadcast %cst_6 : f32 to vector<1x512xf32>
    %7 = arith.maximumf %5, %6 : vector<1x512xf32>
    %c0_7 = arith.constant 0 : index
    %c0_8 = arith.constant 0 : index
    %8 = vector.load %arg5[%c0_7, %c0_8] : memref<512x128xf32, #tpu.memory_space<vmem>>, vector<512x128xf32>
    %cst_9 = arith.constant dense<0.000000e+00> : vector<1x128xf32>
    %9 = tpu.matmul %7, %8, %cst_9 {dimension_numbers = #tpu.dot_dimension_numbers<[1], [0], [0], [1], [0, 0, 1, 1], [], []>} : vector<1x512xf32>, vector<512x128xf32>, vector<1x128xf32> -> vector<1x128xf32>
    %c0_10 = arith.constant 0 : index
    %c0_11 = arith.constant 0 : index
    %10 = vector.load %arg6[%c0_10, %c0_11] : memref<1x128xf32, #tpu.memory_space<vmem>>, vector<1x128xf32>
    %11 = arith.addf %9, %10 : vector<1x128xf32>
    %cst_12 = arith.constant 0.000000e+00 : f32
    %12 = vector.broadcast %cst_12 : f32 to vector<1x128xf32>
    %13 = arith.maximumf %11, %12 : vector<1x128xf32>
    %c0_13 = arith.constant 0 : index
    %c0_14 = arith.constant 0 : index
    %14 = vector.load %arg7[%c0_13, %c0_14] : memref<128x128xf32, #tpu.memory_space<vmem>>, vector<128x128xf32>
    %cst_15 = arith.constant dense<0.000000e+00> : vector<1x128xf32>
    %15 = tpu.matmul %13, %14, %cst_15 {dimension_numbers = #tpu.dot_dimension_numbers<[1], [0], [0], [1], [0, 0, 1, 1], [], []>} : vector<1x128xf32>, vector<128x128xf32>, vector<1x128xf32> -> vector<1x128xf32>
    %c0_16 = arith.constant 0 : index
    %c0_17 = arith.constant 0 : index
    %16 = vector.load %arg8[%c0_16, %c0_17] : memref<1x128xf32, #tpu.memory_space<vmem>>, vector<1x128xf32>
    %17 = arith.addf %15, %16 : vector<1x128xf32>
    %c0_18 = arith.constant 0 : index
    %c0_19 = arith.constant 0 : index
    %18 = vector.load %arg9[%c0_18, %c0_19] : memref<128x128xf32, #tpu.memory_space<vmem>>, vector<128x128xf32>
    %cst_20 = arith.constant dense<0.000000e+00> : vector<1x128xf32>
    %19 = tpu.matmul %13, %18, %cst_20 {dimension_numbers = #tpu.dot_dimension_numbers<[1], [0], [0], [1], [0, 0, 1, 1], [], []>} : vector<1x128xf32>, vector<128x128xf32>, vector<1x128xf32> -> vector<1x128xf32>
    %c0_21 = arith.constant 0 : index
    %c0_22 = arith.constant 0 : index
    %20 = vector.load %arg10[%c0_21, %c0_22] : memref<1x128xf32, #tpu.memory_space<vmem>>, vector<1x128xf32>
    %21 = arith.addf %19, %20 : vector<1x128xf32>
    %cst_23 = arith.constant 1.000000e+00 : f32
    %22 = vector.broadcast %cst_23 : f32 to vector<1x128xf32>
    %23 = arith.addf %17, %22 : vector<1x128xf32>
    %cst_24 = arith.constant 1.600000e+01 : f32
    %24 = vector.broadcast %cst_24 : f32 to vector<1x128xf32>
    %25 = arith.mulf %23, %24 : vector<1x128xf32>
    %cst_25 = arith.constant 1.000000e+00 : f32
    %26 = vector.broadcast %cst_25 : f32 to vector<1x128xf32>
    %27 = arith.subf %25, %26 : vector<1x128xf32>
    %cst_26 = arith.constant 5.000000e-01 : f32
    %28 = vector.broadcast %cst_26 : f32 to vector<1x128xf32>
    %29 = arith.mulf %27, %28 : vector<1x128xf32>
    %cst_27 = arith.constant 0.000000e+00 : f32
    %cst_28 = arith.constant 1.500000e+01 : f32
    %30 = vector.broadcast %cst_27 : f32 to vector<1x128xf32>
    %31 = arith.maximumf %30, %29 : vector<1x128xf32>
    %32 = vector.broadcast %cst_28 : f32 to vector<1x128xf32>
    %33 = arith.minimumf %32, %31 : vector<1x128xf32>
    %cst_29 = arith.constant 1.000000e+00 : f32
    %34 = vector.broadcast %cst_29 : f32 to vector<1x128xf32>
    %35 = arith.addf %21, %34 : vector<1x128xf32>
    %cst_30 = arith.constant 1.600000e+01 : f32
    %36 = vector.broadcast %cst_30 : f32 to vector<1x128xf32>
    %37 = arith.mulf %35, %36 : vector<1x128xf32>
    %cst_31 = arith.constant 1.000000e+00 : f32
    %38 = vector.broadcast %cst_31 : f32 to vector<1x128xf32>
    %39 = arith.subf %37, %38 : vector<1x128xf32>
    %cst_32 = arith.constant 5.000000e-01 : f32
    %40 = vector.broadcast %cst_32 : f32 to vector<1x128xf32>
    %41 = arith.mulf %39, %40 : vector<1x128xf32>
    %cst_33 = arith.constant 0.000000e+00 : f32
    %cst_34 = arith.constant 1.500000e+01 : f32
    %42 = vector.broadcast %cst_33 : f32 to vector<1x128xf32>
    %43 = arith.maximumf %42, %41 : vector<1x128xf32>
    %44 = vector.broadcast %cst_34 : f32 to vector<1x128xf32>
    %45 = arith.minimumf %44, %43 : vector<1x128xf32>
    %46 = math.floor %33 : vector<1x128xf32>
    %47 = math.floor %45 : vector<1x128xf32>
    %48 = arith.subf %33, %46 : vector<1x128xf32>
    %49 = arith.subf %45, %47 : vector<1x128xf32>
    %cst_35 = arith.constant 1.000000e+00 : f32
    %50 = vector.broadcast %cst_35 : f32 to vector<1x128xf32>
    %51 = arith.subf %50, %48 : vector<1x128xf32>
    %cst_36 = arith.constant 1.000000e+00 : f32
    %52 = vector.broadcast %cst_36 : f32 to vector<1x128xf32>
    %53 = arith.subf %52, %49 : vector<1x128xf32>
    %54 = arith.fptosi %46 : vector<1x128xf32> to vector<1x128xi32>
    %55 = arith.fptosi %47 : vector<1x128xf32> to vector<1x128xi32>
    %c1_i32 = arith.constant 1 : i32
    %56 = vector.broadcast %c1_i32 : i32 to vector<1x128xi32>
    %57 = arith.addi %54, %56 : vector<1x128xi32>
    %c15_i32 = arith.constant 15 : i32
    %58 = vector.broadcast %c15_i32 : i32 to vector<1x128xi32>
    %59 = arith.minsi %57, %58 : vector<1x128xi32>
    %c1_i32_37 = arith.constant 1 : i32
    %60 = vector.broadcast %c1_i32_37 : i32 to vector<1x128xi32>
    %61 = arith.addi %55, %60 : vector<1x128xi32>
    %c15_i32_38 = arith.constant 15 : i32
    %62 = vector.broadcast %c15_i32_38 : i32 to vector<1x128xi32>
    %63 = arith.minsi %61, %62 : vector<1x128xi32>
    %64 = tpu.iota {dimensions = array<i32: 0>} : vector<16x1xi32>
    %65 = tpu.iota {dimensions = array<i32: 0>} : vector<16x1xi32>
    %66 = vector.broadcast %64 : vector<16x1xi32> to vector<16x128xi32>
    %67 = vector.broadcast %54 : vector<1x128xi32> to vector<16x128xi32>
    %68 = arith.cmpi eq, %66, %67 : vector<16x128xi32>
    %cst_39 = arith.constant 0.000000e+00 : f32
    %69 = vector.shape_cast %51 : vector<1x128xf32> to vector<1x128xf32>
    %70 = vector.broadcast %69 : vector<1x128xf32> to vector<16x128xf32>
    %71 = vector.broadcast %cst_39 : f32 to vector<16x128xf32>
    %72 = arith.select %68, %70, %71 : vector<16x128xi1>, vector<16x128xf32>
    %73 = vector.broadcast %64 : vector<16x1xi32> to vector<16x128xi32>
    %74 = vector.broadcast %59 : vector<1x128xi32> to vector<16x128xi32>
    %75 = arith.cmpi eq, %73, %74 : vector<16x128xi32>
    %cst_40 = arith.constant 0.000000e+00 : f32
    %76 = vector.shape_cast %48 : vector<1x128xf32> to vector<1x128xf32>
    %77 = vector.broadcast %76 : vector<1x128xf32> to vector<16x128xf32>
    %78 = vector.broadcast %cst_40 : f32 to vector<16x128xf32>
    %79 = arith.select %75, %77, %78 : vector<16x128xi1>, vector<16x128xf32>
    %80 = arith.addf %72, %79 : vector<16x128xf32>
    %81 = vector.broadcast %65 : vector<16x1xi32> to vector<16x128xi32>
    %82 = vector.broadcast %55 : vector<1x128xi32> to vector<16x128xi32>
    %83 = arith.cmpi eq, %81, %82 : vector<16x128xi32>
    %cst_41 = arith.constant 0.000000e+00 : f32
    %84 = vector.shape_cast %53 : vector<1x128xf32> to vector<1x128xf32>
    %85 = vector.broadcast %84 : vector<1x128xf32> to vector<16x128xf32>
    %86 = vector.broadcast %cst_41 : f32 to vector<16x128xf32>
    %87 = arith.select %83, %85, %86 : vector<16x128xi1>, vector<16x128xf32>
    %88 = vector.broadcast %65 : vector<16x1xi32> to vector<16x128xi32>
    %89 = vector.broadcast %63 : vector<1x128xi32> to vector<16x128xi32>
    %90 = arith.cmpi eq, %88, %89 : vector<16x128xi32>
    %cst_42 = arith.constant 0.000000e+00 : f32
    %91 = vector.shape_cast %49 : vector<1x128xf32> to vector<1x128xf32>
    %92 = vector.broadcast %91 : vector<1x128xf32> to vector<16x128xf32>
    %93 = vector.broadcast %cst_42 : f32 to vector<16x128xf32>
    %94 = arith.select %90, %92, %93 : vector<16x128xi1>, vector<16x128xf32>
    %95 = arith.addf %87, %94 : vector<16x128xf32>
    %c0_43 = arith.constant 0 : index
    %c0_44 = arith.constant 0 : index
    %c0_45 = arith.constant 0 : index
    %c0_46 = arith.constant 0 : index
    %96 = vector.load %arg11[%c0_43, %c0_44, %c0_45, %c0_46] : memref<1x4x16x16xf32, #tpu.memory_space<vmem>>, vector<1x4x16x16xf32>
    %97 = vector.shape_cast %96 : vector<1x4x16x16xf32> to vector<4x16x16xf32>
    %98 = vector.shape_cast %97 : vector<4x16x16xf32> to vector<64x16xf32>
    %cst_47 = arith.constant dense<0.000000e+00> : vector<64x128xf32>
    %99 = tpu.matmul %98, %80, %cst_47 {dimension_numbers = #tpu.dot_dimension_numbers<[1], [0], [0], [1], [0, 0, 1, 1], [], []>} : vector<64x16xf32>, vector<16x128xf32>, vector<64x128xf32> -> vector<64x128xf32>
    %100 = vector.shape_cast %99 : vector<64x128xf32> to vector<4x16x128xf32>
    %101 = vector.extract_strided_slice %100 {offsets = [0, 0, 0], sizes = [1, 16, 128], strides = [1, 1, 1]} : vector<4x16x128xf32> to vector<1x16x128xf32>
    %102 = vector.shape_cast %101 : vector<1x16x128xf32> to vector<16x128xf32>
    %103 = arith.mulf %102, %95 : vector<16x128xf32>
    %cst_48 = arith.constant dense<0.000000e+00> : vector<128xf32>
    %104 = vector.multi_reduction <add>, %103, %cst_48 [0] : vector<16x128xf32> to vector<128xf32>
    %105 = vector.shape_cast %104 : vector<128xf32> to vector<1x128xf32>
    %106 = vector.extract_strided_slice %100 {offsets = [1, 0, 0], sizes = [1, 16, 128], strides = [1, 1, 1]} : vector<4x16x128xf32> to vector<1x16x128xf32>
    %107 = vector.shape_cast %106 : vector<1x16x128xf32> to vector<16x128xf32>
    %108 = arith.mulf %107, %95 : vector<16x128xf32>
    %cst_49 = arith.constant dense<0.000000e+00> : vector<128xf32>
    %109 = vector.multi_reduction <add>, %108, %cst_49 [0] : vector<16x128xf32> to vector<128xf32>
    %110 = vector.shape_cast %109 : vector<128xf32> to vector<1x128xf32>
    %111 = vector.extract_strided_slice %100 {offsets = [2, 0, 0], sizes = [1, 16, 128], strides = [1, 1, 1]} : vector<4x16x128xf32> to vector<1x16x128xf32>
    %112 = vector.shape_cast %111 : vector<1x16x128xf32> to vector<16x128xf32>
    %113 = arith.mulf %112, %95 : vector<16x128xf32>
    %cst_50 = arith.constant dense<0.000000e+00> : vector<128xf32>
    %114 = vector.multi_reduction <add>, %113, %cst_50 [0] : vector<16x128xf32> to vector<128xf32>
    %115 = vector.shape_cast %114 : vector<128xf32> to vector<1x128xf32>
    %116 = vector.extract_strided_slice %100 {offsets = [3, 0, 0], sizes = [1, 16, 128], strides = [1, 1, 1]} : vector<4x16x128xf32> to vector<1x16x128xf32>
    %117 = vector.shape_cast %116 : vector<1x16x128xf32> to vector<16x128xf32>
    %118 = arith.mulf %117, %95 : vector<16x128xf32>
    %cst_51 = arith.constant dense<0.000000e+00> : vector<128xf32>
    %119 = vector.multi_reduction <add>, %118, %cst_51 [0] : vector<16x128xf32> to vector<128xf32>
    %120 = vector.shape_cast %119 : vector<128xf32> to vector<1x128xf32>
    %121 = tpu.concatenate %105, %110, %115, %120 in 0 : vector<1x128xf32>, vector<1x128xf32>, vector<1x128xf32>, vector<1x128xf32> -> vector<4x128xf32>
    %c0_52 = arith.constant 0 : index
    %c0_53 = arith.constant 0 : index
    %c0_54 = arith.constant 0 : index
    %122 = vector.load %arg12[%c0_52, %c0_53, %c0_54] : memref<1x4x128xf32, #tpu.memory_space<vmem>>, vector<1x4x128xf32>
    %123 = vector.shape_cast %122 : vector<1x4x128xf32> to vector<4x128xf32>
    %124 = vector.shape_cast %121 : vector<4x128xf32> to vector<1x4x128xf32>
    tpu.vector_store %arg12[%c0_52, %c0_53, %c0_54], %124 {strides = array<i32>} : memref<1x4x128xf32, #tpu.memory_space<vmem>>, vector<1x4x128xf32>,
    return
  }
  func.func @transform_0(%arg0: i32, %arg1: i32) -> (i32, i32, i32) {
    %c0_i32 = arith.constant 0 : i32
    %c0_i32_0 = arith.constant 0 : i32
    %c0_i32_1 = arith.constant 0 : i32
    return %arg0, %c0_i32, %c0_i32_0 : i32, i32, i32
  }
  func.func @transform_1(%arg0: i32, %arg1: i32) -> (i32, i32) {
    %c0_i32 = arith.constant 0 : i32
    %c0_i32_0 = arith.constant 0 : i32
    %c0_i32_1 = arith.constant 0 : i32
    return %c0_i32, %c0_i32_0 : i32, i32
  }
  func.func @transform_2(%arg0: i32, %arg1: i32) -> (i32, i32) {
    %c0_i32 = arith.constant 0 : i32
    %c0_i32_0 = arith.constant 0 : i32
    %c0_i32_1 = arith.constant 0 : i32
    return %c0_i32, %c0_i32_0 : i32, i32
  }
  func.func @transform_3(%arg0: i32, %arg1: i32) -> (i32, i32) {
    %c0_i32 = arith.constant 0 : i32
    %c0_i32_0 = arith.constant 0 : i32
    %c0_i32_1 = arith.constant 0 : i32
    return %c0_i32, %c0_i32_0 : i32, i32
  }
  func.func @transform_4(%arg0: i32, %arg1: i32) -> (i32, i32) {
    %c0_i32 = arith.constant 0 : i32
    %c0_i32_0 = arith.constant 0 : i32
    %c0_i32_1 = arith.constant 0 : i32
    return %c0_i32, %c0_i32_0 : i32, i32
  }
  func.func @transform_5(%arg0: i32, %arg1: i32) -> (i32, i32) {
    %c0_i32 = arith.constant 0 : i32
    %c0_i32_0 = arith.constant 0 : i32
    return %c0_i32, %arg1 : i32, i32
  }
  func.func @transform_6(%arg0: i32, %arg1: i32) -> (i32, i32) {
    %c0_i32 = arith.constant 0 : i32
    %c0_i32_0 = arith.constant 0 : i32
    return %c0_i32, %arg1 : i32, i32
  }
  func.func @transform_7(%arg0: i32, %arg1: i32) -> (i32, i32) {
    %c0_i32 = arith.constant 0 : i32
    %c0_i32_0 = arith.constant 0 : i32
    return %c0_i32, %arg1 : i32, i32
  }
  func.func @transform_8(%arg0: i32, %arg1: i32) -> (i32, i32) {
    %c0_i32 = arith.constant 0 : i32
    %c0_i32_0 = arith.constant 0 : i32
    return %c0_i32, %arg1 : i32, i32
  }
  func.func @transform_9(%arg0: i32, %arg1: i32) -> (i32, i32, i32, i32) {
    %c0_i32 = arith.constant 0 : i32
    %c0_i32_0 = arith.constant 0 : i32
    %c0_i32_1 = arith.constant 0 : i32
    %c0_i32_2 = arith.constant 0 : i32
    return %arg0, %c0_i32, %c0_i32_0, %c0_i32_1 : i32, i32, i32, i32
  }
  func.func @transform_10(%arg0: i32, %arg1: i32) -> (i32, i32, i32) {
    %c0_i32 = arith.constant 0 : i32
    %c0_i32_0 = arith.constant 0 : i32
    return %arg0, %c0_i32, %arg1 : i32, i32, i32
  }
}

</mosaic_0001>

<bundles_post_ra>
// kernel: spatial_transformer_forward.1
= control target key start
LH: loop header
LB: loop body
LE: loop exit
PB: predicated region body
PF: predicated region fallthrough
CT: control target
= control target key end

     0   :  { %s4523_s0 = inlined_call_operand.vmem [shape: f32[2,1,1024], index: 0, kind: input, shape index: {}]   ;;  %s4524_s1 = inlined_call_operand.hbm [shape: f32[1024,512], index: 1, kind: input, shape index: {}]   ;;  %s4525_s2 = inlined_call_operand.hbm [shape: f32[1,512], index: 2, kind: input, shape index: {}]   ;;  %s4526_s3 = inlined_call_operand.hbm [shape: f32[512,128], index: 3, kind: input, shape index: {}]   ;;  %s4527_s4 = inlined_call_operand.hbm [shape: f32[1,128], index: 4, kind: input, shape index: {}]   ;;  %s4528_s5 = inlined_call_operand.vmem [shape: f32[128,256], index: 5, kind: input, shape index: {}]   ;;  %s4529_s6 = inlined_call_operand.vmem [shape: f32[1,256], index: 6, kind: input, shape index: {}]   ;;  %s4530_s7 = inlined_call_operand.vmem [shape: f32[128,256], index: 7, kind: input, shape index: {}]   ;;  %s4531_s8 = inlined_call_operand.vmem [shape: f32[1,256], index: 8, kind: input, shape index: {}]   ;;  %s4532_s9 = inlined_call_operand.hbm [shape: f32[2,4,16,16], index: 9, kind: input, shape index: {}]   ;;  %s4533_s10 = inlined_call_operand.vmem [shape: f32[2,4,256], index: 10, kind: output, shape index: {}]  }
   0x1   :  { %4548 = sst [smem:[#allocation25_spill]] %s4523_s0 }
   0x2   :  { %4549 = sst [smem:[#allocation26_spill]] %s4525_s2 }
   0x3   :  { %4550 = sst [smem:[#allocation27_spill]] %s4529_s6 }
   0x4   :  { %4551 = sst [smem:[#allocation28_spill]] %s4531_s8 }
   0x5   :  { %4552 = sst [smem:[#allocation29_spill]] %s4533_s10 }
   0x6   :  { %15 = vsyncpa [#allocation3], 0 }
   0x7   :  { %16 = vsyncpa [#allocation5], 0 }
   0x8   :  { %17 = vsyncpa [#allocation8], 0  ;;  %s4038_s13 = smov 0   ;;  %s4040_s14 = smov 0  }
   0x9   :  { %s4042_s15 = smov 0   ;;  %s4044_s16 = smov 0  }
   0xa   :  { %s4046_s17 = smov 0   ;;  %s4048_s18 = smov 0  }
   0xb   :  { %s4050_s19 = smov 0   ;;  %s4052_s20 = smov 0  }
   0xc   :  { %s4054_s21 = smov 0   ;;  %s4056_s22 = smov 0  }
   0xd LB: > { %4553 = sst [smem:[#allocation16_spill]] %s3935_s14  ;;  %s4535_s23 = sadd.s32 4294967295, %s3967_s22   ;;  %s3967_s22 = sphi %s4056_s22, %s23_s22   ;;  %s3963_s21 = sphi %s4054_s21, %s4598_s21   ;;  %s3959_s20 = sphi %s4052_s20, %s4597_s20   ;;  %s3955_s19 = sphi %s4050_s19, %s4596_s19   ;;  %s3951_s18 = sphi %s4048_s18, %s4595_s18   ;;  %s3947_s17 = sphi %s4046_s17, %s4594_s17   ;;  %s3943_s16 = sphi %s4044_s16, %s4593_s16   ;;  %s3939_s15 = sphi %s4042_s15, %s4592_s15   ;;  %s3935_s14 = sphi %s4040_s14, %s4591_s14   ;;  %s3931_s13 = sphi %s4038_s13, %s4586_s13  }
   0xe   : > { %4554 = sst [smem:[#allocation17_spill]] %s3943_s16  ;;  %s32_s24 = sadd.s32 1, %s3959_s20 }
   0xf   : > { %4555 = sst [smem:[#allocation18_spill]] %s3951_s18  ;;  %p33_p0 = scmp.ge.s32.totalorder %s32_s24, 2 }
  0x10   : > { %4556 = sst [smem:[#allocation19_spill]] %s3955_s19  ;;  %s35_s25 = sadd.s32 1, %s3963_s21 }
  0x11   : > { %s152_s26 = sadd.s32 1, %s3947_s17  ;;  %p159_p1 = scmp.ne.s32.totalorder %s3947_s17, %s3943_s16 }
  0x12   : > { %s4600_s24 = smov (%p33_p0, %s32_s24), 0  ;;  %s4602_s25 = smov (!%p33_p0, %s35_s25), %s3963_s21 }
  0x13   : > { %4557 = sst [smem:[#allocation20_spill]] %s4600_s24  ;;  %s149_s27 = ssub.s32 %s3959_s20, %s4600_s24 }
  0x14   : > { %p160_p2 = scmp.eq.s32.totalorder %s3967_s22, 0  ;;  %p37_p3 = scmp.ge.s32.totalorder %s4602_s25, 2 }
  0x15   : > { %p150_p4 = scmp.eq.s32.totalorder %s149_s27, 0  ;;  %s256_s29 = sadd.s32 1, %s3939_s15 }
  0x16   : > { %p4100_p5 = por %p160_p2, %p159_p1  ;;  %s4604_s25 = smov (%p37_p3, %s4602_s25), 0 }
  0x17   : > { %4559 = sst [smem:[#allocation21_spill]] %s4604_s25  ;;  %s253_s11 = ssub.s32 %s3963_s21, %s4604_s25 }
  0x18   : > { %s4558_s28 = scalar_select %p4100_p5, 1, 0 }
  0x19   : > { %s4108_s30 = scalar_select %p150_p4, %s3947_s17, %s152_s26  }
  0x1a   : > { %p263_p6 = scmp.ne.s32.totalorder %s3939_s15, %s3935_s14  ;;  %p254_p7 = scmp.eq.s32.totalorder %s253_s11, 0 }
  0x1b   : > { %4560 = sst [smem:[#allocation22_spill]] %s4108_s30  ;;  %p269_p8 = scmp.ne.s32.totalorder %s3935_s14, %s3931_s13 }
  0x1c   : > { %p4116_p9 = por %p263_p6, %p160_p2  ;;  %p4122_p10 = scmp.eq.s32.totalorder %s4535_s23, 0 }
  0x1d   : > { %s4127_s24 = scalar_select %p254_p7, %s3939_s15, %s256_s29  }
  0x1e   : > { %s4561_s12 = scalar_select %p4116_p9, 1, 0 }
  0x1f   : > { %s4562_s27 = scalar_select %p4122_p10, 1, 0 }
  0x20   : > { %4563 = sst [smem:[#allocation23_spill]] %s4127_s24  ;;  %p4131_p11 = por %p4122_p10, %p269_p8 }
  0x21   : > { %p2713_p12 = scmp.ge.s32.totalorder %s3967_s22, 1  ;;  %p308_p13 = scmp.lt.s32.totalorder %s3967_s22, 5 }
  0x22   : > { %s4564_s26 = scalar_select %p4131_p11, 1, 0 }
  0x23   : > { %p4137_p0 = pnand %p2713_p12, %p308_p13  ;;  %s3969_s11 = smov [#allocation4]  }
  0x24   : > { %4565 = sst [smem:[#allocation24_spill]] %s4564_s26  ;;  %s334_s23 = sshll.u32 %s3969_s11, 4  ;;  %s335_s23 = int_to_ptr.vmem [resolvable:$true] %s334_s23 }
  0x25   : > { %s4566_s13 = scalar_select %p4137_p0, 1, 0 }
  0x26   : > { %p3618_p1 = pneg %p4137_p0  ;;  %s3970_s25 = smov [#allocation2]  }
  0x27   : > { %s320_s30 = sshll.u32 %s3970_s25, 4  ;;  %s4568_s2 = sld [smem:[#allocation26_spill]]  ;;  %s4149_s30 = int_to_ptr.vmem [resolvable:$true] %s320_s30 }
  0x28   : > { %p4145_p2 = pnand %p3618_p1, %p4122_p10 }
  0x2a   : > { %p4159_p4 = pneg %p4145_p2 }
  0x2d   : > { %s3733_s8 = scalar_lea.hbm %s4568_s2, 64 }
  0x2e   : > { %p3734_p3 = scmp.ne.s32.totalorder %s4568_s2, %s3733_s8  ;;  %p3740_p8 = scmp.lt.u32.totalorder %s3733_s8, %s4568_s2 }
  0x30   : > { %p3736_p6 = pnand %p4159_p4, %p3734_p3 }
  0x32   : > { %p3737_p7 = pneg %p3736_p6 }
  0x34   : > { %p3742_p12 = pnand %p3740_p8, %p3737_p7 }
  0x36   : > { %3745 = shalt.err (!%p3742_p12)
}
  0x37   : > { %s3746_s10 = scalar_lea.vmem %s335_s23, 64  ;;  %p3754_p10 = scmp.lt.s32.totalorder %s335_s23, %s335_s23 }
  0x38   : > { %p3747_p13 = scmp.ne.s32.totalorder %s335_s23, %s3746_s10  ;;  %p3755_p0 = scmp.lt.s32.totalorder %s3746_s10, %s3746_s10 }
  0x3a   : > { %p3749_p1 = pnand %p3747_p13, %p4159_p4  ;;  %p3756_p9 = por %p3755_p0, %p3754_p10 }
  0x3c   : > { %p3750_p11 = pneg %p3749_p1 }
  0x3e   : > { %p3757_p5 = pnand %p3756_p9, %p3750_p11 }
  0x40   : > { %3760 = shalt.err (!%p3757_p5)
}
  0x41   : > { %3624 = dma.hbm_to_vmem [thread:$0]  (!%p4145_p2), %s4568_s2, 64, %s335_s23, [#allocation5]  }
  0x42   : > { %s3761_s24 = scalar_lea.hbm %s4524_s1, 65536 }
  0x43   : > { %p3762_p3 = scmp.ne.s32.totalorder %s4524_s1, %s3761_s24  ;;  %p3768_p5 = scmp.lt.u32.totalorder %s3761_s24, %s4524_s1 }
  0x45   : > { %p3764_p6 = pnand %p3762_p3, %p4159_p4 }
  0x47   : > { %p3765_p10 = pneg %p3764_p6 }
  0x49   : > { %p3770_p9 = pnand %p3768_p5, %p3765_p10 }
  0x4b   : > { %3773 = shalt.err (!%p3770_p9)
}
  0x4c   : > { %s3774_s23 = scalar_lea.vmem %s4149_s30, 65536  ;;  %p3782_p8 = scmp.lt.s32.totalorder %s4149_s30, %s4149_s30 }
  0x4d   : > { %p3775_p11 = scmp.ne.s32.totalorder %s4149_s30, %s3774_s23  ;;  %p3783_p12 = scmp.lt.s32.totalorder %s3774_s23, %s3774_s23 }
  0x4f   : > { %p3777_p0 = pnand %p3775_p11, %p4159_p4  ;;  %p3784_p13 = por %p3783_p12, %p3782_p8 }
  0x51   : > { %p3778_p7 = pneg %p3777_p0 }
  0x53   : > { %p3785_p1 = pnand %p3784_p13, %p3778_p7 }
  0x55   : > { %3788 = shalt.err (!%p3785_p1)
}
  0x56   : > { %s3971_s19 = smov 512   ;;  %s3972_s26 = smov 32  }
  0x57   : > { %3621 = dma.hbm_to_vmem [thread:$0]  (!%p4145_p2), %s4524_s1, 65536, %s4149_s30, [#allocation3], %s3971_s19, %s3971_s19, %s3972_s26  }
  0x58   : > { %s3973_s0 = smov [#allocation6]   ;;  %s3789_s10 = scalar_lea.hbm %s4526_s3, 8192 }
  0x59   : > { %s344_s8 = sshll.u32 %s3973_s0, 4  ;;  %p3790_p3 = scmp.ne.s32.totalorder %s4526_s3, %s3789_s10  ;;  %s345_s8 = int_to_ptr.vmem [resolvable:$true] %s344_s8 }
  0x5a   : > { %p3796_p5 = scmp.lt.u32.totalorder %s3789_s10, %s4526_s3 }
  0x5b   : > { %p3792_p6 = pnand %p3790_p3, %p4159_p4 }
  0x5d   : > { %p3793_p10 = pneg %p3792_p6 }
  0x5f   : > { %p3798_p9 = pnand %p3796_p5, %p3793_p10 }
  0x61   : > { %3801 = shalt.err (!%p3798_p9)
}
  0x62   : > { %s3802_s30 = scalar_lea.vmem %s345_s8, 8192  ;;  %p3810_p8 = scmp.lt.s32.totalorder %s345_s8, %s345_s8 }
  0x63   : > { %p3803_p11 = scmp.ne.s32.totalorder %s345_s8, %s3802_s30  ;;  %p3811_p12 = scmp.lt.s32.totalorder %s3802_s30, %s3802_s30 }
  0x65   : > { %p3805_p0 = pnand %p3803_p11, %p4159_p4  ;;  %p3812_p13 = por %p3811_p12, %p3810_p8 }
  0x67   : > { %p3806_p7 = pneg %p3805_p0 }
  0x69   : > { %p3813_p1 = pnand %p3812_p13, %p3806_p7 }
  0x6b   : > { %3816 = shalt.err (!%p3813_p1)
}
  0x6c   : > { %s3974_s2 = smov 128   ;;  %s3975_s19 = smov 8  }
  0x6d   : > { %3627 = dma.hbm_to_vmem [thread:$0]  (!%p4145_p2), %s4526_s3, 8192, %s345_s8, [#allocation5], %s3974_s2, %s3974_s2, %s3975_s19  }
  0x6e   : > { %s3976_s26 = smov [#allocation7]   ;;  %s3817_s24 = scalar_lea.hbm %s4527_s4, 16 }
  0x6f   : > { %s358_s6 = sshll.u32 %s3976_s26, 4  ;;  %p3818_p3 = scmp.ne.s32.totalorder %s4527_s4, %s3817_s24  ;;  %s359_s6 = int_to_ptr.vmem [resolvable:$true] %s358_s6 }
  0x70   : > { %p3824_p5 = scmp.lt.u32.totalorder %s3817_s24, %s4527_s4 }
  0x71   : > { %p3820_p6 = pnand %p3818_p3, %p4159_p4 }
  0x73   : > { %p3821_p10 = pneg %p3820_p6 }
  0x75   : > { %p3826_p9 = pnand %p3824_p5, %p3821_p10 }
  0x77   : > { %3829 = shalt.err (!%p3826_p9)
}
  0x78   : > { %s3830_s8 = scalar_lea.vmem %s359_s6, 16  ;;  %s3837_s2 = scalar_lea.vmem %s359_s6, 32 }
  0x79   : > { %p3831_p11 = scmp.ne.s32.totalorder %s359_s6, %s3830_s8  ;;  %p3838_p8 = scmp.lt.s32.totalorder %s359_s6, %s359_s6 }
  0x7a   : > { %p3839_p12 = scmp.lt.s32.totalorder %s3837_s2, %s3830_s8 }
  0x7b   : > { %p3833_p0 = pnand %p3831_p11, %p4159_p4 }
  0x7c   : > { %p3840_p13 = por %p3839_p12, %p3838_p8 }
  0x7d   : > { %p3834_p7 = pneg %p3833_p0 }
  0x7f   : > { %p3841_p1 = pnand %p3840_p13, %p3834_p7 }
  0x81   : > { %3844 = shalt.err (!%p3841_p1)
}
  0x82   : > { %3630 = dma.hbm_to_vmem [thread:$0]  (!%p4145_p2), %s4527_s4, 16, %s359_s6, [#allocation8]  }
  0x83   : > { %p2718_p3 = scmp.ge.s32.totalorder %s3967_s22, 4 }
  0x84   : > { %p4570_p6 = scmp.ne.s32.totalorder (!%p2718_p3), %s4558_s28, 0 }
  0x85   : > { %365 = sbr.rel (%p2718_p3) target bundleno = 192 (0xc0), region = 32 }
  0x8c   : > { %375 = sbr.rel (!%p4570_p6) target bundleno = 152 (0x98), region = 40  ;;  %s377_s11 = sand.u32 (%p4570_p6), 1, %s3947_s17  }
  0x8d   : > { %s2720_s16 = sshll.u32 (%p4570_p6), %s3959_s20, 3  ;;  %s2719_s26 = sshll.u32 (%p4570_p6), %s377_s11, 7 }
  0x8e   : > { %s4242_s24 = scalar_lea.vmem (%p4570_p6), %s4528_s5, %s2720_s16  ;;  %s379_s29 = scalar_lea.vmem (%p4570_p6), [#allocation9], %s2719_s26 }
  0x8f   : > { %v439_v0 = vld [vmem:[%s4242_s24] sm:$0xff] (%p4570_p6)  ;;  %v441_v1 = vld [vmem:[%s4242_s24 + $0x10] sm:$0xff] (%p4570_p6) }
  0x90   : > { %v443_v2 = vld [vmem:[%s4242_s24 + $0x20] sm:$0xff] (%p4570_p6)  ;;  %440 = vst [vmem:[%s379_s29] sm:$0xff] (%p4570_p6), %v439_v0  ;;  %442 = vst [vmem:[%s379_s29 + $0x8] sm:$0xff] (%p4570_p6), %v441_v1  ;;  %v445_v3 = vld [vmem:[%s4242_s24 + $0x30] sm:$0xff] (%p4570_p6) }
  0x91   : > { %444 = vst [vmem:[%s379_s29 + $0x10] sm:$0xff] (%p4570_p6), %v443_v2  ;;  %v447_v4 = vld [vmem:[%s4242_s24 + $0x40] sm:$0xff] (%p4570_p6)  ;;  %v449_v5 = vld [vmem:[%s4242_s24 + $0x50] sm:$0xff] (%p4570_p6)  ;;  %446 = vst [vmem:[%s379_s29 + $0x18] sm:$0xff] (%p4570_p6), %v445_v3 }
  0x92   : > { %448 = vst [vmem:[%s379_s29 + $0x20] sm:$0xff] (%p4570_p6), %v447_v4  ;;  %450 = vst [vmem:[%s379_s29 + $0x28] sm:$0xff] (%p4570_p6), %v449_v5  ;;  %v451_v6 = vld [vmem:[%s4242_s24 + $0x60] sm:$0xff] (%p4570_p6)  ;;  %v453_v7 = vld [vmem:[%s4242_s24 + $0x70] sm:$0xff] (%p4570_p6) }
  0x93   : > { %v455_v8 = vld [vmem:[%s4242_s24 + $0x80] sm:$0xff]  ;;  %452 = vst [vmem:[%s379_s29 + $0x30] sm:$0xff] %v451_v6  ;;  %454 = vst [vmem:[%s379_s29 + $0x38] sm:$0xff] %v453_v7  ;;  %v457_v9 = vld [vmem:[%s4242_s24 + $0x90] sm:$0xff] }
  0x94   : > { %456 = vst [vmem:[%s379_s29 + $0x40] sm:$0xff] %v455_v8  ;;  %v459_v10 = vld [vmem:[%s4242_s24 + $0xa0] sm:$0xff]  ;;  %v461_v11 = vld [vmem:[%s4242_s24 + $0xb0] sm:$0xff]  ;;  %458 = vst [vmem:[%s379_s29 + $0x48] sm:$0xff] %v457_v9 }
  0x95   : > { %460 = vst [vmem:[%s379_s29 + $0x50] sm:$0xff] %v459_v10  ;;  %462 = vst [vmem:[%s379_s29 + $0x58] sm:$0xff] %v461_v11  ;;  %v463_v12 = vld [vmem:[%s4242_s24 + $0xc0] sm:$0xff]  ;;  %v465_v13 = vld [vmem:[%s4242_s24 + $0xd0] sm:$0xff] }
  0x96   : > { %v467_v14 = vld [vmem:[%s4242_s24 + $0xe0] sm:$0xff]  ;;  %464 = vst [vmem:[%s379_s29 + $0x60] sm:$0xff] %v463_v12  ;;  %466 = vst [vmem:[%s379_s29 + $0x68] sm:$0xff] %v465_v13  ;;  %v469_v15 = vld [vmem:[%s4242_s24 + $0xf0] sm:$0xff] }
  0x97   : > { %468 = vst [vmem:[%s379_s29 + $0x70] sm:$0xff] %v467_v14  ;;  %470 = vst [vmem:[%s379_s29 + $0x78] sm:$0xff] %v469_v15 }
  0x98 PF: > { %p4571_p2 = scmp.ne.s32.totalorder %s4558_s28, 0 }
  0x99   : > { %s484_s6 = sand.u32 (%p4571_p2), 1, %s3947_s17   ;;  %s2722_s25 = sshll.u32 (%p4571_p2), %s3959_s20, 3 }
  0x9a   : > { %482 = sbr.rel (!%p4571_p2) target bundleno = 165 (0xa5), region = 82  ;;  %s2721_s10 = sshll.u32 (%p4571_p2), %s484_s6, 7 }
  0x9b   : > { %s4267_s8 = scalar_lea.vmem (%p4571_p2), %s4530_s7, %s2722_s25  ;;  %s486_s28 = scalar_lea.vmem (%p4571_p2), [#allocation10], %s2721_s10 }
  0x9c   : > { %v546_v16 = vld [vmem:[%s4267_s8] sm:$0xff] (%p4571_p2)  ;;  %v548_v17 = vld [vmem:[%s4267_s8 + $0x10] sm:$0xff] (%p4571_p2) }
  0x9d   : > { %v550_v18 = vld [vmem:[%s4267_s8 + $0x20] sm:$0xff] (%p4571_p2)  ;;  %547 = vst [vmem:[%s486_s28] sm:$0xff] (%p4571_p2), %v546_v16  ;;  %549 = vst [vmem:[%s486_s28 + $0x8] sm:$0xff] (%p4571_p2), %v548_v17  ;;  %v552_v19 = vld [vmem:[%s4267_s8 + $0x30] sm:$0xff] (%p4571_p2) }
  0x9e   : > { %551 = vst [vmem:[%s486_s28 + $0x10] sm:$0xff] (%p4571_p2), %v550_v18  ;;  %v554_v20 = vld [vmem:[%s4267_s8 + $0x40] sm:$0xff] (%p4571_p2)  ;;  %v556_v21 = vld [vmem:[%s4267_s8 + $0x50] sm:$0xff] (%p4571_p2)  ;;  %553 = vst [vmem:[%s486_s28 + $0x18] sm:$0xff] (%p4571_p2), %v552_v19 }
  0x9f   : > { %555 = vst [vmem:[%s486_s28 + $0x20] sm:$0xff] (%p4571_p2), %v554_v20  ;;  %557 = vst [vmem:[%s486_s28 + $0x28] sm:$0xff] (%p4571_p2), %v556_v21  ;;  %v558_v22 = vld [vmem:[%s4267_s8 + $0x60] sm:$0xff] (%p4571_p2)  ;;  %v560_v23 = vld [vmem:[%s4267_s8 + $0x70] sm:$0xff] (%p4571_p2) }
  0xa0   : > { %v562_v24 = vld [vmem:[%s4267_s8 + $0x80] sm:$0xff] (%p4571_p2)  ;;  %559 = vst [vmem:[%s486_s28 + $0x30] sm:$0xff] (%p4571_p2), %v558_v22  ;;  %561 = vst [vmem:[%s486_s28 + $0x38] sm:$0xff] (%p4571_p2), %v560_v23  ;;  %v564_v25 = vld [vmem:[%s4267_s8 + $0x90] sm:$0xff] (%p4571_p2) }
  0xa1   : > { %563 = vst [vmem:[%s486_s28 + $0x40] sm:$0xff] %v562_v24  ;;  %v566_v26 = vld [vmem:[%s4267_s8 + $0xa0] sm:$0xff]  ;;  %v568_v27 = vld [vmem:[%s4267_s8 + $0xb0] sm:$0xff]  ;;  %565 = vst [vmem:[%s486_s28 + $0x48] sm:$0xff] %v564_v25 }
  0xa2   : > { %567 = vst [vmem:[%s486_s28 + $0x50] sm:$0xff] %v566_v26  ;;  %569 = vst [vmem:[%s486_s28 + $0x58] sm:$0xff] %v568_v27  ;;  %v570_v28 = vld [vmem:[%s4267_s8 + $0xc0] sm:$0xff]  ;;  %v572_v29 = vld [vmem:[%s4267_s8 + $0xd0] sm:$0xff] }
  0xa3   : > { %v574_v30 = vld [vmem:[%s4267_s8 + $0xe0] sm:$0xff]  ;;  %571 = vst [vmem:[%s486_s28 + $0x60] sm:$0xff] %v570_v28  ;;  %573 = vst [vmem:[%s486_s28 + $0x68] sm:$0xff] %v572_v29  ;;  %v576_v31 = vld [vmem:[%s4267_s8 + $0xf0] sm:$0xff] }
  0xa4   : > { %575 = vst [vmem:[%s486_s28 + $0x70] sm:$0xff] %v574_v30  ;;  %577 = vst [vmem:[%s486_s28 + $0x78] sm:$0xff] %v576_v31 }
  0xa5 PF: > { %s590_s2 = sand.u32 1, %s3967_s22   ;;  %s592_s19 = sand.u32 1, %s3939_s15  }
  0xa6   : > { %s2723_s14 = sshll.u32 %s592_s19, 6  ;;  %s2749_s11 = sshll.u32 %s3963_s21, 10 }
  0xa7   : > { %s4291_s18 = scalar_lea.hbm %s4532_s9, %s2749_s11  ;;  %s594_s0 = scalar_lea.vmem [#allocation11], %s2723_s14 }
  0xa8   : > { %s601_s24 = sshll.u32 %s594_s0, 4  ;;  %s4295_s29 = scalar_lea.sflag [#allocation3], %s590_s2  ;;  %s4293_s24 = int_to_ptr.vmem [resolvable:$true] %s601_s24 }
  0xa9   : > { %s3845_s6 = scalar_lea.hbm %s4291_s18, 1024  ;;  %p4572_p10 = scmp.ne.s32.totalorder %s4561_s12, 0 }
  0xaa   : > { %p3846_p4 = scmp.ne.s32.totalorder %s4291_s18, %s3845_s6  ;;  %s3849_s23 = scalar_lea.hbm %s4532_s9, 2048 }
  0xab   : > { %p3850_p11 = scmp.lt.u32.totalorder %s4291_s18, %s4532_s9  ;;  %p3851_p0 = scmp.lt.u32.totalorder %s3849_s23, %s3845_s6 }
  0xac   : > { %p3847_p5 = pnand %p3846_p4, %p4572_p10  ;;  %p3853_p8 = scmp.lt.u32.totalorder %s3845_s6, %s4291_s18 }
  0xad   : > { %p3852_p7 = por %p3851_p0, %p3850_p11 }
  0xae   : > { %p3848_p9 = pneg %p3847_p5 }
  0xaf   : > { %p3854_p12 = por %p3853_p8, %p3852_p7 }
  0xb1   : > { %p3855_p13 = pnand %p3854_p12, %p3848_p9 }
  0xb3   : > { %3858 = shalt.err (!%p3855_p13)
}
  0xb4   : > { %s3859_s28 = scalar_lea.vmem %s4293_s24, 1024  ;;  %s3977_s2 = smov [#allocation11]  }
  0xb5   : > { %p3860_p1 = scmp.ne.s32.totalorder %s4293_s24, %s3859_s28  ;;  %s3863_s19 = sshll.u32 %s3977_s2, 4  ;;  %s3864_s19 = int_to_ptr.vmem [resolvable:$false] %s3863_s19 }
  0xb6   : > { %s3865_s14 = scalar_lea.vmem %s3864_s19, 2048  ;;  %p3866_p2 = scmp.lt.s32.totalorder %s4293_s24, %s3864_s19 }
  0xb7   : > { %p3861_p3 = pnand %p3860_p1, %p4572_p10  ;;  %p3867_p4 = scmp.lt.s32.totalorder %s3865_s14, %s3859_s28 }
  0xb9   : > { %p3862_p6 = pneg %p3861_p3  ;;  %p3868_p5 = por %p3867_p4, %p3866_p2 }
  0xbb   : > { %p3869_p11 = pnand %p3868_p5, %p3862_p6 }
  0xbd   : > { %3872 = shalt.err (!%p3869_p11)
}
  0xbe   : > { %s3978_s11 = smov 128   ;;  %s3979_s16 = smov 8  }
  0xbf   : > { %3608 = dma.hbm_to_vmem [thread:$0]  (%p4572_p10), %s4291_s18, 1024, %s4293_s24, %s4295_s29, %s3978_s11, %s3978_s11, %s3979_s16  }
  0xc0 PF: > { %p4573_p9 = scmp.ne.s32.totalorder %s4566_s13, 0 }
  0xc1   : > { %p4574_p0 = scmp.ne.s32.totalorder (!%p4573_p9), %s4562_s27, 0 }
  0xc2   : > { %613 = sbr.rel (%p4573_p9) target bundleno = 1402 (0x57a), region = 128 }
  0xc9   : > { %3914 = dma.done.wait (%p4574_p0), [#allocation3], 65536  }
  0xca   : > { %3916 = vsyncadd (%p4574_p0), [#allocation3], 4294901760 }
  0xcb   : > { %3918 = dma.done.wait (%p4574_p0), [#allocation5], 8256  }
  0xcc   : > { %3920 = vsyncadd (%p4574_p0), [#allocation5], 4294959040 }
  0xcd   : > { %3922 = dma.done.wait (%p4574_p0), [#allocation8], 16  }
  0xce   : > { %3924 = vsyncadd (%p4574_p0), [#allocation8], 4294967280  ;;  %s4575_s12 = sld [smem:[#allocation17_spill]]  ;;  %s4576_s13 = sld [smem:[#allocation16_spill]] }
  0xcf   : > { %s4577_s26 = sld [smem:[#allocation24_spill]]  ;;  %s4578_s0 = sadd.s32 4294967295, %s3967_s22  }
  0xd0   : > { %s645_s24 = sand.u32 1, %s4578_s0  }
  0xd1   : > { %s646_s30 = scalar_lea.sflag [#allocation3], %s645_s24 }
  0xd4   : > { %s632_s18 = sand.u32 1, %s4575_s12   ;;  %s647_s6 = sand.u32 1, %s4576_s13  }
  0xd5   : > { %s2731_s29 = sshll.u32 %s632_s18, 7  ;;  %s2733_s25 = sshll.u32 %s647_s6, 6 }
  0xd6   : > { %s4337_s10 = scalar_lea.vmem [#allocation9], %s2731_s29  ;;  %s4339_s23 = scalar_lea.vmem [#allocation10], %s2731_s29 }
  0xd7   : > { %s4341_s8 = scalar_lea.vmem [#allocation11], %s2733_s25  ;;  %p4579_p10 = scmp.ne.s32.totalorder %s4577_s26, 0 }
  0xd9   : > { %3926 = dma.done.wait (%p4579_p10), %s646_s30, 1024  }
  0xda   : > { %3928 = vsyncadd (%p4579_p10), %s646_s30, 4294966272  ;;  %v727_v32 = vld [vmem:[#allocation2 + $0x8] sm:$0xff]  ;;  %v729_v34 = vld [vmem:[#allocation2 + $0x18] sm:$0xff]  ;;  %s4580_s27 = sld [smem:[#allocation19_spill]]  ;;  %s4581_s14 = sld [smem:[#allocation25_spill]]  ;;  %vm3981_vm0 = vmmov 0  }
  0xdb   : > { %v731_v33 = vld [vmem:[#allocation2 + $0x28] sm:$0xff]  ;;  %v733_v36 = vld [vmem:[#allocation2 + $0x38] sm:$0xff]  ;;  %v726_v37 = vld [vmem:[#allocation2] sm:$0xff]  ;;  %s4582_s16 = sld [smem:[#allocation18_spill]]  ;;  %vm2342_vm1 = vcmask 130048   ;;  %s4583_s26 = sld [smem:[#allocation27_spill]] }
  0xdc   : > { %v2950_v35 = vpack.c.bf16 %v731_v33, %v727_v32  ;;  %v730_v38 = vld [vmem:[#allocation2 + $0x20] sm:$0xff]  ;;  %v3206_v39 = vpack.c.bf16 %v733_v36, %v729_v34  ;;  %v728_v41 = vld [vmem:[#allocation2 + $0x10] sm:$0xff]  ;;  %v735_v43 = vld [vmem:[#allocation2 + $0x48] sm:$0xff]  ;;  %s4584_s29 = sld [smem:[#allocation28_spill]]  ;;  %vm2508_vm12 = vcmask 1040384   ;;  %vm2510_vm13 = vcmask 1041408  }
  0xdd   : > { %v2952_v40 = vpack.c.bf16 %v730_v38, %v726_v37  ;;  %v732_v42 = vld [vmem:[#allocation2 + $0x30] sm:$0xff]  ;;  %v739_v45 = vld [vmem:[#allocation2 + $0x68] sm:$0xff]  ;;  %v737_v46 = vld [vmem:[#allocation2 + $0x58] sm:$0xff]  ;;  %vm2512_vm14 = vcmask 1042432  }
  0xde   : > { %2951 = vmatprep.subr.bf16.mxu0 %v2950_v35  ;;  %v3208_v44 = vpack.c.bf16 %v732_v42, %v728_v41  ;;  %v741_v47 = vld [vmem:[#allocation2 + $0x78] sm:$0xff]  ;;  %3207 = vmatprep.subr.bf16.mxu1 %v3206_v39  ;;  %v2954_v48 = vpack.c.bf16 %v739_v45, %v735_v43  ;;  %v734_v50 = vld [vmem:[#allocation2 + $0x40] sm:$0xff]  ;;  %v736_v52 = vld [vmem:[#allocation2 + $0x50] sm:$0xff] }
  0xdf   : > { %2953 = vmatpush1.bf16.msra.mxu0 %v2952_v40  ;;  %v3210_v49 = vpack.c.bf16 %v741_v47, %v737_v46  ;;  %v738_v51 = vld [vmem:[#allocation2 + $0x60] sm:$0xff]  ;;  %v740_v54 = vld [vmem:[#allocation2 + $0x70] sm:$0xff]  ;;  %v743_v55 = vld [vmem:[#allocation2 + $0x88] sm:$0xff] }
  0xe0   : > { %3209 = vmatpush1.bf16.msra.mxu1 %v3208_v44  ;;  %v2956_v53 = vpack.c.bf16 %v738_v51, %v734_v50  ;;  %v747_v56 = vld [vmem:[#allocation2 + $0xa8] sm:$0xff]  ;;  %2955 = vmatprep.subr.bf16.mxu0 %v2954_v48  ;;  %v3212_v57 = vpack.c.bf16 %v740_v54, %v736_v52  ;;  %v745_v59 = vld [vmem:[#allocation2 + $0x98] sm:$0xff]  ;;  %v742_v61 = vld [vmem:[#allocation2 + $0x80] sm:$0xff]  ;;  %p707_p7 = scmp.lt.s32.totalorder %s4580_s27, 1 }
  0xe1   : > { %3211 = vmatprep.subr.bf16.mxu1 %v3210_v49  ;;  %v2958_v58 = vpack.c.bf16 %v747_v56, %v743_v55  ;;  %v749_v60 = vld [vmem:[#allocation2 + $0xb8] sm:$0xff]  ;;  %v746_v63 = vld [vmem:[#allocation2 + $0xa0] sm:$0xff]  ;;  %v744_v0 = vld [vmem:[#allocation2 + $0x90] sm:$0xff]  ;;  %p711_p8 = scmp.lt.s32.totalorder %s4582_s16, 1 }
  0xe2   : > { %v3214_v62 = vpack.c.bf16 %v749_v60, %v745_v59  ;;  %v748_v1 = vld [vmem:[#allocation2 + $0xb0] sm:$0xff]  ;;  %v2960_v2 = vpack.c.bf16 %v746_v63, %v742_v61  ;;  %v751_v3 = vld [vmem:[#allocation2 + $0xc8] sm:$0xff]  ;;  %v753_v5 = vld [vmem:[#allocation2 + $0xd8] sm:$0xff]  ;;  %s4606_s27 = smov (!%p707_p7, %s4580_s27), 1 }
  0xe3   : > { %2957 = vmatpush1.bf16.msra.mxu0 %v2956_v53  ;;  %v755_v4 = vld [vmem:[#allocation2 + $0xe8] sm:$0xff]  ;;  %v3216_v6 = vpack.c.bf16 %v748_v1, %v744_v0  ;;  %v757_v8 = vld [vmem:[#allocation2 + $0xf8] sm:$0xff]  ;;  %v750_v9 = vld [vmem:[#allocation2 + $0xc0] sm:$0xff]  ;;  %s2734_s28 = sshll.u32 %s4606_s27, 3  ;;  %s4608_s16 = smov (!%p711_p8, %s4582_s16), 1 }
  0xe4   : > { %3213 = vmatpush1.bf16.msra.mxu1 %v3212_v57  ;;  %2959 = vmatprep.subr.bf16.mxu0 %v2958_v58  ;;  %v2962_v7 = vpack.c.bf16 %v755_v4, %v751_v3  ;;  %v754_v10 = vld [vmem:[#allocation2 + $0xe0] sm:$0xff]  ;;  %v3218_v11 = vpack.c.bf16 %v757_v8, %v753_v5  ;;  %v752_v12 = vld [vmem:[#allocation2 + $0xd0] sm:$0xff]  ;;  %v759_v14 = vld [vmem:[#allocation2 + $0x108] sm:$0xff]  ;;  %s4359_s11 = scalar_lea.vmem %s4581_s14, %s2734_s28  ;;  %s713_s18 = scalar_lea.vmem %s4583_s26, %s4608_s16 }
  0xe5   : > { %3215 = vmatprep.subr.bf16.mxu1 %v3214_v62  ;;  %v756_v13 = vld [vmem:[#allocation2 + $0xf0] sm:$0xff]  ;;  %v763_v15 = vld [vmem:[#allocation2 + $0x128] sm:$0xff]  ;;  %v761_v16 = vld [vmem:[#allocation2 + $0x118] sm:$0xff]  ;;  %v2964_v18 = vpack.c.bf16 %v754_v10, %v750_v9  ;;  %s716_s6 = scalar_lea.vmem %s4584_s29, %s4608_s16  ;;  %s2735_s25 = sshll.u32 %s4606_s27, 1 }
  0xe6   : > { %v765_v17 = vld [vmem:[#allocation2 + $0x138] sm:$0xff]  ;;  %v3220_v19 = vpack.c.bf16 %v756_v13, %v752_v12  ;;  %v2966_v20 = vpack.c.bf16 %v763_v15, %v759_v14  ;;  %v758_v21 = vld [vmem:[#allocation2 + $0x100] sm:$0xff]  ;;  %v760_v23 = vld [vmem:[#allocation2 + $0x110] sm:$0xff]  ;;  %v1240_v14 = vlaneseq  ;;  %s4585_s27 = sld [smem:[#allocation29_spill]] }
  0xe7   : > { %2961 = vmatpush1.bf16.msra.mxu0 %v2960_v2  ;;  %v762_v22 = vld [vmem:[#allocation2 + $0x120] sm:$0xff]  ;;  %v3222_v24 = vpack.c.bf16 %v765_v17, %v761_v16  ;;  %v764_v25 = vld [vmem:[#allocation2 + $0x130] sm:$0xff]  ;;  %v767_v26 = vld [vmem:[#allocation2 + $0x148] sm:$0xff] }
  0xe8   : > { %3217 = vmatpush1.bf16.msra.mxu1 %v3216_v6  ;;  %2963 = vmatprep.subr.bf16.mxu0 %v2962_v7  ;;  %v771_v27 = vld [vmem:[#allocation2 + $0x168] sm:$0xff]  ;;  %v769_v28 = vld [vmem:[#allocation2 + $0x158] sm:$0xff]  ;;  %v2968_v30 = vpack.c.bf16 %v762_v22, %v758_v21  ;;  %v3224_v31 = vpack.c.bf16 %v764_v25, %v760_v23  ;;  %v766_v33 = vld [vmem:[#allocation2 + $0x140] sm:$0xff] }
  0xe9   : > { %3219 = vmatprep.subr.bf16.mxu1 %v3218_v11  ;;  %v773_v29 = vld [vmem:[#allocation2 + $0x178] sm:$0xff]  ;;  %v2970_v32 = vpack.c.bf16 %v771_v27, %v767_v26  ;;  %v770_v34 = vld [vmem:[#allocation2 + $0x160] sm:$0xff]  ;;  %v768_v35 = vld [vmem:[#allocation2 + $0x150] sm:$0xff]  ;;  %v4353_v27 = vshrl.u32 %v1240_v14, 7 }
  0xea   : > { %v3226_v36 = vpack.c.bf16 %v773_v29, %v769_v28  ;;  %v772_v37 = vld [vmem:[#allocation2 + $0x170] sm:$0xff]  ;;  %v775_v38 = vld [vmem:[#allocation2 + $0x188] sm:$0xff]  ;;  %v777_v40 = vld [vmem:[#allocation2 + $0x198] sm:$0xff]  ;;  %v2972_v42 = vpack.c.bf16 %v770_v34, %v766_v33 }
  0xeb   : > { %2965 = vmatpush1.bf16.msra.mxu0 %v2964_v18  ;;  %v779_v39 = vld [vmem:[#allocation2 + $0x1a8] sm:$0xff]  ;;  %v781_v41 = vld [vmem:[#allocation2 + $0x1b8] sm:$0xff]  ;;  %v3228_v43 = vpack.c.bf16 %v772_v37, %v768_v35  ;;  %v774_v45 = vld [vmem:[#allocation2 + $0x180] sm:$0xff] }
  0xec   : > { %3221 = vmatpush1.bf16.msra.mxu1 %v3220_v19  ;;  %2967 = vmatprep.subr.bf16.mxu0 %v2966_v20  ;;  %v2974_v44 = vpack.c.bf16 %v779_v39, %v775_v38  ;;  %v778_v46 = vld [vmem:[#allocation2 + $0x1a0] sm:$0xff]  ;;  %v776_v47 = vld [vmem:[#allocation2 + $0x190] sm:$0xff]  ;;  %v3230_v48 = vpack.c.bf16 %v781_v41, %v777_v40  ;;  %v783_v50 = vld [vmem:[#allocation2 + $0x1c8] sm:$0xff]  ;;  %v1246_v40 = vsub.s32 1, %v4353_v27 }
  0xed   : > { %3223 = vmatprep.subr.bf16.mxu1 %v3222_v24  ;;  %v780_v49 = vld [vmem:[#allocation2 + $0x1b0] sm:$0xff]  ;;  %v787_v51 = vld [vmem:[#allocation2 + $0x1e8] sm:$0xff]  ;;  %v785_v52 = vld [vmem:[#allocation2 + $0x1d8] sm:$0xff]  ;;  %v2976_v54 = vpack.c.bf16 %v778_v46, %v774_v45 }
  0xee   : > { %v789_v53 = vld [vmem:[#allocation2 + $0x1f8] sm:$0xff]  ;;  %v3232_v55 = vpack.c.bf16 %v780_v49, %v776_v47  ;;  %v2978_v56 = vpack.c.bf16 %v787_v51, %v783_v50  ;;  %v782_v57 = vld [vmem:[#allocation2 + $0x1c0] sm:$0xff]  ;;  %v784_v59 = vld [vmem:[#allocation2 + $0x1d0] sm:$0xff] }
  0xef   : > { %2969 = vmatpush1.bf16.msra.mxu0 %v2968_v30  ;;  %v786_v58 = vld [vmem:[#allocation2 + $0x1e0] sm:$0xff]  ;;  %v3234_v60 = vpack.c.bf16 %v789_v53, %v785_v52  ;;  %v788_v61 = vld [vmem:[#allocation2 + $0x1f0] sm:$0xff]  ;;  %v791_v62 = vld [vmem:[#allocation2 + $0x208] sm:$0xff] }
  0xf0   : > { %3225 = vmatpush1.bf16.msra.mxu1 %v3224_v31  ;;  %2971 = vmatprep.subr.bf16.mxu0 %v2970_v32  ;;  %v795_v63 = vld [vmem:[#allocation2 + $0x228] sm:$0xff]  ;;  %v793_v0 = vld [vmem:[#allocation2 + $0x218] sm:$0xff]  ;;  %v2980_v2 = vpack.c.bf16 %v786_v58, %v782_v57  ;;  %v3236_v3 = vpack.c.bf16 %v788_v61, %v784_v59  ;;  %v790_v5 = vld [vmem:[#allocation2 + $0x200] sm:$0xff] }
  0xf1   : > { %3227 = vmatprep.subr.bf16.mxu1 %v3226_v36  ;;  %v797_v1 = vld [vmem:[#allocation2 + $0x238] sm:$0xff]  ;;  %v2982_v4 = vpack.c.bf16 %v795_v63, %v791_v62  ;;  %v794_v6 = vld [vmem:[#allocation2 + $0x220] sm:$0xff]  ;;  %v792_v7 = vld [vmem:[#allocation2 + $0x210] sm:$0xff] }
  0xf2   : > { %v3238_v8 = vpack.c.bf16 %v797_v1, %v793_v0  ;;  %v796_v9 = vld [vmem:[#allocation2 + $0x230] sm:$0xff]  ;;  %v799_v10 = vld [vmem:[#allocation2 + $0x248] sm:$0xff]  ;;  %v801_v12 = vld [vmem:[#allocation2 + $0x258] sm:$0xff]  ;;  %v2984_v15 = vpack.c.bf16 %v794_v6, %v790_v5 }
  0xf3   : > { %2973 = vmatpush1.bf16.msra.mxu0 %v2972_v42  ;;  %v803_v11 = vld [vmem:[#allocation2 + $0x268] sm:$0xff]  ;;  %v805_v13 = vld [vmem:[#allocation2 + $0x278] sm:$0xff]  ;;  %v3240_v16 = vpack.c.bf16 %v796_v9, %v792_v7  ;;  %v798_v18 = vld [vmem:[#allocation2 + $0x240] sm:$0xff] }
  0xf4   : > { %3229 = vmatpush1.bf16.msra.mxu1 %v3228_v43  ;;  %2975 = vmatprep.subr.bf16.mxu0 %v2974_v44  ;;  %v2986_v17 = vpack.c.bf16 %v803_v11, %v799_v10  ;;  %v802_v19 = vld [vmem:[#allocation2 + $0x260] sm:$0xff]  ;;  %v800_v20 = vld [vmem:[#allocation2 + $0x250] sm:$0xff]  ;;  %v3242_v21 = vpack.c.bf16 %v805_v13, %v801_v12  ;;  %v807_v23 = vld [vmem:[#allocation2 + $0x288] sm:$0xff] }
  0xf5   : > { %3231 = vmatprep.subr.bf16.mxu1 %v3230_v48  ;;  %v804_v22 = vld [vmem:[#allocation2 + $0x270] sm:$0xff]  ;;  %v811_v24 = vld [vmem:[#allocation2 + $0x2a8] sm:$0xff]  ;;  %v809_v25 = vld [vmem:[#allocation2 + $0x298] sm:$0xff]  ;;  %v2988_v28 = vpack.c.bf16 %v802_v19, %v798_v18 }
  0xf6   : > { %v813_v26 = vld [vmem:[#allocation2 + $0x2b8] sm:$0xff]  ;;  %v3244_v29 = vpack.c.bf16 %v804_v22, %v800_v20  ;;  %v2990_v30 = vpack.c.bf16 %v811_v24, %v807_v23  ;;  %v806_v31 = vld [vmem:[#allocation2 + $0x280] sm:$0xff]  ;;  %v808_v33 = vld [vmem:[#allocation2 + $0x290] sm:$0xff] }
  0xf7   : > { %2977 = vmatpush1.bf16.msra.mxu0 %v2976_v54  ;;  %v810_v32 = vld [vmem:[#allocation2 + $0x2a0] sm:$0xff]  ;;  %v3246_v34 = vpack.c.bf16 %v813_v26, %v809_v25  ;;  %v812_v35 = vld [vmem:[#allocation2 + $0x2b0] sm:$0xff]  ;;  %v815_v36 = vld [vmem:[#allocation2 + $0x2c8] sm:$0xff] }
  0xf8   : > { %3233 = vmatpush1.bf16.msra.mxu1 %v3232_v55  ;;  %2979 = vmatprep.subr.bf16.mxu0 %v2978_v56  ;;  %v819_v37 = vld [vmem:[#allocation2 + $0x2e8] sm:$0xff]  ;;  %v817_v38 = vld [vmem:[#allocation2 + $0x2d8] sm:$0xff]  ;;  %v2992_v41 = vpack.c.bf16 %v810_v32, %v806_v31  ;;  %v814_v42 = vld [vmem:[#allocation2 + $0x2c0] sm:$0xff]  ;;  %v3248_v43 = vpack.c.bf16 %v812_v35, %v808_v33 }
  0xf9   : > { %3235 = vmatprep.subr.bf16.mxu1 %v3234_v60  ;;  %v821_v39 = vld [vmem:[#allocation2 + $0x2f8] sm:$0xff]  ;;  %v2994_v44 = vpack.c.bf16 %v819_v37, %v815_v36  ;;  %v818_v45 = vld [vmem:[#allocation2 + $0x2e0] sm:$0xff]  ;;  %v816_v46 = vld [vmem:[#allocation2 + $0x2d0] sm:$0xff] }
  0xfa   : > { %v820_v47 = vld [vmem:[#allocation2 + $0x2f0] sm:$0xff]  ;;  %v3250_v48 = vpack.c.bf16 %v821_v39, %v817_v38  ;;  %v823_v49 = vld [vmem:[#allocation2 + $0x308] sm:$0xff]  ;;  %v4363_v51 = vld [vmem:[%s4359_s11] sm:$0xff]  ;;  %v2996_v55 = vpack.c.bf16 %v818_v45, %v814_v42 }
  0xfb   : > { %2981 = vmatpush1.bf16.msra.mxu0 %v2980_v2  ;;  %v827_v50 = vld [vmem:[#allocation2 + $0x328] sm:$0xff]  ;;  %v825_v52 = vld [vmem:[#allocation2 + $0x318] sm:$0xff]  ;;  %v1247_v54 = vrot.slane %v4363_v51, %v1246_v40  ;;  %v3252_v56 = vpack.c.bf16 %v820_v47, %v816_v46  ;;  %v822_v58 = vld [vmem:[#allocation2 + $0x300] sm:$0xff] }
  0xfc   : > { %3237 = vmatpush1.bf16.msra.mxu1 %v3236_v3  ;;  %2983 = vmatprep.subr.bf16.mxu0 %v2982_v4  ;;  %v829_v53 = vld [vmem:[#allocation2 + $0x338] sm:$0xff]  ;;  %v2998_v57 = vpack.c.bf16 %v827_v50, %v823_v49  ;;  %v826_v59 = vld [vmem:[#allocation2 + $0x320] sm:$0xff]  ;;  %v824_v60 = vld [vmem:[#allocation2 + $0x310] sm:$0xff] }
  0xfd   : > { %3239 = vmatprep.subr.bf16.mxu1 %v3238_v8  ;;  %v3254_v61 = vpack.c.bf16 %v829_v53, %v825_v52  ;;  %v828_v62 = vld [vmem:[#allocation2 + $0x330] sm:$0xff]  ;;  %v831_v63 = vld [vmem:[#allocation2 + $0x348] sm:$0xff]  ;;  %1365 = vmatprep.mubr.f32.mxu0 %v1247_v54  ;;  %v833_v1 = vld [vmem:[#allocation2 + $0x358] sm:$0xff]  ;;  %v3000_v3 = vpack.c.bf16 %v826_v59, %v822_v58  ;;  %v1254_v53 = vsub.s32 3, %v4353_v27 }
  0xfe   : > { %v835_v0 = vld [vmem:[#allocation2 + $0x368] sm:$0xff]  ;;  %v837_v2 = vld [vmem:[#allocation2 + $0x378] sm:$0xff]  ;;  %1649 = vmatprep.mubr.f32.mxu1 %v1247_v54  ;;  %v3256_v4 = vpack.c.bf16 %v828_v62, %v824_v60  ;;  %v830_v6 = vld [vmem:[#allocation2 + $0x340] sm:$0xff] }
  0xff   : > { %2985 = vmatpush1.bf16.msra.mxu0 %v2984_v15  ;;  %v3002_v5 = vpack.c.bf16 %v835_v0, %v831_v63  ;;  %v834_v7 = vld [vmem:[#allocation2 + $0x360] sm:$0xff]  ;;  %v832_v8 = vld [vmem:[#allocation2 + $0x350] sm:$0xff]  ;;  %v3258_v9 = vpack.c.bf16 %v837_v2, %v833_v1  ;;  %v839_v11 = vld [vmem:[#allocation2 + $0x388] sm:$0xff] }
 0x100   : > { %3241 = vmatpush1.bf16.msra.mxu1 %v3240_v16  ;;  %2987 = vmatprep.subr.bf16.mxu0 %v2986_v17  ;;  %v836_v10 = vld [vmem:[#allocation2 + $0x370] sm:$0xff]  ;;  %v843_v12 = vld [vmem:[#allocation2 + $0x3a8] sm:$0xff]  ;;  %v841_v13 = vld [vmem:[#allocation2 + $0x398] sm:$0xff]  ;;  %v3004_v15 = vpack.c.bf16 %v834_v7, %v830_v6 }
 0x101   : > { %3243 = vmatprep.subr.bf16.mxu1 %v3242_v21  ;;  %v845_v14 = vld [vmem:[#allocation2 + $0x3b8] sm:$0xff]  ;;  %v3260_v16 = vpack.c.bf16 %v836_v10, %v832_v8  ;;  %v3006_v17 = vpack.c.bf16 %v843_v12, %v839_v11  ;;  %v838_v18 = vld [vmem:[#allocation2 + $0x380] sm:$0xff]  ;;  %v840_v20 = vld [vmem:[#allocation2 + $0x390] sm:$0xff] }
 0x102   : > { %v842_v19 = vld [vmem:[#allocation2 + $0x3a0] sm:$0xff]  ;;  %v3262_v21 = vpack.c.bf16 %v845_v14, %v841_v13  ;;  %v844_v22 = vld [vmem:[#allocation2 + $0x3b0] sm:$0xff]  ;;  %v847_v23 = vld [vmem:[#allocation2 + $0x3c8] sm:$0xff] }
 0x103   : > { %2989 = vmatpush1.bf16.msra.mxu0 %v2988_v28  ;;  %v851_v24 = vld [vmem:[#allocation2 + $0x3e8] sm:$0xff]  ;;  %v849_v25 = vld [vmem:[#allocation2 + $0x3d8] sm:$0xff]  ;;  %v3008_v28 = vpack.c.bf16 %v842_v19, %v838_v18  ;;  %v846_v31 = vld [vmem:[#allocation2 + $0x3c0] sm:$0xff] }
 0x104   : > { %3245 = vmatpush1.bf16.msra.mxu1 %v3244_v29  ;;  %2991 = vmatprep.subr.bf16.mxu0 %v2990_v30  ;;  %v853_v26 = vld [vmem:[#allocation2 + $0x3f8] sm:$0xff]  ;;  %v3264_v29 = vpack.c.bf16 %v844_v22, %v840_v20  ;;  %v3010_v30 = vpack.c.bf16 %v851_v24, %v847_v23  ;;  %v850_v32 = vld [vmem:[#allocation2 + $0x3e0] sm:$0xff]  ;;  %v848_v33 = vld [vmem:[#allocation2 + $0x3d0] sm:$0xff] }
 0x105   : > { %3247 = vmatprep.subr.bf16.mxu1 %v3246_v34  ;;  %v3266_v34 = vpack.c.bf16 %v853_v26, %v849_v25  ;;  %v852_v35 = vld [vmem:[#allocation2 + $0x3f0] sm:$0xff]  ;;  %v855_v36 = vld [vmem:[#allocation2 + $0x408] sm:$0xff]  ;;  %v857_v38 = vld [vmem:[#allocation2 + $0x418] sm:$0xff]  ;;  %v3012_v42 = vpack.c.bf16 %v850_v32, %v846_v31 }
 0x106   : > { %v859_v37 = vld [vmem:[#allocation2 + $0x428] sm:$0xff]  ;;  %v861_v39 = vld [vmem:[#allocation2 + $0x438] sm:$0xff]  ;;  %v854_v45 = vld [vmem:[#allocation2 + $0x400] sm:$0xff] }
 0x107   : > { %2993 = vmatpush1.bf16.msra.mxu0 %v2992_v41  ;;  %v4369_v41 = vsub.s32 0, %v4353_v27  ;;  %v858_v46 = vld [vmem:[#allocation2 + $0x420] sm:$0xff]  ;;  %v856_v47 = vld [vmem:[#allocation2 + $0x410] sm:$0xff]  ;;  %v863_v50 = vld [vmem:[#allocation2 + $0x448] sm:$0xff] }
 0x108   : > { %3249 = vmatpush1.bf16.msra.mxu1 %v3248_v43  ;;  %2995 = vmatprep.subr.bf16.mxu0 %v2994_v44  ;;  %v3268_v43 = vpack.c.bf16 %v852_v35, %v848_v33  ;;  %v3014_v44 = vpack.c.bf16 %v859_v37, %v855_v36  ;;  %v860_v49 = vld [vmem:[#allocation2 + $0x430] sm:$0xff]  ;;  %v867_v52 = vld [vmem:[#allocation2 + $0x468] sm:$0xff]  ;;  %v862_v60 = vld [vmem:[#allocation2 + $0x440] sm:$0xff] }
 0x109   : > { %3251 = vmatprep.subr.bf16.mxu1 %v3250_v48  ;;  %v3270_v48 = vpack.c.bf16 %v861_v39, %v857_v38  ;;  %v1243_v54 = vrot.slane %v4363_v51, %v4369_v41  ;;  %v3272_v58 = vpack.c.bf16 %v860_v49, %v856_v47  ;;  %v3018_v59 = vpack.c.bf16 %v867_v52, %v863_v50  ;;  %v864_v62 = vld [vmem:[#allocation2 + $0x450] sm:$0xff]  ;;  %v871_v1 = vld [vmem:[#allocation2 + $0x488] sm:$0xff]  ;;  %v874_v10 = vld [vmem:[#allocation2 + $0x4a0] sm:$0xff] }
 0x10a   : > { %v868_v0 = vld [vmem:[#allocation2 + $0x470] sm:$0xff]  ;;  %v875_v2 = vld [vmem:[#allocation2 + $0x4a8] sm:$0xff]  ;;  %v882_v22 = vld [vmem:[#allocation2 + $0x4e0] sm:$0xff] }
 0x10b   : > { %2997 = vmatpush1.bf16.msra.mxu0 %v2996_v55  ;;  %v865_v55 = vld [vmem:[#allocation2 + $0x458] sm:$0xff]  ;;  %v3276_v7 = vpack.c.bf16 %v868_v0, %v864_v62  ;;  %v3022_v8 = vpack.c.bf16 %v875_v2, %v871_v1  ;;  %v872_v11 = vld [vmem:[#allocation2 + $0x490] sm:$0xff]  ;;  %v879_v14 = vld [vmem:[#allocation2 + $0x4c8] sm:$0xff] }
 0x10c   : > { %3253 = vmatpush1.bf16.msra.mxu1 %v3252_v56  ;;  %2999 = vmatprep.subr.bf16.mxu0 %v2998_v57  ;;  %v869_v56 = vld [vmem:[#allocation2 + $0x478] sm:$0xff]  ;;  %v3016_v57 = vpack.c.bf16 %v858_v46, %v854_v45  ;;  %v876_v13 = vld [vmem:[#allocation2 + $0x4b0] sm:$0xff]  ;;  %v887_v26 = vld [vmem:[#allocation2 + $0x508] sm:$0xff] }
 0x10d   : > { %3255 = vmatprep.subr.bf16.mxu1 %v3254_v61  ;;  %v866_v61 = vld [vmem:[#allocation2 + $0x460] sm:$0xff]  ;;  %v3274_v63 = vpack.c.bf16 %v869_v56, %v865_v55  ;;  %v3280_v19 = vpack.c.bf16 %v876_v13, %v872_v11  ;;  %v880_v23 = vld [vmem:[#allocation2 + $0x4d0] sm:$0xff]  ;;  %v895_v39 = vld [vmem:[#allocation2 + $0x548] sm:$0xff] }
 0x10e   : > { %v3020_v6 = vpack.c.bf16 %v866_v61, %v862_v60  ;;  %v884_v25 = vld [vmem:[#allocation2 + $0x4f0] sm:$0xff]  ;;  %v890_v35 = vld [vmem:[#allocation2 + $0x520] sm:$0xff]  ;;  %v903_v55 = vld [vmem:[#allocation2 + $0x588] sm:$0xff] }
 0x10f   : > { %3001 = vmatpush1.bf16.msra.mxu0 %v3000_v3  ;;  %v1255_v3 = vrot.slane %v4363_v51, %v1254_v53  ;;  %v3284_v32 = vpack.c.bf16 %v884_v25, %v880_v23  ;;  %v888_v36 = vld [vmem:[#allocation2 + $0x510] sm:$0xff]  ;;  %v898_v49 = vld [vmem:[#allocation2 + $0x560] sm:$0xff]  ;;  %v907_v56 = vld [vmem:[#allocation2 + $0x5a8] sm:$0xff] }
 0x110   : > { %3257 = vmatpush1.bf16.msra.mxu1 %v3256_v4  ;;  %3003 = vmatprep.subr.bf16.mxu0 %v3002_v5  ;;  %v873_v4 = vld [vmem:[#allocation2 + $0x498] sm:$0xff]  ;;  %v892_v38 = vld [vmem:[#allocation2 + $0x530] sm:$0xff]  ;;  %v3038_v61 = vpack.c.bf16 %v907_v56, %v903_v55  ;;  %v902_v62 = vld [vmem:[#allocation2 + $0x580] sm:$0xff] }
 0x111   : > { %3259 = vmatprep.subr.bf16.mxu1 %v3258_v9  ;;  %v877_v5 = vld [vmem:[#allocation2 + $0x4b8] sm:$0xff]  ;;  %v870_v9 = vld [vmem:[#allocation2 + $0x480] sm:$0xff]  ;;  %v3288_v46 = vpack.c.bf16 %v892_v38, %v888_v36  ;;  %v896_v50 = vld [vmem:[#allocation2 + $0x550] sm:$0xff] }
 0x112   : > { %v3278_v12 = vpack.c.bf16 %v877_v5, %v873_v4  ;;  %v3024_v18 = vpack.c.bf16 %v874_v10, %v870_v9  ;;  %v904_v0 = vld [vmem:[#allocation2 + $0x590] sm:$0xff]  ;;  %v915_v4 = vld [vmem:[#allocation2 + $0x5e8] sm:$0xff]  ;;  %v913_v5 = vld [vmem:[#allocation2 + $0x5d8] sm:$0xff] }
 0x113   : > { %3005 = vmatpush1.bf16.msra.mxu0 %v3004_v15  ;;  %v883_v15 = vld [vmem:[#allocation2 + $0x4e8] sm:$0xff]  ;;  %v908_v2 = vld [vmem:[#allocation2 + $0x5b0] sm:$0xff]  ;;  %v910_v10 = vld [vmem:[#allocation2 + $0x5c0] sm:$0xff] }
 0x114   : > { %3261 = vmatpush1.bf16.msra.mxu1 %v3260_v16  ;;  %3007 = vmatprep.subr.bf16.mxu0 %v3006_v17  ;;  %v881_v16 = vld [vmem:[#allocation2 + $0x4d8] sm:$0xff]  ;;  %v3026_v20 = vpack.c.bf16 %v883_v15, %v879_v14  ;;  %v914_v11 = vld [vmem:[#allocation2 + $0x5e0] sm:$0xff]  ;;  %v916_v14 = vld [vmem:[#allocation2 + $0x5f0] sm:$0xff] }
 0x115   : > { %3263 = vmatprep.subr.bf16.mxu1 %v3262_v21  ;;  %v885_v17 = vld [vmem:[#allocation2 + $0x4f8] sm:$0xff]  ;;  %v878_v21 = vld [vmem:[#allocation2 + $0x4c0] sm:$0xff]  ;;  %v919_v15 = vld [vmem:[#allocation2 + $0x608] sm:$0xff] }
 0x116   : > { %v3282_v24 = vpack.c.bf16 %v885_v17, %v881_v16  ;;  %v3028_v31 = vpack.c.bf16 %v882_v22, %v878_v21  ;;  %v923_v16 = vld [vmem:[#allocation2 + $0x628] sm:$0xff]  ;;  %v921_v17 = vld [vmem:[#allocation2 + $0x618] sm:$0xff]  ;;  %v918_v22 = vld [vmem:[#allocation2 + $0x600] sm:$0xff] }
 0x117   : > { %3009 = vmatpush1.bf16.msra.mxu0 %v3008_v28  ;;  %v891_v28 = vld [vmem:[#allocation2 + $0x528] sm:$0xff]  ;;  %v3046_v21 = vpack.c.bf16 %v923_v16, %v919_v15  ;;  %v922_v23 = vld [vmem:[#allocation2 + $0x620] sm:$0xff]  ;;  %v940_v55 = vld [vmem:[#allocation2 + $0x6b0] sm:$0xff] }
 0x118   : > { %3265 = vmatpush1.bf16.msra.mxu1 %v3264_v29  ;;  %3011 = vmatprep.subr.bf16.mxu0 %v3010_v30  ;;  %v889_v29 = vld [vmem:[#allocation2 + $0x518] sm:$0xff]  ;;  %v3030_v33 = vpack.c.bf16 %v891_v28, %v887_v26  ;;  %v924_v26 = vld [vmem:[#allocation2 + $0x630] sm:$0xff]  ;;  %v927_v28 = vld [vmem:[#allocation2 + $0x648] sm:$0xff] }
 0x119   : > { %3267 = vmatprep.subr.bf16.mxu1 %v3266_v34  ;;  %v893_v30 = vld [vmem:[#allocation2 + $0x538] sm:$0xff]  ;;  %v886_v34 = vld [vmem:[#allocation2 + $0x500] sm:$0xff]  ;;  %v943_v56 = vld [vmem:[#allocation2 + $0x6c8] sm:$0xff] }
 0x11a   : > { %v3286_v37 = vpack.c.bf16 %v893_v30, %v889_v29  ;;  %v3032_v45 = vpack.c.bf16 %v890_v35, %v886_v34  ;;  %v931_v29 = vld [vmem:[#allocation2 + $0x668] sm:$0xff]  ;;  %v929_v30 = vld [vmem:[#allocation2 + $0x658] sm:$0xff]  ;;  %v926_v35 = vld [vmem:[#allocation2 + $0x640] sm:$0xff] }
 0x11b   : > { %3013 = vmatpush1.bf16.msra.mxu0 %v3012_v42  ;;  %v899_v42 = vld [vmem:[#allocation2 + $0x568] sm:$0xff]  ;;  %v3050_v34 = vpack.c.bf16 %v931_v29, %v927_v28  ;;  %v930_v36 = vld [vmem:[#allocation2 + $0x660] sm:$0xff]  ;;  %v956_v15 = vld [vmem:[#allocation2 + $0x730] sm:$0xff] }
 0x11c   : > { %3269 = vmatpush1.bf16.msra.mxu1 %v3268_v43  ;;  %3015 = vmatprep.subr.bf16.mxu0 %v3014_v44  ;;  %v897_v43 = vld [vmem:[#allocation2 + $0x558] sm:$0xff]  ;;  %v3034_v47 = vpack.c.bf16 %v899_v42, %v895_v39  ;;  %v932_v39 = vld [vmem:[#allocation2 + $0x670] sm:$0xff]  ;;  %v935_v42 = vld [vmem:[#allocation2 + $0x688] sm:$0xff] }
 0x11d   : > { %3271 = vmatprep.subr.bf16.mxu1 %v3270_v48  ;;  %v901_v44 = vld [vmem:[#allocation2 + $0x578] sm:$0xff]  ;;  %v894_v48 = vld [vmem:[#allocation2 + $0x540] sm:$0xff]  ;;  %v959_v16 = vld [vmem:[#allocation2 + $0x748] sm:$0xff] }
 0x11e   : > { %1366 = vmatmul.mubr.f32.vlgmr.msra.gmra.mrb[0].mxu0 %v1243_v54  ;;  %v3290_v52 = vpack.c.bf16 %v901_v44, %v897_v43  ;;  %v939_v43 = vld [vmem:[#allocation2 + $0x6a8] sm:$0xff]  ;;  %v937_v44 = vld [vmem:[#allocation2 + $0x698] sm:$0xff]  ;;  %v964_v28 = vld [vmem:[#allocation2 + $0x770] sm:$0xff] }
 0x11f   : > { %3017 = vmatpush1.bf16.msra.mxu0 %v3016_v57  ;;  %1650 = vmatmul.mubr.f32.vlgmr.msra.gmra.mrb[0].mxu1 %v1243_v54  ;;  %v900_v54 = vld [vmem:[#allocation2 + $0x570] sm:$0xff]  ;;  %v905_v57 = vld [vmem:[#allocation2 + $0x598] sm:$0xff]  ;;  %v967_v29 = vld [vmem:[#allocation2 + $0x788] sm:$0xff] }
 0x120   : > { %3273 = vmatpush1.bf16.msra.mxu1 %v3272_v58  ;;  %3019 = vmatprep.subr.bf16.mxu0 %v3018_v59  ;;  %v909_v58 = vld [vmem:[#allocation2 + $0x5b8] sm:$0xff]  ;;  %v3036_v59 = vpack.c.bf16 %v898_v49, %v894_v48  ;;  %v3292_v60 = vpack.c.bf16 %v900_v54, %v896_v50  ;;  %v3054_v48 = vpack.c.bf16 %v939_v43, %v935_v42  ;;  %v934_v49 = vld [vmem:[#allocation2 + $0x680] sm:$0xff]  ;;  %v972_v42 = vld [vmem:[#allocation2 + $0x7b0] sm:$0xff] }
 0x121   : > { %3275 = vmatprep.subr.bf16.mxu1 %v3274_v63  ;;  %1436 = vmatprep.mubr.f32.mxu0 %v1255_v3  ;;  %v906_v63 = vld [vmem:[#allocation2 + $0x5a0] sm:$0xff]  ;;  %v3294_v1 = vpack.c.bf16 %v909_v58, %v905_v57  ;;  %v947_v57 = vld [vmem:[#allocation2 + $0x6e8] sm:$0xff]  ;;  %v945_v58 = vld [vmem:[#allocation2 + $0x6d8] sm:$0xff] }
 0x122   : > { %1720 = vmatprep.mubr.f32.mxu1 %v1255_v3  ;;  %v911_v3 = vld [vmem:[#allocation2 + $0x5c8] sm:$0xff]  ;;  %v938_v50 = vld [vmem:[#allocation2 + $0x6a0] sm:$0xff] }
 0x123   : > { %3021 = vmatpush1.bf16.msra.mxu0 %v3020_v6  ;;  %v917_v6 = vld [vmem:[#allocation2 + $0x5f8] sm:$0xff]  ;;  %v3042_v9 = vpack.c.bf16 %v915_v4, %v911_v3  ;;  %v948_v3 = vld [vmem:[#allocation2 + $0x6f0] sm:$0xff]  ;;  %v951_v4 = vld [vmem:[#allocation2 + $0x708] sm:$0xff] }
 0x124   : > { %3277 = vmatpush1.bf16.msra.mxu1 %v3276_v7  ;;  %3023 = vmatprep.subr.bf16.mxu0 %v3022_v8  ;;  %v3040_v7 = vpack.c.bf16 %v906_v63, %v902_v62  ;;  %v3296_v8 = vpack.c.bf16 %v908_v2, %v904_v0  ;;  %v3298_v13 = vpack.c.bf16 %v917_v6, %v913_v5  ;;  %v942_v63 = vld [vmem:[#allocation2 + $0x6c0] sm:$0xff]  ;;  %v955_v5 = vld [vmem:[#allocation2 + $0x728] sm:$0xff]  ;;  %v953_v6 = vld [vmem:[#allocation2 + $0x718] sm:$0xff] }
 0x125   : > { %3279 = vmatprep.subr.bf16.mxu1 %v3278_v12  ;;  %v912_v12 = vld [vmem:[#allocation2 + $0x5d0] sm:$0xff]  ;;  %v3058_v62 = vpack.c.bf16 %v947_v57, %v943_v56  ;;  %v946_v0 = vld [vmem:[#allocation2 + $0x6e0] sm:$0xff]  ;;  %v975_v43 = vld [vmem:[#allocation2 + $0x7c8] sm:$0xff] }
 0x126   : > { %v980_v56 = vld [vmem:[#allocation2 + $0x7f0] sm:$0xff]  ;;  %v983_v57 = vld [vmem:[#allocation2 + $0x808] sm:$0xff] }
 0x127   : > { %3025 = vmatpush1.bf16.msra.mxu0 %v3024_v18  ;;  %v925_v18 = vld [vmem:[#allocation2 + $0x638] sm:$0xff] }
 0x128   : > { %3281 = vmatpush1.bf16.msra.mxu1 %v3280_v19  ;;  %3027 = vmatprep.subr.bf16.mxu0 %v3026_v20  ;;  %v3044_v19 = vpack.c.bf16 %v914_v11, %v910_v10  ;;  %v3300_v20 = vpack.c.bf16 %v916_v14, %v912_v12  ;;  %v3302_v25 = vpack.c.bf16 %v925_v18, %v921_v17  ;;  %v950_v11 = vld [vmem:[#allocation2 + $0x700] sm:$0xff]  ;;  %v963_v17 = vld [vmem:[#allocation2 + $0x768] sm:$0xff]  ;;  %v961_v18 = vld [vmem:[#allocation2 + $0x758] sm:$0xff] }
 0x129   : > { %3283 = vmatprep.subr.bf16.mxu1 %v3282_v24  ;;  %v920_v24 = vld [vmem:[#allocation2 + $0x610] sm:$0xff]  ;;  %v3062_v10 = vpack.c.bf16 %v955_v5, %v951_v4  ;;  %v954_v12 = vld [vmem:[#allocation2 + $0x720] sm:$0xff] }
 0x12a   : > { %v988_v5 = vld [vmem:[#allocation2 + $0x830] sm:$0xff] }
 0x12b   : > { %3029 = vmatpush1.bf16.msra.mxu0 %v3028_v31  ;;  %v933_v31 = vld [vmem:[#allocation2 + $0x678] sm:$0xff] }
 0x12c   : > { %3285 = vmatpush1.bf16.msra.mxu1 %v3284_v32  ;;  %3031 = vmatprep.subr.bf16.mxu0 %v3030_v33  ;;  %v3048_v32 = vpack.c.bf16 %v922_v23, %v918_v22  ;;  %v3304_v33 = vpack.c.bf16 %v924_v26, %v920_v24  ;;  %v3306_v38 = vpack.c.bf16 %v933_v31, %v929_v30  ;;  %v958_v23 = vld [vmem:[#allocation2 + $0x740] sm:$0xff]  ;;  %v971_v30 = vld [vmem:[#allocation2 + $0x7a8] sm:$0xff]  ;;  %v969_v31 = vld [vmem:[#allocation2 + $0x798] sm:$0xff] }
 0x12d   : > { %3287 = vmatprep.subr.bf16.mxu1 %v3286_v37  ;;  %v928_v37 = vld [vmem:[#allocation2 + $0x650] sm:$0xff]  ;;  %v3066_v22 = vpack.c.bf16 %v963_v17, %v959_v16  ;;  %v962_v24 = vld [vmem:[#allocation2 + $0x760] sm:$0xff] }
 0x12e   : > { %v994_v16 = vld [vmem:[#allocation2 + $0x860] sm:$0xff]  ;;  %v992_v17 = vld [vmem:[#allocation2 + $0x850] sm:$0xff] }
 0x12f   : > { %3033 = vmatpush1.bf16.msra.mxu0 %v3032_v45  ;;  %v941_v45 = vld [vmem:[#allocation2 + $0x6b8] sm:$0xff] }
 0x130   : > { %3289 = vmatpush1.bf16.msra.mxu1 %v3288_v46  ;;  %3035 = vmatprep.subr.bf16.mxu0 %v3034_v47  ;;  %v3052_v46 = vpack.c.bf16 %v930_v36, %v926_v35  ;;  %v3308_v47 = vpack.c.bf16 %v932_v39, %v928_v37  ;;  %v3310_v54 = vpack.c.bf16 %v941_v45, %v937_v44  ;;  %v966_v36 = vld [vmem:[#allocation2 + $0x780] sm:$0xff]  ;;  %v979_v44 = vld [vmem:[#allocation2 + $0x7e8] sm:$0xff]  ;;  %v977_v45 = vld [vmem:[#allocation2 + $0x7d8] sm:$0xff] }
 0x131   : > { %3291 = vmatprep.subr.bf16.mxu1 %v3290_v52  ;;  %v936_v52 = vld [vmem:[#allocation2 + $0x690] sm:$0xff]  ;;  %v3070_v35 = vpack.c.bf16 %v971_v30, %v967_v29  ;;  %v970_v37 = vld [vmem:[#allocation2 + $0x7a0] sm:$0xff] }
 0x132   : > { %v998_v29 = vld [vmem:[#allocation2 + $0x880] sm:$0xff] }
 0x133   : > { %3037 = vmatpush1.bf16.msra.mxu0 %v3036_v59  ;;  %v949_v59 = vld [vmem:[#allocation2 + $0x6f8] sm:$0xff]  ;;  %v1002_v30 = vld [vmem:[#allocation2 + $0x8a0] sm:$0xff] }
 0x134   : > { %3293 = vmatpush1.bf16.msra.mxu1 %v3292_v60  ;;  %3039 = vmatprep.subr.bf16.mxu0 %v3038_v61  ;;  %v3056_v60 = vpack.c.bf16 %v938_v50, %v934_v49  ;;  %v3312_v61 = vpack.c.bf16 %v940_v55, %v936_v52  ;;  %v3314_v2 = vpack.c.bf16 %v949_v59, %v945_v58  ;;  %v974_v50 = vld [vmem:[#allocation2 + $0x7c0] sm:$0xff]  ;;  %v987_v58 = vld [vmem:[#allocation2 + $0x828] sm:$0xff]  ;;  %v985_v59 = vld [vmem:[#allocation2 + $0x818] sm:$0xff] }
 0x135   : > { %3295 = vmatprep.subr.bf16.mxu1 %v3294_v1  ;;  %v944_v1 = vld [vmem:[#allocation2 + $0x6d0] sm:$0xff]  ;;  %v3074_v49 = vpack.c.bf16 %v979_v44, %v975_v43  ;;  %v978_v52 = vld [vmem:[#allocation2 + $0x7e0] sm:$0xff] }
 0x136   : > { %v1010_v43 = vld [vmem:[#allocation2 + $0x8e0] sm:$0xff]  ;;  %v1008_v44 = vld [vmem:[#allocation2 + $0x8d0] sm:$0xff] }
 0x137   : > { %3041 = vmatpush1.bf16.msra.mxu0 %v3040_v7  ;;  %v957_v7 = vld [vmem:[#allocation2 + $0x738] sm:$0xff] }
 0x138   : > { %3297 = vmatpush1.bf16.msra.mxu1 %v3296_v8  ;;  %3043 = vmatprep.subr.bf16.mxu0 %v3042_v9  ;;  %v3060_v8 = vpack.c.bf16 %v946_v0, %v942_v63  ;;  %v3316_v9 = vpack.c.bf16 %v948_v3, %v944_v1  ;;  %v3318_v14 = vpack.c.bf16 %v957_v7, %v953_v6  ;;  %v982_v1 = vld [vmem:[#allocation2 + $0x800] sm:$0xff]  ;;  %v984_v3 = vld [vmem:[#allocation2 + $0x810] sm:$0xff]  ;;  %v991_v6 = vld [vmem:[#allocation2 + $0x848] sm:$0xff] }
 0x139   : > { %3299 = vmatprep.subr.bf16.mxu1 %v3298_v13  ;;  %v952_v13 = vld [vmem:[#allocation2 + $0x710] sm:$0xff]  ;;  %v3078_v0 = vpack.c.bf16 %v987_v58, %v983_v57  ;;  %v995_v7 = vld [vmem:[#allocation2 + $0x868] sm:$0xff]  ;;  %v1018_v57 = vld [vmem:[#allocation2 + $0x920] sm:$0xff] }
 0x13a   : > { %v1016_v58 = vld [vmem:[#allocation2 + $0x910] sm:$0xff] }
 0x13b   : > { %3045 = vmatpush1.bf16.msra.mxu0 %v3044_v19  ;;  %v965_v19 = vld [vmem:[#allocation2 + $0x778] sm:$0xff] }
 0x13c   : > { %3301 = vmatpush1.bf16.msra.mxu1 %v3300_v20  ;;  %3047 = vmatprep.subr.bf16.mxu0 %v3046_v21  ;;  %v3064_v20 = vpack.c.bf16 %v954_v12, %v950_v11  ;;  %v3320_v21 = vpack.c.bf16 %v956_v15, %v952_v13  ;;  %v3322_v26 = vpack.c.bf16 %v965_v19, %v961_v18  ;;  %v997_v11 = vld [vmem:[#allocation2 + $0x878] sm:$0xff]  ;;  %v990_v15 = vld [vmem:[#allocation2 + $0x840] sm:$0xff]  ;;  %v996_v19 = vld [vmem:[#allocation2 + $0x870] sm:$0xff] }
 0x13d   : > { %3303 = vmatprep.subr.bf16.mxu1 %v3302_v25  ;;  %v960_v25 = vld [vmem:[#allocation2 + $0x750] sm:$0xff]  ;;  %v3336_v13 = vpack.c.bf16 %v988_v5, %v984_v3  ;;  %v1022_v5 = vld [vmem:[#allocation2 + $0x940] sm:$0xff] }
 0x13f   : > { %3049 = vmatpush1.bf16.msra.mxu0 %v3048_v32  ;;  %v973_v32 = vld [vmem:[#allocation2 + $0x7b8] sm:$0xff] }
 0x140   : > { %3305 = vmatpush1.bf16.msra.mxu1 %v3304_v33  ;;  %3051 = vmatprep.subr.bf16.mxu0 %v3050_v34  ;;  %v3068_v33 = vpack.c.bf16 %v962_v24, %v958_v23  ;;  %v3324_v34 = vpack.c.bf16 %v964_v28, %v960_v25  ;;  %v3326_v39 = vpack.c.bf16 %v973_v32, %v969_v31  ;;  %v1001_v23 = vld [vmem:[#allocation2 + $0x898] sm:$0xff]  ;;  %v1000_v31 = vld [vmem:[#allocation2 + $0x890] sm:$0xff] }
 0x141   : > { %3307 = vmatprep.subr.bf16.mxu1 %v3306_v38  ;;  %v968_v38 = vld [vmem:[#allocation2 + $0x790] sm:$0xff]  ;;  %v1005_v24 = vld [vmem:[#allocation2 + $0x8b8] sm:$0xff]  ;;  %v3084_v25 = vpack.c.bf16 %v994_v16, %v990_v15 }
 0x142   : > { %v3342_v32 = vpack.c.bf16 %v1005_v24, %v1001_v23  ;;  %v1043_v23 = vld [vmem:[#allocation2 + $0x9e8] sm:$0xff]  ;;  %v1041_v24 = vld [vmem:[#allocation2 + $0x9d8] sm:$0xff] }
 0x143   : > { %3053 = vmatpush1.bf16.msra.mxu0 %v3052_v46  ;;  %v981_v46 = vld [vmem:[#allocation2 + $0x7f8] sm:$0xff] }
 0x144   : > { %3309 = vmatpush1.bf16.msra.mxu1 %v3308_v47  ;;  %3055 = vmatprep.subr.bf16.mxu0 %v3054_v48  ;;  %v3072_v47 = vpack.c.bf16 %v970_v37, %v966_v36  ;;  %v3328_v48 = vpack.c.bf16 %v972_v42, %v968_v38  ;;  %v3330_v55 = vpack.c.bf16 %v981_v46, %v977_v45  ;;  %v1013_v36 = vld [vmem:[#allocation2 + $0x8f8] sm:$0xff]  ;;  %v1006_v42 = vld [vmem:[#allocation2 + $0x8c0] sm:$0xff]  ;;  %v1012_v46 = vld [vmem:[#allocation2 + $0x8f0] sm:$0xff] }
 0x145   : > { %3311 = vmatprep.subr.bf16.mxu1 %v3310_v54  ;;  %v976_v54 = vld [vmem:[#allocation2 + $0x7d0] sm:$0xff]  ;;  %v3088_v37 = vpack.c.bf16 %v1002_v30, %v998_v29  ;;  %v1038_v30 = vld [vmem:[#allocation2 + $0x9c0] sm:$0xff] }
 0x146   : > { %v3332_v63 = vpack.c.bf16 %v980_v56, %v976_v54  ;;  %v3348_v54 = vpack.c.bf16 %v1012_v46, %v1008_v44  ;;  %v1014_v56 = vld [vmem:[#allocation2 + $0x900] sm:$0xff] }
 0x147   : > { %3057 = vmatpush1.bf16.msra.mxu0 %v3056_v60  ;;  %v989_v60 = vld [vmem:[#allocation2 + $0x838] sm:$0xff]  ;;  %v1050_v44 = vld [vmem:[#allocation2 + $0xa20] sm:$0xff] }
 0x148   : > { %3313 = vmatpush1.bf16.msra.mxu1 %v3312_v61  ;;  %3059 = vmatprep.subr.bf16.mxu0 %v3058_v62  ;;  %v1250_v61 = vsub.s32 2, %v4353_v27  ;;  %v3076_v62 = vpack.c.bf16 %v978_v52, %v974_v50  ;;  %v3334_v4 = vpack.c.bf16 %v989_v60, %v985_v59  ;;  %v1021_v50 = vld [vmem:[#allocation2 + $0x938] sm:$0xff]  ;;  %v3092_v52 = vpack.c.bf16 %v1010_v43, %v1006_v42  ;;  %v1020_v60 = vld [vmem:[#allocation2 + $0x930] sm:$0xff]  ;;  %v1046_v43 = vld [vmem:[#allocation2 + $0xa00] sm:$0xff] }
 0x149   : > { %3315 = vmatprep.subr.bf16.mxu1 %v3314_v2  ;;  %v986_v2 = vld [vmem:[#allocation2 + $0x820] sm:$0xff]  ;;  %v3352_v3 = vpack.c.bf16 %v1020_v60, %v1016_v58 }
 0x14a   : > { %v3080_v12 = vpack.c.bf16 %v986_v2, %v982_v1  ;;  %v1029_v1 = vld [vmem:[#allocation2 + $0x978] sm:$0xff]  ;;  %v3096_v2 = vpack.c.bf16 %v1018_v57, %v1014_v56  ;;  %v1054_v57 = vld [vmem:[#allocation2 + $0xa40] sm:$0xff] }
 0x14b   : > { %3061 = vmatpush1.bf16.msra.mxu0 %v3060_v8  ;;  %v1262_v8 = vsub.s32 5, %v4353_v27  ;;  %v1058_v58 = vld [vmem:[#allocation2 + $0xa60] sm:$0xff] }
 0x14c   : > { %3317 = vmatpush1.bf16.msra.mxu1 %v3316_v9  ;;  %3063 = vmatprep.subr.bf16.mxu0 %v3062_v10  ;;  %v1251_v9 = vrot.slane %v4363_v51, %v1250_v61  ;;  %v993_v10 = vld [vmem:[#allocation2 + $0x858] sm:$0xff] }
 0x14d   : > { %3319 = vmatprep.subr.bf16.mxu1 %v3318_v14  ;;  %v3082_v14 = vpack.c.bf16 %v995_v7, %v991_v6  ;;  %v3338_v18 = vpack.c.bf16 %v997_v11, %v993_v10  ;;  %v1026_v6 = vld [vmem:[#allocation2 + $0x960] sm:$0xff]  ;;  %v1024_v7 = vld [vmem:[#allocation2 + $0x950] sm:$0xff]  ;;  %v1031_v10 = vld [vmem:[#allocation2 + $0x988] sm:$0xff] }
 0x14e   : > { %v1035_v11 = vld [vmem:[#allocation2 + $0x9a8] sm:$0xff] }
 0x14f   : > { %3065 = vmatpush1.bf16.msra.mxu0 %v3064_v20  ;;  %v999_v20 = vld [vmem:[#allocation2 + $0x888] sm:$0xff]  ;;  %v3102_v16 = vpack.c.bf16 %v1035_v11, %v1031_v10  ;;  %v1068_v10 = vld [vmem:[#allocation2 + $0xab0] sm:$0xff] }
 0x150   : > { %3321 = vmatpush1.bf16.msra.mxu1 %v3320_v21  ;;  %3067 = vmatprep.subr.bf16.mxu0 %v3066_v22  ;;  %v1003_v21 = vld [vmem:[#allocation2 + $0x8a8] sm:$0xff]  ;;  %v1263_v22 = vrot.slane %v4363_v51, %v1262_v8  ;;  %v1009_v51 = vld [vmem:[#allocation2 + $0x8d8] sm:$0xff] }
 0x151   : > { %3323 = vmatprep.subr.bf16.mxu1 %v3322_v26  ;;  %v3340_v26 = vpack.c.bf16 %v996_v19, %v992_v17  ;;  %v3086_v28 = vpack.c.bf16 %v1003_v21, %v999_v20  ;;  %v3346_v45 = vpack.c.bf16 %v1013_v36, %v1009_v51  ;;  %v1030_v17 = vld [vmem:[#allocation2 + $0x980] sm:$0xff]  ;;  %v1032_v19 = vld [vmem:[#allocation2 + $0x990] sm:$0xff]  ;;  %v1051_v51 = vld [vmem:[#allocation2 + $0xa28] sm:$0xff] }
 0x152   : > { %v1036_v21 = vld [vmem:[#allocation2 + $0x9b0] sm:$0xff]  ;;  %v1049_v36 = vld [vmem:[#allocation2 + $0xa18] sm:$0xff]  ;;  %v1071_v11 = vld [vmem:[#allocation2 + $0xac8] sm:$0xff] }
 0x153   : > { %3069 = vmatpush1.bf16.msra.mxu0 %v3068_v33  ;;  %v1004_v33 = vld [vmem:[#allocation2 + $0x8b0] sm:$0xff] }
 0x154   : > { %3325 = vmatpush1.bf16.msra.mxu1 %v3324_v34  ;;  %3071 = vmatprep.subr.bf16.mxu0 %v3070_v35  ;;  %v1007_v34 = vld [vmem:[#allocation2 + $0x8c8] sm:$0xff]  ;;  %v3344_v38 = vpack.c.bf16 %v1004_v33, %v1000_v31  ;;  %v1042_v31 = vld [vmem:[#allocation2 + $0x9e0] sm:$0xff] }
 0x155   : > { %3327 = vmatprep.subr.bf16.mxu1 %v3326_v39  ;;  %v1011_v35 = vld [vmem:[#allocation2 + $0x8e8] sm:$0xff] }
 0x156   : > { %v3090_v39 = vpack.c.bf16 %v1011_v35, %v1007_v34  ;;  %v1044_v34 = vld [vmem:[#allocation2 + $0x9f0] sm:$0xff]  ;;  %v1047_v35 = vld [vmem:[#allocation2 + $0xa08] sm:$0xff] }
 0x157   : > { %3073 = vmatpush1.bf16.msra.mxu0 %v3072_v47  ;;  %v1015_v47 = vld [vmem:[#allocation2 + $0x908] sm:$0xff]  ;;  %v3110_v42 = vpack.c.bf16 %v1051_v51, %v1047_v35  ;;  %v1084_v35 = vld [vmem:[#allocation2 + $0xb30] sm:$0xff] }
 0x158   : > { %3329 = vmatpush1.bf16.msra.mxu1 %v3328_v48  ;;  %3075 = vmatprep.subr.bf16.mxu0 %v3074_v49  ;;  %v1019_v48 = vld [vmem:[#allocation2 + $0x928] sm:$0xff]  ;;  %v1017_v49 = vld [vmem:[#allocation2 + $0x918] sm:$0xff] }
 0x159   : > { %3331 = vmatprep.subr.bf16.mxu1 %v3330_v55  ;;  %v3094_v55 = vpack.c.bf16 %v1019_v48, %v1015_v47  ;;  %v3350_v59 = vpack.c.bf16 %v1021_v50, %v1017_v49  ;;  %v1052_v47 = vld [vmem:[#allocation2 + $0xa30] sm:$0xff]  ;;  %v1055_v48 = vld [vmem:[#allocation2 + $0xa48] sm:$0xff]  ;;  %v1057_v50 = vld [vmem:[#allocation2 + $0xa58] sm:$0xff] }
 0x15a   : > { %v1059_v49 = vld [vmem:[#allocation2 + $0xa68] sm:$0xff] }
 0x15b   : > { %3077 = vmatpush1.bf16.msra.mxu0 %v3076_v62  ;;  %v1023_v62 = vld [vmem:[#allocation2 + $0x948] sm:$0xff]  ;;  %v3114_v56 = vpack.c.bf16 %v1059_v49, %v1055_v48  ;;  %v1092_v48 = vld [vmem:[#allocation2 + $0xb70] sm:$0xff] }
 0x15c   : > { %3333 = vmatpush1.bf16.msra.mxu1 %v3332_v63  ;;  %3079 = vmatprep.subr.bf16.mxu0 %v3078_v0  ;;  %v1027_v63 = vld [vmem:[#allocation2 + $0x968] sm:$0xff]  ;;  %v1025_v0 = vld [vmem:[#allocation2 + $0x958] sm:$0xff] }
 0x15d   : > { %3335 = vmatprep.subr.bf16.mxu1 %v3334_v4  ;;  %v3098_v4 = vpack.c.bf16 %v1027_v63, %v1023_v62  ;;  %v3354_v8 = vpack.c.bf16 %v1029_v1, %v1025_v0  ;;  %v1060_v62 = vld [vmem:[#allocation2 + $0xa70] sm:$0xff]  ;;  %v1063_v63 = vld [vmem:[#allocation2 + $0xa88] sm:$0xff]  ;;  %v1065_v1 = vld [vmem:[#allocation2 + $0xa98] sm:$0xff] }
 0x15e   : > { %1437 = vmatmul.mubr.f32.vlgmr.msra.gmra.mrb[0].mxu0 %v1251_v9  ;;  %v1067_v0 = vld [vmem:[#allocation2 + $0xaa8] sm:$0xff] }
 0x15f   : > { %3081 = vmatpush1.bf16.msra.mxu0 %v3080_v12  ;;  %1721 = vmatmul.mubr.f32.vlgmr.msra.gmra.mrb[0].mxu1 %v1251_v9  ;;  %v1028_v9 = vld [vmem:[#allocation2 + $0x970] sm:$0xff]  ;;  %v1033_v12 = vld [vmem:[#allocation2 + $0x998] sm:$0xff]  ;;  %v1087_v51 = vld [vmem:[#allocation2 + $0xb48] sm:$0xff] }
 0x160   : > { %3337 = vmatpush1.bf16.msra.mxu1 %v3336_v13  ;;  %3083 = vmatprep.subr.bf16.mxu0 %v3082_v14  ;;  %v1037_v13 = vld [vmem:[#allocation2 + $0x9b8] sm:$0xff]  ;;  %v3100_v14 = vpack.c.bf16 %v1026_v6, %v1022_v5  ;;  %v3356_v15 = vpack.c.bf16 %v1028_v9, %v1024_v7  ;;  %v3118_v5 = vpack.c.bf16 %v1067_v0, %v1063_v63  ;;  %v1062_v6 = vld [vmem:[#allocation2 + $0xa80] sm:$0xff]  ;;  %v1095_v49 = vld [vmem:[#allocation2 + $0xb88] sm:$0xff] }
 0x161   : > { %3339 = vmatprep.subr.bf16.mxu1 %v3338_v18  ;;  %1507 = vmatprep.mubr.f32.mxu0 %v1263_v22  ;;  %v1034_v18 = vld [vmem:[#allocation2 + $0x9a0] sm:$0xff]  ;;  %v3358_v20 = vpack.c.bf16 %v1037_v13, %v1033_v12  ;;  %v1075_v12 = vld [vmem:[#allocation2 + $0xae8] sm:$0xff]  ;;  %v1073_v13 = vld [vmem:[#allocation2 + $0xad8] sm:$0xff] }
 0x162   : > { %1791 = vmatprep.mubr.f32.mxu1 %v1263_v22  ;;  %v1039_v22 = vld [vmem:[#allocation2 + $0x9c8] sm:$0xff]  ;;  %v1066_v7 = vld [vmem:[#allocation2 + $0xaa0] sm:$0xff]  ;;  %v1100_v63 = vld [vmem:[#allocation2 + $0xbb0] sm:$0xff] }
 0x163   : > { %3085 = vmatpush1.bf16.msra.mxu0 %v3084_v25  ;;  %v1045_v25 = vld [vmem:[#allocation2 + $0x9f8] sm:$0xff]  ;;  %v3106_v29 = vpack.c.bf16 %v1043_v23, %v1039_v22  ;;  %v1076_v22 = vld [vmem:[#allocation2 + $0xaf0] sm:$0xff]  ;;  %v1079_v23 = vld [vmem:[#allocation2 + $0xb08] sm:$0xff] }
 0x164   : > { %3341 = vmatpush1.bf16.msra.mxu1 %v3340_v26  ;;  %3087 = vmatprep.subr.bf16.mxu0 %v3086_v28  ;;  %v3104_v26 = vpack.c.bf16 %v1034_v18, %v1030_v17  ;;  %v3360_v28 = vpack.c.bf16 %v1036_v21, %v1032_v19  ;;  %v3362_v33 = vpack.c.bf16 %v1045_v25, %v1041_v24  ;;  %v1070_v18 = vld [vmem:[#allocation2 + $0xac0] sm:$0xff]  ;;  %v1083_v24 = vld [vmem:[#allocation2 + $0xb28] sm:$0xff]  ;;  %v1081_v25 = vld [vmem:[#allocation2 + $0xb18] sm:$0xff] }
 0x165   : > { %3343 = vmatprep.subr.bf16.mxu1 %v3342_v32  ;;  %v1040_v32 = vld [vmem:[#allocation2 + $0x9d0] sm:$0xff]  ;;  %v3122_v17 = vpack.c.bf16 %v1075_v12, %v1071_v11  ;;  %v1074_v19 = vld [vmem:[#allocation2 + $0xae0] sm:$0xff]  ;;  %v1103_v0 = vld [vmem:[#allocation2 + $0xbc8] sm:$0xff] }
 0x166   : > { %v1108_v11 = vld [vmem:[#allocation2 + $0xbf0] sm:$0xff]  ;;  %v1111_v12 = vld [vmem:[#allocation2 + $0xc08] sm:$0xff] }
 0x167   : > { %3089 = vmatpush1.bf16.msra.mxu0 %v3088_v37  ;;  %v1053_v37 = vld [vmem:[#allocation2 + $0xa38] sm:$0xff] }
 0x168   : > { %3345 = vmatpush1.bf16.msra.mxu1 %v3344_v38  ;;  %3091 = vmatprep.subr.bf16.mxu0 %v3090_v39  ;;  %v3108_v38 = vpack.c.bf16 %v1042_v31, %v1038_v30  ;;  %v3364_v39 = vpack.c.bf16 %v1044_v34, %v1040_v32  ;;  %v3366_v46 = vpack.c.bf16 %v1053_v37, %v1049_v36  ;;  %v1078_v31 = vld [vmem:[#allocation2 + $0xb00] sm:$0xff]  ;;  %v1091_v36 = vld [vmem:[#allocation2 + $0xb68] sm:$0xff]  ;;  %v1089_v37 = vld [vmem:[#allocation2 + $0xb58] sm:$0xff] }
 0x169   : > { %3347 = vmatprep.subr.bf16.mxu1 %v3346_v45  ;;  %v1048_v45 = vld [vmem:[#allocation2 + $0xa10] sm:$0xff]  ;;  %v3126_v30 = vpack.c.bf16 %v1083_v24, %v1079_v23  ;;  %v1082_v32 = vld [vmem:[#allocation2 + $0xb20] sm:$0xff] }
 0x16a   : > { %v1116_v24 = vld [vmem:[#allocation2 + $0xc30] sm:$0xff] }
 0x16b   : > { %3093 = vmatpush1.bf16.msra.mxu0 %v3092_v52  ;;  %v1061_v52 = vld [vmem:[#allocation2 + $0xa78] sm:$0xff] }
 0x16c   : > { %3349 = vmatpush1.bf16.msra.mxu1 %v3348_v54  ;;  %3095 = vmatprep.subr.bf16.mxu0 %v3094_v55  ;;  %v3112_v54 = vpack.c.bf16 %v1050_v44, %v1046_v43  ;;  %v3368_v55 = vpack.c.bf16 %v1052_v47, %v1048_v45  ;;  %v3370_v60 = vpack.c.bf16 %v1061_v52, %v1057_v50  ;;  %v1086_v44 = vld [vmem:[#allocation2 + $0xb40] sm:$0xff]  ;;  %v1099_v50 = vld [vmem:[#allocation2 + $0xba8] sm:$0xff]  ;;  %v1097_v52 = vld [vmem:[#allocation2 + $0xb98] sm:$0xff] }
 0x16d   : > { %3351 = vmatprep.subr.bf16.mxu1 %v3350_v59  ;;  %v1056_v59 = vld [vmem:[#allocation2 + $0xa50] sm:$0xff]  ;;  %v3130_v43 = vpack.c.bf16 %v1091_v36, %v1087_v51  ;;  %v1090_v45 = vld [vmem:[#allocation2 + $0xb60] sm:$0xff] }
 0x16e   : > { %v1118_v51 = vld [vmem:[#allocation2 + $0xc40] sm:$0xff] }
 0x16f   : > { %3097 = vmatpush1.bf16.msra.mxu0 %v3096_v2  ;;  %v1069_v2 = vld [vmem:[#allocation2 + $0xab8] sm:$0xff]  ;;  %v1122_v36 = vld [vmem:[#allocation2 + $0xc60] sm:$0xff] }
 0x170   : > { %3353 = vmatpush1.bf16.msra.mxu1 %v3352_v3  ;;  %3099 = vmatprep.subr.bf16.mxu0 %v3098_v4  ;;  %v3116_v3 = vpack.c.bf16 %v1058_v58, %v1054_v57  ;;  %v3372_v4 = vpack.c.bf16 %v1060_v62, %v1056_v59  ;;  %v3374_v9 = vpack.c.bf16 %v1069_v2, %v1065_v1  ;;  %v1094_v58 = vld [vmem:[#allocation2 + $0xb80] sm:$0xff]  ;;  %v1107_v1 = vld [vmem:[#allocation2 + $0xbe8] sm:$0xff]  ;;  %v1105_v2 = vld [vmem:[#allocation2 + $0xbd8] sm:$0xff] }
 0x171   : > { %3355 = vmatprep.subr.bf16.mxu1 %v3354_v8  ;;  %v1064_v8 = vld [vmem:[#allocation2 + $0xa90] sm:$0xff]  ;;  %v3134_v57 = vpack.c.bf16 %v1099_v50, %v1095_v49  ;;  %v1098_v59 = vld [vmem:[#allocation2 + $0xba0] sm:$0xff] }
 0x172   : > { %v1126_v50 = vld [vmem:[#allocation2 + $0xc80] sm:$0xff] }
 0x173   : > { %3101 = vmatpush1.bf16.msra.mxu0 %v3100_v14  ;;  %v1077_v14 = vld [vmem:[#allocation2 + $0xaf8] sm:$0xff] }
 0x174   : > { %3357 = vmatpush1.bf16.msra.mxu1 %v3356_v15  ;;  %3103 = vmatprep.subr.bf16.mxu0 %v3102_v16  ;;  %v3120_v15 = vpack.c.bf16 %v1066_v7, %v1062_v6  ;;  %v3376_v16 = vpack.c.bf16 %v1068_v10, %v1064_v8  ;;  %v3378_v21 = vpack.c.bf16 %v1077_v14, %v1073_v13  ;;  %v1102_v7 = vld [vmem:[#allocation2 + $0xbc0] sm:$0xff]  ;;  %v1115_v13 = vld [vmem:[#allocation2 + $0xc28] sm:$0xff]  ;;  %v1113_v14 = vld [vmem:[#allocation2 + $0xc18] sm:$0xff] }
 0x175   : > { %3359 = vmatprep.subr.bf16.mxu1 %v3358_v20  ;;  %v1072_v20 = vld [vmem:[#allocation2 + $0xad0] sm:$0xff]  ;;  %v3138_v6 = vpack.c.bf16 %v1107_v1, %v1103_v0  ;;  %v1106_v8 = vld [vmem:[#allocation2 + $0xbe0] sm:$0xff] }
 0x176   : > { %v1134_v1 = vld [vmem:[#allocation2 + $0xcc0] sm:$0xff] }
 0x177   : > { %3105 = vmatpush1.bf16.msra.mxu0 %v3104_v26  ;;  %v1085_v26 = vld [vmem:[#allocation2 + $0xb38] sm:$0xff] }
 0x178   : > { %3361 = vmatpush1.bf16.msra.mxu1 %v3360_v28  ;;  %3107 = vmatprep.subr.bf16.mxu0 %v3106_v29  ;;  %v3124_v28 = vpack.c.bf16 %v1074_v19, %v1070_v18  ;;  %v3380_v29 = vpack.c.bf16 %v1076_v22, %v1072_v20  ;;  %v3382_v34 = vpack.c.bf16 %v1085_v26, %v1081_v25  ;;  %v1110_v20 = vld [vmem:[#allocation2 + $0xc00] sm:$0xff]  ;;  %v1112_v22 = vld [vmem:[#allocation2 + $0xc10] sm:$0xff]  ;;  %v1119_v25 = vld [vmem:[#allocation2 + $0xc48] sm:$0xff] }
 0x179   : > { %3363 = vmatprep.subr.bf16.mxu1 %v3362_v33  ;;  %v1080_v33 = vld [vmem:[#allocation2 + $0xb10] sm:$0xff]  ;;  %v3142_v19 = vpack.c.bf16 %v1115_v13, %v1111_v12  ;;  %v1123_v26 = vld [vmem:[#allocation2 + $0xc68] sm:$0xff]  ;;  %v1142_v13 = vld [vmem:[#allocation2 + $0xd00] sm:$0xff] }
 0x17b   : > { %3109 = vmatpush1.bf16.msra.mxu0 %v3108_v38  ;;  %v1093_v38 = vld [vmem:[#allocation2 + $0xb78] sm:$0xff] }
 0x17c   : > { %3365 = vmatpush1.bf16.msra.mxu1 %v3364_v39  ;;  %3111 = vmatprep.subr.bf16.mxu0 %v3110_v42  ;;  %v3128_v39 = vpack.c.bf16 %v1082_v32, %v1078_v31  ;;  %v3384_v42 = vpack.c.bf16 %v1084_v35, %v1080_v33  ;;  %v3386_v47 = vpack.c.bf16 %v1093_v38, %v1089_v37  ;;  %v1121_v31 = vld [vmem:[#allocation2 + $0xc58] sm:$0xff]  ;;  %v1120_v37 = vld [vmem:[#allocation2 + $0xc50] sm:$0xff] }
 0x17d   : > { %3367 = vmatprep.subr.bf16.mxu1 %v3366_v46  ;;  %v1088_v46 = vld [vmem:[#allocation2 + $0xb50] sm:$0xff]  ;;  %v1125_v32 = vld [vmem:[#allocation2 + $0xc78] sm:$0xff]  ;;  %v3146_v35 = vpack.c.bf16 %v1123_v26, %v1119_v25  ;;  %v1150_v25 = vld [vmem:[#allocation2 + $0xd40] sm:$0xff] }
 0x17e   : > { %v3402_v38 = vpack.c.bf16 %v1125_v32, %v1121_v31  ;;  %v1154_v26 = vld [vmem:[#allocation2 + $0xd60] sm:$0xff]  ;;  %v1156_v31 = vld [vmem:[#allocation2 + $0xd70] sm:$0xff]  ;;  %v1159_v32 = vld [vmem:[#allocation2 + $0xd88] sm:$0xff] }
 0x17f   : > { %3113 = vmatpush1.bf16.msra.mxu0 %v3112_v54  ;;  %v1101_v54 = vld [vmem:[#allocation2 + $0xbb8] sm:$0xff] }
 0x180   : > { %3369 = vmatpush1.bf16.msra.mxu1 %v3368_v55  ;;  %3115 = vmatprep.subr.bf16.mxu0 %v3114_v56  ;;  %v3132_v55 = vpack.c.bf16 %v1090_v45, %v1086_v44  ;;  %v3388_v56 = vpack.c.bf16 %v1092_v48, %v1088_v46  ;;  %v3390_v62 = vpack.c.bf16 %v1101_v54, %v1097_v52  ;;  %v1129_v45 = vld [vmem:[#allocation2 + $0xc98] sm:$0xff]  ;;  %v1130_v52 = vld [vmem:[#allocation2 + $0xca0] sm:$0xff]  ;;  %v1128_v54 = vld [vmem:[#allocation2 + $0xc90] sm:$0xff] }
 0x181   : > { %3371 = vmatprep.subr.bf16.mxu1 %v3370_v60  ;;  %v1096_v60 = vld [vmem:[#allocation2 + $0xb90] sm:$0xff]  ;;  %v1133_v46 = vld [vmem:[#allocation2 + $0xcb8] sm:$0xff] }
 0x183   : > { %3117 = vmatpush1.bf16.msra.mxu0 %v3116_v3  ;;  %v1109_v3 = vld [vmem:[#allocation2 + $0xbf8] sm:$0xff] }
 0x184   : > { %3373 = vmatpush1.bf16.msra.mxu1 %v3372_v4  ;;  %3119 = vmatprep.subr.bf16.mxu0 %v3118_v5  ;;  %v3136_v4 = vpack.c.bf16 %v1098_v59, %v1094_v58  ;;  %v3392_v5 = vpack.c.bf16 %v1100_v63, %v1096_v60  ;;  %v3394_v10 = vpack.c.bf16 %v1109_v3, %v1105_v2  ;;  %v1139_v58 = vld [vmem:[#allocation2 + $0xce8] sm:$0xff]  ;;  %v1137_v59 = vld [vmem:[#allocation2 + $0xcd8] sm:$0xff]  ;;  %v1138_v2 = vld [vmem:[#allocation2 + $0xce0] sm:$0xff] }
 0x185   : > { %3375 = vmatprep.subr.bf16.mxu1 %v3374_v9  ;;  %v1104_v9 = vld [vmem:[#allocation2 + $0xbd0] sm:$0xff]  ;;  %v1141_v60 = vld [vmem:[#allocation2 + $0xcf8] sm:$0xff] }
 0x186   : > { %v3396_v18 = vpack.c.bf16 %v1108_v11, %v1104_v9  ;;  %v1136_v3 = vld [vmem:[#allocation2 + $0xcd0] sm:$0xff]  ;;  %v1149_v9 = vld [vmem:[#allocation2 + $0xd38] sm:$0xff] }
 0x187   : > { %3121 = vmatpush1.bf16.msra.mxu0 %v3120_v15  ;;  %v1117_v15 = vld [vmem:[#allocation2 + $0xc38] sm:$0xff] }
 0x188   : > { %3377 = vmatpush1.bf16.msra.mxu1 %v3376_v16  ;;  %3123 = vmatprep.subr.bf16.mxu0 %v3122_v17  ;;  %v1258_v16 = vsub.s32 4, %v4353_v27  ;;  %v3140_v17 = vpack.c.bf16 %v1106_v8, %v1102_v7  ;;  %v3398_v23 = vpack.c.bf16 %v1117_v15, %v1113_v14  ;;  %v1147_v7 = vld [vmem:[#allocation2 + $0xd28] sm:$0xff]  ;;  %v1145_v8 = vld [vmem:[#allocation2 + $0xd18] sm:$0xff]  ;;  %v1146_v14 = vld [vmem:[#allocation2 + $0xd20] sm:$0xff] }
 0x189   : > { %3379 = vmatprep.subr.bf16.mxu1 %v3378_v21  ;;  %v1114_v21 = vld [vmem:[#allocation2 + $0xc20] sm:$0xff]  ;;  %v1144_v15 = vld [vmem:[#allocation2 + $0xd10] sm:$0xff] }
 0x18a   : > { %v3144_v33 = vpack.c.bf16 %v1114_v21, %v1110_v20  ;;  %v1153_v20 = vld [vmem:[#allocation2 + $0xd58] sm:$0xff] }
 0x18b   : > { %3125 = vmatpush1.bf16.msra.mxu0 %v3124_v28  ;;  %v1270_v28 = vsub.s32 7, %v4353_v27  ;;  %v1157_v21 = vld [vmem:[#allocation2 + $0xd78] sm:$0xff] }
 0x18c   : > { %3381 = vmatpush1.bf16.msra.mxu1 %v3380_v29  ;;  %3127 = vmatprep.subr.bf16.mxu0 %v3126_v30  ;;  %v4386_v29 = vld [vmem:[%s4359_s11] sm:$0xff] }
 0x18d   : > { %3383 = vmatprep.subr.bf16.mxu1 %v3382_v34  ;;  %v1259_v30 = vrot.slane %v4386_v29, %v1258_v16  ;;  %v3400_v34 = vpack.c.bf16 %v1116_v24, %v1112_v22  ;;  %v1271_v44 = vrot.slane %v4386_v29, %v1270_v28  ;;  %v3414_v16 = vpack.c.bf16 %v1149_v9, %v1145_v8  ;;  %v1152_v28 = vld [vmem:[#allocation2 + $0xd50] sm:$0xff]  ;;  %v1183_v8 = vld [vmem:[#allocation2 + $0xe48] sm:$0xff] }
 0x18e   : > { %v3160_v22 = vpack.c.bf16 %v1146_v14, %v1142_v13  ;;  %v1187_v9 = vld [vmem:[#allocation2 + $0xe68] sm:$0xff] }
 0x18f   : > { %3129 = vmatpush1.bf16.msra.mxu0 %v3128_v39  ;;  %v1124_v39 = vld [vmem:[#allocation2 + $0xc70] sm:$0xff]  ;;  %v3178_v14 = vpack.c.bf16 %v1187_v9, %v1183_v8 }
 0x190   : > { %3385 = vmatpush1.bf16.msra.mxu1 %v3384_v42  ;;  %3131 = vmatprep.subr.bf16.mxu0 %v3130_v43  ;;  %v1127_v42 = vld [vmem:[#allocation2 + $0xc88] sm:$0xff]  ;;  %v3404_v48 = vpack.c.bf16 %v1124_v39, %v1120_v37  ;;  %v1162_v39 = vld [vmem:[#allocation2 + $0xda0] sm:$0xff]  ;;  %v1220_v9 = vld [vmem:[#allocation2 + $0xf70] sm:$0xff] }
 0x191   : > { %3387 = vmatprep.subr.bf16.mxu1 %v3386_v47  ;;  %v1131_v43 = vld [vmem:[#allocation2 + $0xca8] sm:$0xff]  ;;  %v3148_v47 = vpack.c.bf16 %v1122_v36, %v1118_v51  ;;  %v3164_v51 = vpack.c.bf16 %v1154_v26, %v1150_v25  ;;  %v3420_v36 = vpack.c.bf16 %v1156_v31, %v1152_v28  ;;  %v1190_v28 = vld [vmem:[#allocation2 + $0xe80] sm:$0xff]  ;;  %v1192_v31 = vld [vmem:[#allocation2 + $0xe90] sm:$0xff] }
 0x192   : > { %v3150_v49 = vpack.c.bf16 %v1131_v43, %v1127_v42  ;;  %v1160_v42 = vld [vmem:[#allocation2 + $0xd90] sm:$0xff] }
 0x193   : > { %3133 = vmatpush1.bf16.msra.mxu0 %v3132_v55  ;;  %v3406_v55 = vpack.c.bf16 %v1133_v46, %v1129_v45  ;;  %v1167_v45 = vld [vmem:[#allocation2 + $0xdc8] sm:$0xff] }
 0x194   : > { %3389 = vmatpush1.bf16.msra.mxu1 %v3388_v56  ;;  %3135 = vmatprep.subr.bf16.mxu0 %v3134_v57  ;;  %v1132_v56 = vld [vmem:[#allocation2 + $0xcb0] sm:$0xff]  ;;  %v1135_v57 = vld [vmem:[#allocation2 + $0xcc8] sm:$0xff] }
 0x195   : > { %3391 = vmatprep.subr.bf16.mxu1 %v3390_v62  ;;  %v3152_v62 = vpack.c.bf16 %v1130_v52, %v1126_v50  ;;  %v3408_v63 = vpack.c.bf16 %v1132_v56, %v1128_v54  ;;  %v3154_v0 = vpack.c.bf16 %v1139_v58, %v1135_v57  ;;  %v1171_v46 = vld [vmem:[#allocation2 + $0xde8] sm:$0xff]  ;;  %v1166_v54 = vld [vmem:[#allocation2 + $0xdc0] sm:$0xff]  ;;  %v1168_v56 = vld [vmem:[#allocation2 + $0xdd0] sm:$0xff] }
 0x196   : > { %v3170_v52 = vpack.c.bf16 %v1171_v46, %v1167_v45  ;;  %v1172_v58 = vld [vmem:[#allocation2 + $0xdf0] sm:$0xff] }
 0x197   : > { %3137 = vmatpush1.bf16.msra.mxu0 %v3136_v4  ;;  %v3410_v4 = vpack.c.bf16 %v1141_v60, %v1137_v59  ;;  %v1175_v59 = vld [vmem:[#allocation2 + $0xe08] sm:$0xff]  ;;  %v1204_v46 = vld [vmem:[#allocation2 + $0xef0] sm:$0xff] }
 0x198   : > { %3393 = vmatpush1.bf16.msra.mxu1 %v3392_v5  ;;  %3139 = vmatprep.subr.bf16.mxu0 %v3138_v6  ;;  %v1140_v5 = vld [vmem:[#allocation2 + $0xcf0] sm:$0xff]  ;;  %v1143_v6 = vld [vmem:[#allocation2 + $0xd08] sm:$0xff] }
 0x199   : > { %3395 = vmatprep.subr.bf16.mxu1 %v3394_v10  ;;  %v3156_v10 = vpack.c.bf16 %v1138_v2, %v1134_v1  ;;  %v3412_v11 = vpack.c.bf16 %v1140_v5, %v1136_v3  ;;  %v3158_v12 = vpack.c.bf16 %v1147_v7, %v1143_v6  ;;  %v1179_v60 = vld [vmem:[#allocation2 + $0xe28] sm:$0xff]  ;;  %v3428_v1 = vpack.c.bf16 %v1172_v58, %v1168_v56  ;;  %v1174_v3 = vld [vmem:[#allocation2 + $0xe00] sm:$0xff]  ;;  %v1176_v5 = vld [vmem:[#allocation2 + $0xe10] sm:$0xff] }
 0x19a   : > { %v3174_v2 = vpack.c.bf16 %v1179_v60, %v1175_v59  ;;  %v1180_v7 = vld [vmem:[#allocation2 + $0xe30] sm:$0xff]  ;;  %v1206_v56 = vld [vmem:[#allocation2 + $0xf00] sm:$0xff] }
 0x19b   : > { %3141 = vmatpush1.bf16.msra.mxu0 %v3140_v17  ;;  %v1148_v17 = vld [vmem:[#allocation2 + $0xd30] sm:$0xff]  ;;  %v3432_v13 = vpack.c.bf16 %v1180_v7, %v1176_v5  ;;  %v1214_v5 = vld [vmem:[#allocation2 + $0xf40] sm:$0xff] }
 0x19c   : > { %3397 = vmatpush1.bf16.msra.mxu1 %v3396_v18  ;;  %3143 = vmatprep.subr.bf16.mxu0 %v3142_v19  ;;  %v1151_v18 = vld [vmem:[#allocation2 + $0xd48] sm:$0xff]  ;;  %v1208_v58 = vld [vmem:[#allocation2 + $0xf10] sm:$0xff] }
 0x19d   : > { %3399 = vmatprep.subr.bf16.mxu1 %v3398_v23  ;;  %v1155_v19 = vld [vmem:[#allocation2 + $0xd68] sm:$0xff]  ;;  %v3416_v23 = vpack.c.bf16 %v1148_v17, %v1144_v15  ;;  %v1182_v15 = vld [vmem:[#allocation2 + $0xe40] sm:$0xff]  ;;  %v1184_v17 = vld [vmem:[#allocation2 + $0xe50] sm:$0xff] }
 0x19e   : > { %1508 = vmatmul.mubr.f32.vlgmr.msra.gmra.mrb[0].mxu0 %v1259_v30  ;;  %v3162_v24 = vpack.c.bf16 %v1155_v19, %v1151_v18  ;;  %v1188_v19 = vld [vmem:[#allocation2 + $0xe70] sm:$0xff] }
 0x19f   : > { %3145 = vmatpush1.bf16.msra.mxu0 %v3144_v33  ;;  %1792 = vmatmul.mubr.f32.vlgmr.msra.gmra.mrb[0].mxu1 %v1259_v30  ;;  %v3418_v30 = vpack.c.bf16 %v1157_v21, %v1153_v20  ;;  %v1163_v33 = vld [vmem:[#allocation2 + $0xda8] sm:$0xff]  ;;  %v3436_v25 = vpack.c.bf16 %v1188_v19, %v1184_v17  ;;  %v1212_v60 = vld [vmem:[#allocation2 + $0xf30] sm:$0xff]  ;;  %v1222_v17 = vld [vmem:[#allocation2 + $0xf80] sm:$0xff] }
 0x1a0   : > { %3401 = vmatpush1.bf16.msra.mxu1 %v3400_v34  ;;  %3147 = vmatprep.subr.bf16.mxu0 %v3146_v35  ;;  %v1161_v34 = vld [vmem:[#allocation2 + $0xd98] sm:$0xff]  ;;  %v3166_v37 = vpack.c.bf16 %v1163_v33, %v1159_v32  ;;  %v1191_v20 = vld [vmem:[#allocation2 + $0xe88] sm:$0xff]  ;;  %v1196_v33 = vld [vmem:[#allocation2 + $0xeb0] sm:$0xff] }
 0x1a1   : > { %3403 = vmatprep.subr.bf16.mxu1 %v3402_v38  ;;  %1578 = vmatprep.mubr.f32.mxu0 %v1271_v44  ;;  %v1165_v35 = vld [vmem:[#allocation2 + $0xdb8] sm:$0xff]  ;;  %v1158_v38 = vld [vmem:[#allocation2 + $0xd80] sm:$0xff]  ;;  %v1195_v21 = vld [vmem:[#allocation2 + $0xea8] sm:$0xff] }
 0x1a2   : > { %1862 = vmatprep.mubr.f32.mxu1 %v1271_v44  ;;  %v3422_v43 = vpack.c.bf16 %v1165_v35, %v1161_v34  ;;  %v1164_v44 = vld [vmem:[#allocation2 + $0xdb0] sm:$0xff]  ;;  %v3182_v26 = vpack.c.bf16 %v1195_v21, %v1191_v20  ;;  %v1199_v34 = vld [vmem:[#allocation2 + $0xec8] sm:$0xff] }
 0x1a3   : > { %3149 = vmatpush1.bf16.msra.mxu0 %v3148_v47  ;;  %v1169_v47 = vld [vmem:[#allocation2 + $0xdd8] sm:$0xff]  ;;  %v3424_v50 = vpack.c.bf16 %v1164_v44, %v1160_v42  ;;  %v1203_v35 = vld [vmem:[#allocation2 + $0xee8] sm:$0xff]  ;;  %v1198_v42 = vld [vmem:[#allocation2 + $0xec0] sm:$0xff] }
 0x1a4   : > { %3405 = vmatpush1.bf16.msra.mxu1 %v3404_v48  ;;  %3151 = vmatprep.subr.bf16.mxu0 %v3150_v49  ;;  %v1173_v48 = vld [vmem:[#allocation2 + $0xdf8] sm:$0xff]  ;;  %v3168_v49 = vpack.c.bf16 %v1162_v39, %v1158_v38  ;;  %v3440_v38 = vpack.c.bf16 %v1196_v33, %v1192_v31  ;;  %v3186_v39 = vpack.c.bf16 %v1203_v35, %v1199_v34  ;;  %v1200_v44 = vld [vmem:[#allocation2 + $0xed0] sm:$0xff]  ;;  %v1230_v31 = vld [vmem:[#allocation2 + $0xfc0] sm:$0xff] }
 0x1a5   : > { %3407 = vmatprep.subr.bf16.mxu1 %v3406_v55  ;;  %v1170_v55 = vld [vmem:[#allocation2 + $0xde0] sm:$0xff]  ;;  %v3426_v57 = vpack.c.bf16 %v1173_v48, %v1169_v47  ;;  %v1207_v47 = vld [vmem:[#allocation2 + $0xf08] sm:$0xff]  ;;  %v1216_v7 = vld [vmem:[#allocation2 + $0xf50] sm:$0xff] }
 0x1a6   : > { %v1211_v48 = vld [vmem:[#allocation2 + $0xf28] sm:$0xff]  ;;  %v1224_v19 = vld [vmem:[#allocation2 + $0xf90] sm:$0xff] }
 0x1a7   : > { %3153 = vmatpush1.bf16.msra.mxu0 %v3152_v62  ;;  %v1177_v62 = vld [vmem:[#allocation2 + $0xe18] sm:$0xff]  ;;  %v1228_v21 = vld [vmem:[#allocation2 + $0xfb0] sm:$0xff] }
 0x1a8   : > { %3409 = vmatpush1.bf16.msra.mxu1 %v3408_v63  ;;  %3155 = vmatprep.subr.bf16.mxu0 %v3154_v0  ;;  %v1181_v63 = vld [vmem:[#allocation2 + $0xe38] sm:$0xff]  ;;  %v3172_v0 = vpack.c.bf16 %v1170_v55, %v1166_v54  ;;  %v3444_v54 = vpack.c.bf16 %v1204_v46, %v1200_v44  ;;  %v3190_v55 = vpack.c.bf16 %v1211_v48, %v1207_v47  ;;  %v1232_v33 = vld [vmem:[#allocation2 + $0xfd0] sm:$0xff]  ;;  %v1905_v47 = vld [vmem:[#allocation6 + $0x100] sm:$0xff] }
 0x1a9   : > { %3411 = vmatprep.subr.bf16.mxu1 %v3410_v4  ;;  %v1178_v4 = vld [vmem:[#allocation2 + $0xe20] sm:$0xff]  ;;  %v3430_v6 = vpack.c.bf16 %v1181_v63, %v1177_v62  ;;  %v1215_v62 = vld [vmem:[#allocation2 + $0xf48] sm:$0xff]  ;;  %v1236_v35 = vld [vmem:[#allocation2 + $0xff0] sm:$0xff] }
 0x1aa   : > { %v1219_v63 = vld [vmem:[#allocation2 + $0xf68] sm:$0xff] }
 0x1ab   : > { %3157 = vmatpush1.bf16.msra.mxu0 %v3156_v10  ;;  %v1185_v10 = vld [vmem:[#allocation2 + $0xe58] sm:$0xff]  ;;  %v1874_v46 = vld [vmem:[#allocation6 + $0x8] sm:$0xff] }
 0x1ac   : > { %3413 = vmatpush1.bf16.msra.mxu1 %v3412_v11  ;;  %3159 = vmatprep.subr.bf16.mxu0 %v3158_v12  ;;  %v1189_v11 = vld [vmem:[#allocation2 + $0xe78] sm:$0xff]  ;;  %v3176_v12 = vpack.c.bf16 %v1178_v4, %v1174_v3  ;;  %v3448_v3 = vpack.c.bf16 %v1212_v60, %v1208_v58  ;;  %v3194_v4 = vpack.c.bf16 %v1219_v63, %v1215_v62 }
 0x1ad   : > { %3415 = vmatprep.subr.bf16.mxu1 %v3414_v16  ;;  %v1186_v16 = vld [vmem:[#allocation2 + $0xe60] sm:$0xff]  ;;  %v3434_v18 = vpack.c.bf16 %v1189_v11, %v1185_v10  ;;  %v1223_v10 = vld [vmem:[#allocation2 + $0xf88] sm:$0xff]  ;;  %v1875_v60 = vld [vmem:[#allocation6 + $0x10] sm:$0xff] }
 0x1ae   : > { %v1227_v11 = vld [vmem:[#allocation2 + $0xfa8] sm:$0xff]  ;;  %v1876_v62 = vld [vmem:[#allocation6 + $0x18] sm:$0xff]  ;;  %v1907_v63 = vld [vmem:[#allocation6 + $0x110] sm:$0xff] }
 0x1af   : > { %3161 = vmatpush1.bf16.msra.mxu0 %v3160_v22  ;;  %v1193_v22 = vld [vmem:[#allocation2 + $0xe98] sm:$0xff] }
 0x1b0   : > { %3417 = vmatpush1.bf16.msra.mxu1 %v3416_v23  ;;  %3163 = vmatprep.subr.bf16.mxu0 %v3162_v24  ;;  %v1197_v23 = vld [vmem:[#allocation2 + $0xeb8] sm:$0xff]  ;;  %v3180_v24 = vpack.c.bf16 %v1186_v16, %v1182_v15  ;;  %v3452_v15 = vpack.c.bf16 %v1220_v9, %v1216_v7  ;;  %v3198_v16 = vpack.c.bf16 %v1227_v11, %v1223_v10  ;;  %v1878_v9 = vld [vmem:[#allocation6 + $0x28] sm:$0xff]  ;;  %v1909_v10 = vld [vmem:[#allocation6 + $0x120] sm:$0xff] }
 0x1b1   : > { %3419 = vmatprep.subr.bf16.mxu1 %v3418_v30  ;;  %v1194_v30 = vld [vmem:[#allocation2 + $0xea0] sm:$0xff]  ;;  %v3438_v32 = vpack.c.bf16 %v1197_v23, %v1193_v22  ;;  %v1231_v22 = vld [vmem:[#allocation2 + $0xfc8] sm:$0xff] }
 0x1b2   : > { %v1235_v23 = vld [vmem:[#allocation2 + $0xfe8] sm:$0xff] }
 0x1b3   : > { %3165 = vmatpush1.bf16.msra.mxu0 %v3164_v51  ;;  %v1201_v51 = vld [vmem:[#allocation2 + $0xed8] sm:$0xff] }
 0x1b4   : > { %3421 = vmatpush1.bf16.msra.mxu1 %v3420_v36  ;;  %3167 = vmatprep.subr.bf16.mxu0 %v3166_v37  ;;  %v1205_v36 = vld [vmem:[#allocation2 + $0xef8] sm:$0xff]  ;;  %v3184_v37 = vpack.c.bf16 %v1194_v30, %v1190_v28  ;;  %v3456_v28 = vpack.c.bf16 %v1228_v21, %v1224_v19  ;;  %v3202_v30 = vpack.c.bf16 %v1235_v23, %v1231_v22 }
 0x1b5   : > { %3423 = vmatprep.subr.bf16.mxu1 %v3422_v43  ;;  %v1202_v43 = vld [vmem:[#allocation2 + $0xee0] sm:$0xff]  ;;  %v3442_v45 = vpack.c.bf16 %v1205_v36, %v1201_v51  ;;  %v1890_v36 = vld [vmem:[#allocation6 + $0x88] sm:$0xff]  ;;  %v1911_v22 = vld [vmem:[#allocation6 + $0x130] sm:$0xff] }
 0x1b6   : > { %v1889_v51 = vld [vmem:[#allocation6 + $0x80] sm:$0xff]  ;;  %v1880_v21 = vld [vmem:[#allocation6 + $0x38] sm:$0xff] }
 0x1b7   : > { %3169 = vmatpush1.bf16.msra.mxu0 %v3168_v49  ;;  %v1209_v49 = vld [vmem:[#allocation2 + $0xf18] sm:$0xff]  ;;  %v3462_v44 = vpack.c.bf16 %v1890_v36, %v1889_v51  ;;  %v1913_v51 = vld [vmem:[#allocation6 + $0x140] sm:$0xff] }
 0x1b8   : > { %3425 = vmatpush1.bf16.msra.mxu1 %v3424_v50  ;;  %3171 = vmatprep.subr.bf16.mxu0 %v3170_v52  ;;  %v1213_v50 = vld [vmem:[#allocation2 + $0xf38] sm:$0xff]  ;;  %v3188_v52 = vpack.c.bf16 %v1202_v43, %v1198_v42  ;;  %v3460_v43 = vpack.c.bf16 %v1236_v35, %v1232_v33  ;;  %v1882_v35 = vld [vmem:[#allocation6 + $0x48] sm:$0xff] }
 0x1b9   : > { %3427 = vmatprep.subr.bf16.mxu1 %v3426_v57  ;;  %v1210_v57 = vld [vmem:[#allocation2 + $0xf20] sm:$0xff]  ;;  %v3446_v59 = vpack.c.bf16 %v1213_v50, %v1209_v49  ;;  %v1906_v49 = vld [vmem:[#allocation6 + $0x108] sm:$0xff]  ;;  %v1891_v50 = vld [vmem:[#allocation6 + $0x90] sm:$0xff] }
 0x1ba   : > { %v3496_v58 = vpack.c.bf16 %v1906_v49, %v1905_v47  ;;  %v1883_v47 = vld [vmem:[#allocation6 + $0x50] sm:$0xff] }
 0x1bb   : > { %3173 = vmatpush1.bf16.msra.mxu0 %v3172_v0  ;;  %v1217_v0 = vld [vmem:[#allocation2 + $0xf58] sm:$0xff] }
 0x1bc   : > { %3429 = vmatpush1.bf16.msra.mxu1 %v3428_v1  ;;  %3175 = vmatprep.subr.bf16.mxu0 %v3174_v2  ;;  %v1221_v1 = vld [vmem:[#allocation2 + $0xf78] sm:$0xff]  ;;  %v3192_v2 = vpack.c.bf16 %v1210_v57, %v1206_v56 }
 0x1bd   : > { %3431 = vmatprep.subr.bf16.mxu1 %v3430_v6  ;;  %v1218_v6 = vld [vmem:[#allocation2 + $0xf60] sm:$0xff]  ;;  %v3450_v8 = vpack.c.bf16 %v1221_v1, %v1217_v0  ;;  %v1915_v49 = vld [vmem:[#allocation6 + $0x150] sm:$0xff] }
 0x1be   : > { %v1924_v56 = vld [vmem:[#allocation6 + $0x198] sm:$0xff] }
 0x1bf   : > { %3177 = vmatpush1.bf16.msra.mxu0 %v3176_v12  ;;  %v1225_v12 = vld [vmem:[#allocation2 + $0xf98] sm:$0xff] }
 0x1c0   : > { %3433 = vmatpush1.bf16.msra.mxu1 %v3432_v13  ;;  %3179 = vmatprep.subr.bf16.mxu0 %v3178_v14  ;;  %v1229_v13 = vld [vmem:[#allocation2 + $0xfb8] sm:$0xff]  ;;  %v3196_v14 = vpack.c.bf16 %v1218_v6, %v1214_v5  ;;  %v1926_v5 = vld [vmem:[#allocation6 + $0x1a8] sm:$0xff] }
 0x1c1   : > { %3435 = vmatprep.subr.bf16.mxu1 %v3434_v18  ;;  %v1226_v18 = vld [vmem:[#allocation2 + $0xfa0] sm:$0xff]  ;;  %v3454_v20 = vpack.c.bf16 %v1229_v13, %v1225_v12  ;;  %v1910_v12 = vld [vmem:[#allocation6 + $0x128] sm:$0xff]  ;;  %v1895_v13 = vld [vmem:[#allocation6 + $0xb0] sm:$0xff] }
 0x1c2   : > { %v1908_v1 = vld [vmem:[#allocation6 + $0x118] sm:$0xff] }
 0x1c3   : > { %3181 = vmatpush1.bf16.msra.mxu0 %v3180_v24  ;;  %v1233_v24 = vld [vmem:[#allocation2 + $0xfd8] sm:$0xff]  ;;  %v3500_v6 = vpack.c.bf16 %v1908_v1, %v1907_v63  ;;  %v1885_v63 = vld [vmem:[#allocation6 + $0x60] sm:$0xff] }
 0x1c4   : > { %3437 = vmatpush1.bf16.msra.mxu1 %v3436_v25  ;;  %3183 = vmatprep.subr.bf16.mxu0 %v3182_v26  ;;  %v1237_v25 = vld [vmem:[#allocation2 + $0xff8] sm:$0xff]  ;;  %v3200_v26 = vpack.c.bf16 %v1226_v18, %v1222_v17  ;;  %v3504_v18 = vpack.c.bf16 %v1910_v12, %v1909_v10  ;;  %v1917_v1 = vld [vmem:[#allocation6 + $0x160] sm:$0xff] }
 0x1c5   : > { %3439 = vmatprep.subr.bf16.mxu1 %v3438_v32  ;;  %v1234_v32 = vld [vmem:[#allocation2 + $0xfe0] sm:$0xff]  ;;  %v3458_v34 = vpack.c.bf16 %v1237_v25, %v1233_v24 }
 0x1c6   : > { %v3204_v42 = vpack.c.bf16 %v1234_v32, %v1230_v31  ;;  %v1912_v24 = vld [vmem:[#allocation6 + $0x138] sm:$0xff]  ;;  %v1897_v25 = vld [vmem:[#allocation6 + $0xc0] sm:$0xff] }
 0x1c7   : > { %3185 = vmatpush1.bf16.msra.mxu0 %v3184_v37  ;;  %v1266_v37 = vsub.s32 6, %v4353_v27  ;;  %v3508_v32 = vpack.c.bf16 %v1912_v24, %v1911_v22  ;;  %v1888_v10 = vld [vmem:[#allocation6 + $0x78] sm:$0xff] }
 0x1c8   : > { %3441 = vmatpush1.bf16.msra.mxu1 %v3440_v38  ;;  %3187 = vmatprep.subr.bf16.mxu0 %v3186_v39  ;;  %v1921_v38 = vld [vmem:[#allocation6 + $0x180] sm:$0xff]  ;;  %v1922_v39 = vld [vmem:[#allocation6 + $0x188] sm:$0xff] }
 0x1c9   : > { %3443 = vmatprep.subr.bf16.mxu1 %v3442_v45  ;;  %v1873_v45 = vld [vmem:[#allocation6] sm:$0xff]  ;;  %v3494_v48 = vpack.c.bf16 %v1922_v39, %v1921_v38  ;;  %v1899_v38 = vld [vmem:[#allocation6 + $0xd0] sm:$0xff]  ;;  %v1900_v39 = vld [vmem:[#allocation6 + $0xd8] sm:$0xff] }
 0x1ca   : > { %v3464_v57 = vpack.c.bf16 %v1874_v46, %v1873_v45  ;;  %v3482_v46 = vpack.c.bf16 %v1900_v39, %v1899_v38  ;;  %v2082_v38 = vld [vmem:[%s4337_s10 + $0x18] sm:$0xff] }
 0x1cb   : > { %3189 = vmatpush1.bf16.msra.mxu0 %v3188_v52  ;;  %v1892_v52 = vld [vmem:[#allocation6 + $0x98] sm:$0xff] }
 0x1cc   : > { %3445 = vmatpush1.bf16.msra.mxu1 %v3444_v54  ;;  %3191 = vmatprep.subr.bf16.mxu0 %v3190_v55  ;;  %v1267_v54 = vrot.slane %v4386_v29, %v1266_v37  ;;  %v1923_v55 = vld [vmem:[#allocation6 + $0x190] sm:$0xff]  ;;  %v3468_v29 = vpack.c.bf16 %v1876_v62, %v1875_v60  ;;  %v1914_v37 = vld [vmem:[#allocation6 + $0x148] sm:$0xff] }
 0x1cd   : > { %3447 = vmatprep.subr.bf16.mxu1 %v3446_v59  ;;  %v3466_v59 = vpack.c.bf16 %v1892_v52, %v1891_v50  ;;  %v3498_v0 = vpack.c.bf16 %v1924_v56, %v1923_v55  ;;  %v3512_v45 = vpack.c.bf16 %v1914_v37, %v1913_v51  ;;  %v1916_v52 = vld [vmem:[#allocation6 + $0x158] sm:$0xff]  ;;  %v1902_v55 = vld [vmem:[#allocation6 + $0xe8] sm:$0xff]  ;;  %v1933_v56 = vld [vmem:[#allocation6 + $0x1e0] sm:$0xff] }
 0x1ce   : > { %v2081_v37 = vld [vmem:[%s4337_s10 + $0x10] sm:$0xff] }
 0x1cf   : > { %3193 = vmatpush1.bf16.msra.mxu0 %v3192_v2  ;;  %v1893_v2 = vld [vmem:[#allocation6 + $0xa0] sm:$0xff] }
 0x1d0   : > { %3449 = vmatpush1.bf16.msra.mxu1 %v3448_v3  ;;  %3195 = vmatprep.subr.bf16.mxu0 %v3194_v4  ;;  %v1894_v3 = vld [vmem:[#allocation6 + $0xa8] sm:$0xff]  ;;  %v1925_v4 = vld [vmem:[#allocation6 + $0x1a0] sm:$0xff] }
 0x1d1   : > { %3451 = vmatprep.subr.bf16.mxu1 %v3450_v8  ;;  %v3470_v7 = vpack.c.bf16 %v1894_v3, %v1893_v2  ;;  %v1877_v8 = vld [vmem:[#allocation6 + $0x20] sm:$0xff]  ;;  %v3502_v11 = vpack.c.bf16 %v1926_v5, %v1925_v4  ;;  %v1918_v3 = vld [vmem:[#allocation6 + $0x168] sm:$0xff]  ;;  %v1903_v5 = vld [vmem:[#allocation6 + $0xf0] sm:$0xff] }
 0x1d2   : > { %v3472_v17 = vpack.c.bf16 %v1878_v9, %v1877_v8  ;;  %v3520_v4 = vpack.c.bf16 %v1918_v3, %v1917_v1  ;;  %v1936_v8 = vld [vmem:[#allocation6 + $0x1f8] sm:$0xff]  ;;  %v1887_v9 = vld [vmem:[#allocation6 + $0x70] sm:$0xff] }
 0x1d3   : > { %3197 = vmatpush1.bf16.msra.mxu0 %v3196_v14  ;;  %v1896_v14 = vld [vmem:[#allocation6 + $0xb8] sm:$0xff]  ;;  %v3492_v12 = vpack.c.bf16 %v1888_v10, %v1887_v9  ;;  %v2092_v9 = vld [vmem:[%s4337_s10 + $0x68] sm:$0xff] }
 0x1d4   : > { %3453 = vmatpush1.bf16.msra.mxu1 %v3452_v15  ;;  %3199 = vmatprep.subr.bf16.mxu0 %v3198_v16  ;;  %v1927_v15 = vld [vmem:[#allocation6 + $0x1b0] sm:$0xff]  ;;  %v1928_v16 = vld [vmem:[#allocation6 + $0x1b8] sm:$0xff]  ;;  %v3474_v19 = vpack.c.bf16 %v1896_v14, %v1895_v13 }
 0x1d5   : > { %3455 = vmatprep.subr.bf16.mxu1 %v3454_v20  ;;  %v1879_v20 = vld [vmem:[#allocation6 + $0x30] sm:$0xff]  ;;  %v3506_v23 = vpack.c.bf16 %v1928_v16, %v1927_v15  ;;  %v1920_v14 = vld [vmem:[#allocation6 + $0x178] sm:$0xff]  ;;  %v3980_v16 = vmov 0.0|0.0  }
 0x1d6   : > { %v3476_v31 = vpack.c.bf16 %v1880_v21, %v1879_v20  ;;  %v1919_v13 = vld [vmem:[#allocation6 + $0x170] sm:$0xff] }
 0x1d7   : > { %3201 = vmatpush1.bf16.msra.mxu0 %v3200_v26  ;;  %v1898_v26 = vld [vmem:[#allocation6 + $0xc8] sm:$0xff]  ;;  %v3524_v15 = vpack.c.bf16 %v1920_v14, %v1919_v13  ;;  %v2089_v3 = vld [vmem:[%s4337_s10 + $0x50] sm:$0xff] }
 0x1d8   : > { %3457 = vmatpush1.bf16.msra.mxu1 %v3456_v28  ;;  %3203 = vmatprep.subr.bf16.mxu0 %v3202_v30  ;;  %v1929_v28 = vld [vmem:[#allocation6 + $0x1c0] sm:$0xff]  ;;  %v1930_v30 = vld [vmem:[#allocation6 + $0x1c8] sm:$0xff]  ;;  %v3478_v33 = vpack.c.bf16 %v1898_v26, %v1897_v25  ;;  %v2093_v14 = vld [vmem:[%s4337_s10 + $0x70] sm:$0xff] }
 0x1d9   : > { %3459 = vmatprep.subr.bf16.mxu1 %v3458_v34  ;;  %v1881_v34 = vld [vmem:[#allocation6 + $0x40] sm:$0xff]  ;;  %v3510_v36 = vpack.c.bf16 %v1930_v30, %v1929_v28  ;;  %v2080_v28 = vld [vmem:[%s4337_s10 + $0x8] sm:$0xff] }
 0x1da   : > { %v2079_v26 = vld [vmem:[%s4337_s10] sm:$0xff] }
 0x1db   : > { %3205 = vmatpush1.bf16.msra.mxu0 %v3204_v42  ;;  %v1931_v42 = vld [vmem:[#allocation6 + $0x1d0] sm:$0xff] }
 0x1dc   : > { %3461 = vmatpush1.bf16.msra.mxu1 %v3460_v43  ;;  %3463 = vmatprep.subr.bf16.mxu0 %v3462_v44  ;;  %v1932_v43 = vld [vmem:[#allocation6 + $0x1d8] sm:$0xff]  ;;  %v3480_v44 = vpack.c.bf16 %v1882_v35, %v1881_v34  ;;  %v3527_v35 = vpack.c.bf16 %v2080_v28, %v2079_v26 }
 0x1dd   : > { %3495 = vmatprep.subr.bf16.mxu1 %v3494_v48  ;;  %v1884_v48 = vld [vmem:[#allocation6 + $0x58] sm:$0xff]  ;;  %v3514_v50 = vpack.c.bf16 %v1932_v43, %v1931_v42 }
 0x1de   : > { %1579 = vmatmul.mubr.f32.vlgmr.msra.gmra.mrb[0].mxu0 %v1267_v54  ;;  %v2168_v42 = vld [vmem:[%s4339_s23 + $0x10] sm:$0xff]  ;;  %v2169_v43 = vld [vmem:[%s4339_s23 + $0x18] sm:$0xff] }
 0x1df   : > { %1863 = vmatmul.mubr.f32.vlgmr.msra.gmra.mrb[0].mxu1 %v1267_v54  ;;  %3465 = vmatpush3.bf16.msra.mxu0 %v3464_v57  ;;  %v1901_v54 = vld [vmem:[#allocation6 + $0xe0] sm:$0xff]  ;;  %v1934_v57 = vld [vmem:[#allocation6 + $0x1e8] sm:$0xff] }
 0x1e0   : > { %3497 = vmatpush3.bf16.msra.mxu1 %v3496_v58  ;;  %3467 = vmatprep.subr.bf16.mxu0 %v3466_v59  ;;  %v3484_v58 = vpack.c.bf16 %v1884_v48, %v1883_v47  ;;  %v3516_v59 = vpack.c.bf16 %v1916_v52, %v1915_v49  ;;  %v3486_v60 = vpack.c.bf16 %v1902_v55, %v1901_v54  ;;  %v2084_v47 = vld [vmem:[%s4337_s10 + $0x28] sm:$0xff]  ;;  %v2170_v48 = vld [vmem:[%s4339_s23 + $0x20] sm:$0xff]  ;;  %v2085_v54 = vld [vmem:[%s4337_s10 + $0x30] sm:$0xff] }
 0x1e1   : > { %3499 = vmatprep.subr.bf16.mxu1 %v3498_v0  ;;  %v3518_v62 = vpack.c.bf16 %v1934_v57, %v1933_v56  ;;  %v1886_v0 = vld [vmem:[#allocation6 + $0x68] sm:$0xff]  ;;  %v2086_v55 = vld [vmem:[%s4337_s10 + $0x38] sm:$0xff]  ;;  %v2172_v56 = vld [vmem:[%s4339_s23 + $0x30] sm:$0xff] }
 0x1e2   : > { %v3488_v2 = vpack.c.bf16 %v1886_v0, %v1885_v63  ;;  %v2171_v49 = vld [vmem:[%s4339_s23 + $0x28] sm:$0xff]  ;;  %v2173_v57 = vld [vmem:[%s4339_s23 + $0x38] sm:$0xff]  ;;  %v2174_v63 = vld [vmem:[%s4339_s23 + $0x40] sm:$0xff] }
 0x1e3   : > { %3469 = vmatpush3.bf16.msra.mxu0 %v3468_v29  ;;  %v1904_v29 = vld [vmem:[#allocation6 + $0xf8] sm:$0xff]  ;;  %v3557_v52 = vpack.c.bf16 %v2171_v49, %v2170_v48  ;;  %v2175_v0 = vld [vmem:[%s4339_s23 + $0x48] sm:$0xff] }
 0x1e4   : > { %3501 = vmatpush3.bf16.msra.mxu1 %v3500_v6  ;;  %3471 = vmatprep.subr.bf16.mxu0 %v3470_v7  ;;  %v1935_v6 = vld [vmem:[#allocation6 + $0x1f0] sm:$0xff]  ;;  %v3490_v7 = vpack.c.bf16 %v1904_v29, %v1903_v5  ;;  %v2177_v29 = vld [vmem:[%s4339_s23 + $0x58] sm:$0xff] }
 0x1e5   : > { %3503 = vmatprep.subr.bf16.mxu1 %v3502_v11  ;;  %v3522_v11 = vpack.c.bf16 %v1936_v8, %v1935_v6  ;;  %v2176_v5 = vld [vmem:[%s4339_s23 + $0x50] sm:$0xff]  ;;  %v2091_v8 = vld [vmem:[%s4337_s10 + $0x60] sm:$0xff] }
 0x1e6   : > { %v3545_v10 = vpack.c.bf16 %v2092_v9, %v2091_v8 }
 0x1e7   : > { %3473 = vmatpush3.bf16.msra.mxu0 %v3472_v17  ;;  %v1238_v17 = vld [vmem:[#allocation4] sm:$0xf] }
 0x1e8   : > { %3505 = vmatpush3.bf16.msra.mxu1 %v3504_v18  ;;  %3475 = vmatprep.subr.bf16.mxu0 %v3474_v19  ;;  %v1284_v18 = vrot.slane %v1238_v17, %v4369_v41  ;;  %v1292_v19 = vrot.slane %v1238_v17, %v1250_v61  ;;  %v1288_v20 = vrot.slane %v1238_v17, %v1246_v40  ;;  %v2166_v61 = vld [vmem:[%s4339_s23] sm:$0xff] }
 0x1e9   : > { %3507 = vmatprep.subr.bf16.mxu1 %v3506_v23  ;;  %v1296_v21 = vrot.slane %v1238_v17, %v1254_v53  ;;  %v2180_v17 = vld [vmem:[%s4339_s23 + $0x70] sm:$0xff] }
 0x1eb   : > { %3477 = vmatpush3.bf16.msra.mxu0 %v3476_v31 }
 0x1ec   : > { %3509 = vmatpush3.bf16.msra.mxu1 %v3508_v32  ;;  %3479 = vmatprep.subr.bf16.mxu0 %v3478_v33  ;;  %v2167_v33 = vld [vmem:[%s4339_s23 + $0x8] sm:$0xff] }
 0x1ed   : > { %3511 = vmatprep.subr.bf16.mxu1 %v3510_v36  ;;  %v3551_v36 = vpack.c.bf16 %v2167_v33, %v2166_v61  ;;  %v2334_v61 = vld [vmem:[%s4341_s8] sm:$0xff] }
 0x1ee   : > { %v2338_v33 = vld [vmem:[%s4341_s8 + $0x20] sm:$0xff] }
 0x1ef   : > { %3481 = vmatpush3.bf16.msra.mxu0 %v3480_v44  ;;  %v3530_v44 = vpack.c.bf16 %v2082_v38, %v2081_v37 }
 0x1f0   : > { %3513 = vmatpush3.bf16.msra.mxu1 %v3512_v45  ;;  %3483 = vmatprep.subr.bf16.mxu0 %v3482_v46  ;;  %v3554_v45 = vpack.c.bf16 %v2169_v43, %v2168_v42  ;;  %v2083_v46 = vld [vmem:[%s4337_s10 + $0x20] sm:$0xff] }
 0x1f1   : > { %3515 = vmatprep.subr.bf16.mxu1 %v3514_v50  ;;  %v3533_v50 = vpack.c.bf16 %v2084_v47, %v2083_v46 }
 0x1f3   : > { %3485 = vmatpush3.bf16.msra.mxu0 %v3484_v58  ;;  %v3536_v58 = vpack.c.bf16 %v2086_v55, %v2085_v54 }
 0x1f4   : > { %3517 = vmatpush3.bf16.msra.mxu1 %v3516_v59  ;;  %3487 = vmatprep.subr.bf16.mxu0 %v3486_v60  ;;  %v3560_v59 = vpack.c.bf16 %v2173_v57, %v2172_v56  ;;  %v2087_v60 = vld [vmem:[%s4337_s10 + $0x40] sm:$0xff] }
 0x1f5   : > { %3519 = vmatprep.subr.bf16.mxu1 %v3518_v62  ;;  %v2088_v62 = vld [vmem:[%s4337_s10 + $0x48] sm:$0xff] }
 0x1f6   : > { %v3539_v1 = vpack.c.bf16 %v2088_v62, %v2087_v60 }
 0x1f7   : > { %3489 = vmatpush3.bf16.msra.mxu0 %v3488_v2  ;;  %v3563_v2 = vpack.c.bf16 %v2175_v0, %v2174_v63 }
 0x1f8   : > { %3521 = vmatpush3.bf16.msra.mxu1 %v3520_v4  ;;  %3491 = vmatprep.subr.bf16.mxu0 %v3490_v7  ;;  %v2090_v4 = vld [vmem:[%s4337_s10 + $0x58] sm:$0xff]  ;;  %v3566_v7 = vpack.c.bf16 %v2177_v29, %v2176_v5 }
 0x1f9   : > { %3523 = vmatprep.subr.bf16.mxu1 %v3522_v11  ;;  %v3542_v6 = vpack.c.bf16 %v2090_v4, %v2089_v3  ;;  %v2178_v11 = vld [vmem:[%s4339_s23 + $0x60] sm:$0xff]  ;;  %v2281_v3 = vadd.s32 8, %v4353_v27 }
 0x1fb   : > { %3493 = vmatpush3.bf16.msra.mxu0 %v3492_v12  ;;  %v2179_v12 = vld [vmem:[%s4339_s23 + $0x68] sm:$0xff] }
 0x1fc   : > { %3525 = vmatpush3.bf16.msra.mxu1 %v3524_v15  ;;  %3526 = vmatprep.subr.bf16.mxu0 %v3980_v16  ;;  %v3569_v13 = vpack.c.bf16 %v2179_v12, %v2178_v11  ;;  %v2094_v15 = vld [vmem:[%s4337_s10 + $0x78] sm:$0xff]  ;;  %s722_s10 = sadd.s32 %s2735_s25, %s4608_s16 }
 0x1fd   : > { %3550 = vmatprep.subr.bf16.mxu1 %v3980_v16 }
 0x2b1   : > { %v1580_v22 = vpop.f32.mrb[0].mxu0 }
 0x2b2   : > { %v3580_v23 = vadd.f32 %v1580_v22, %v1284_v18  ;;  %v1864_v24 = vpop.f32.mrb[0].mxu1  ;;  %v1582_v25 = vpop.f32.mrb[1].mxu0  ;;  %v3548_v18 = vpack.c.bf16 %v2094_v15, %v2093_v14 }
 0x2b3   : > { %v3582_v30 = vadd.f32 %v1864_v24, %v1292_v19  ;;  %v3581_v31 = vadd.f32 %v1582_v25, %v1288_v20  ;;  %v1866_v32 = vpop.f32.mrb[1].mxu1  ;;  %v2181_v19 = vld [vmem:[%s4339_s23 + $0x78] sm:$0xff]  ;;  %s2736_s23 = sshll.u32 %s722_s10, 2 }
 0x2b4   : > { %v3583_v34 = vadd.f32 %v1866_v32, %v1296_v21  ;;  %v1869_v51 = vmax.f32 %v3580_v23, 0.0  ;;  %v3572_v20 = vpack.c.bf16 %v2181_v19, %v2180_v17  ;;  %v3982_v21 = vmov 0.0   ;;  %v1937_v24 = vld [vmem:[#allocation7] sm:$0x1]  ;;  %s724_s28 = scalar_lea.vmem %s4585_s27, %s2736_s23 }
 0x2b5   : > { %v1870_v40 = vmax.f32 %v3581_v31, 0.0  ;;  %v1871_v39 = vmax.f32 %v3582_v30, 0.0 }
 0x2b6   : > { %v1872_v53 = vmax.f32 %v3583_v34, 0.0  ;;  %v2095_v34 = vld [vmem:[%s713_s18] sm:$0x1] }
 0x2b7   : > { %2002 = vmatprep.mubr.f32.mxu0 %v1870_v40  ;;  %v2182_v40 = vld [vmem:[%s716_s6] sm:$0x1] }
 0x2b8   : > { %2072 = vmatprep.mubr.f32.mxu1 %v1872_v53  ;;  %2003 = vmatmul.mubr.f32.vlgmr.msra.gmra.mrb[2].mxu0 %v1869_v51 }
 0x2b9   : > { %2073 = vmatmul.mubr.f32.vlgmr.msra.gmra.mrb[2].mxu1 %v1871_v39  ;;  %3528 = vmatpush3.bf16.msra.mxu0 %v3527_v35 }
 0x2ba   : > { %3552 = vmatpush3.bf16.msra.mxu1 %v3551_v36  ;;  %3529 = vmatprep.subr.bf16.mxu0 %v3980_v16 }
 0x2bb   : > { %3553 = vmatprep.subr.bf16.mxu1 %v3980_v16  ;;  %2896 = vmatprep.mubr.msk.f32.mxu0 %vm3981_vm0, %v3982_v21 }
 0x2bc   : > { %2931 = vmatprep.mubr.msk.f32.mxu1 %vm3981_vm0, %v3982_v21 }
 0x2bd   : > { %3531 = vmatpush3.bf16.msra.mxu0 %v3530_v44 }
 0x2be   : > { %3555 = vmatpush3.bf16.msra.mxu1 %v3554_v45  ;;  %3532 = vmatprep.subr.bf16.mxu0 %v3980_v16 }
 0x2bf   : > { %3556 = vmatprep.subr.bf16.mxu1 %v3980_v16 }
 0x2c1   : > { %3534 = vmatpush3.bf16.msra.mxu0 %v3533_v50 }
 0x2c2   : > { %3558 = vmatpush3.bf16.msra.mxu1 %v3557_v52  ;;  %3535 = vmatprep.subr.bf16.mxu0 %v3980_v16 }
 0x2c3   : > { %3559 = vmatprep.subr.bf16.mxu1 %v3980_v16 }
 0x2c5   : > { %3537 = vmatpush3.bf16.msra.mxu0 %v3536_v58 }
 0x2c6   : > { %3561 = vmatpush3.bf16.msra.mxu1 %v3560_v59  ;;  %3538 = vmatprep.subr.bf16.mxu0 %v3980_v16 }
 0x2c7   : > { %3562 = vmatprep.subr.bf16.mxu1 %v3980_v16 }
 0x2c9   : > { %3540 = vmatpush3.bf16.msra.mxu0 %v3539_v1 }
 0x2ca   : > { %3564 = vmatpush3.bf16.msra.mxu1 %v3563_v2  ;;  %3541 = vmatprep.subr.bf16.mxu0 %v3980_v16 }
 0x2cb   : > { %3565 = vmatprep.subr.bf16.mxu1 %v3980_v16 }
 0x2cd   : > { %3543 = vmatpush3.bf16.msra.mxu0 %v3542_v6 }
 0x2ce   : > { %3567 = vmatpush3.bf16.msra.mxu1 %v3566_v7  ;;  %3544 = vmatprep.subr.bf16.mxu0 %v3980_v16 }
 0x2cf   : > { %3568 = vmatprep.subr.bf16.mxu1 %v3980_v16 }
 0x2d1   : > { %3546 = vmatpush3.bf16.msra.mxu0 %v3545_v10 }
 0x2d2   : > { %3570 = vmatpush3.bf16.msra.mxu1 %v3569_v13  ;;  %3547 = vmatprep.subr.bf16.mxu0 %v3980_v16 }
 0x2d3   : > { %3571 = vmatprep.subr.bf16.mxu1 %v3980_v16 }
 0x2d5   : > { %3549 = vmatpush3.bf16.msra.mxu0 %v3548_v18 }
 0x2d6   : > { %3573 = vmatpush3.bf16.msra.mxu1 %v3572_v20 }
 0x38b   : > { %v2782_v22 = vpop.f32.mrb[2].mxu0 }
 0x38c   : > { %v2817_v23 = vpop.f32.mrb[2].mxu1  ;;  %v2783_v25 = vpop.f32.mrb[3].mxu0 }
 0x38d   : > { %v2784_v26 = vadd.f32 %v2783_v25, %v2782_v22  ;;  %v2818_v28 = vpop.f32.mrb[3].mxu1  ;;  %v2339_v25 = vld [vmem:[%s4341_s8 + $0x28] sm:$0xff] }
 0x38e   : > { %v2819_v16 = vadd.f32 %v2818_v28, %v2817_v23  ;;  %v2340_v28 = vld [vmem:[%s4341_s8 + $0x30] sm:$0xff] }
 0x38f   : > { %v2005_v30 = vadd.f32 %v2784_v26, %v1937_v24  ;;  %v2336_v26 = vld [vmem:[%s4341_s8 + $0x10] sm:$0xff] }
 0x391   : > { %v2075_v31 = vadd.f32 %v2819_v16, %v2005_v30  ;;  %v2337_v16 = vld [vmem:[%s4341_s8 + $0x18] sm:$0xff] }
 0x392   : > { %v2341_v30 = vld [vmem:[%s4341_s8 + $0x38] sm:$0xff] }
 0x393   : > { %v2078_v32 = vmax.f32 %v2075_v31, 0.0 }
 0x395   : > { %2897 = vmatmul.mubr.f32.vlgmr.msra.gmra.mrb[4].mxu0 %v2078_v32  ;;  %2932 = vmatmul.mubr.f32.vlgmr.msra.gmra.mrb[4].mxu1 %v2078_v32 }
 0x396   : > { %2938 = vmatprep.mubr.msk.f32.mxu0 %vm2342_vm1, %v2334_v61  ;;  %2944 = vmatprep.mubr.msk.f32.mxu1 %vm2342_vm1, %v2338_v33 }
 0x468   : > { %v2162_v35 = vpop.f32.mrb[4].mxu0  ;;  %v2249_v51 = vpop.f32.mrb[4].mxu1 }
 0x469   : > { %v2163_v53 = vadd.f32 %v2162_v35, %v2095_v34  ;;  %v2250_v36 = vadd.f32 %v2249_v51, %v2182_v40  ;;  %v2898_v37 = vpop.f32.mrb[5].mxu0  ;;  %v2933_v38 = vpop.f32.mrb[5].mxu1 }
 0x46b   : > { %v2253_v39 = vadd.f32 1.0, %v2163_v53  ;;  %v2259_v42 = vadd.f32 1.0, %v2250_v36 }
 0x46d   : > { %v2254_v43 = vmul.f32 16.0, %v2253_v39  ;;  %v2260_v44 = vmul.f32 16.0, %v2259_v42 }
 0x46f   : > { %v2737_v45 = vadd.f32 -1.0, %v2254_v43  ;;  %v2738_v46 = vadd.f32 -1.0, %v2260_v44 }
 0x471   : > { %v2256_v47 = vmul.f32 0.5, %v2737_v45  ;;  %v2262_v48 = vmul.f32 0.5, %v2738_v46 }
 0x473   : > { %v2257_v49 = vmax.f32 %v2256_v47, 0.0  ;;  %v2263_v50 = vmax.f32 %v2262_v48, 0.0 }
 0x475   : > { %v2258_v52 = vmin.f32 %v2257_v49, 15.0  ;;  %v2264_v54 = vmin.f32 %v2263_v50, 15.0 }
 0x477   : > { %v2265_v55 = vfloor.f32 %v2258_v52  ;;  %v2266_v56 = vfloor.f32 %v2264_v54 }
 0x479   : > { %v2267_v57 = vsub.f32 %v2258_v52, %v2265_v55  ;;  %v3596_v58 = vtrunc.f32 %v2265_v55  ;;  %v2268_v59 = vsub.f32 %v2264_v54, %v2266_v56  ;;  %v3598_v60 = vtrunc.f32 %v2266_v56 }
 0x47b   : > { %v2269_v62 = vsub.f32 1.0, %v2267_v57  ;;  %v3597_v63 = vcvt.f32.s32 %v3596_v58  ;;  %v2270_v0 = vsub.f32 1.0, %v2268_v59  ;;  %v3599_v1 = vcvt.f32.s32 %v3598_v60 }
 0x47c   : > { %v2303_v11 = vrot.slane %v2267_v57, %v4369_v41  ;;  %v2329_v14 = vrot.slane %v2268_v59, %v4369_v41 }
 0x47d   : > { %v2273_v2 = vadd.s32 1, %v3597_v63  ;;  %v2285_v4 = vrot.slane %v3597_v63, %v4369_v41  ;;  %v2276_v5 = vadd.s32 1, %v3599_v1  ;;  %v2311_v29 = vrot.slane %v3599_v1, %v4369_v41 }
 0x47e   : > { %v2317_v6 = vrot.slane %v2270_v0, %v4369_v41  ;;  %v2291_v7 = vrot.slane %v2269_v62, %v4369_v41 }
 0x47f   : > { %vm2274_vm2 = vcmp.lt.s32.totalorder %v2273_v2, 15  ;;  %vm2277_vm3 = vcmp.lt.s32.totalorder %v2276_v5, 15  ;;  %vm2286_vm4 = vcmp.eq.s32.totalorder %v4353_v27, %v2285_v4  ;;  %vm2287_vm5 = vcmp.eq.s32.totalorder %v2281_v3, %v2285_v4 }
 0x480   : > { %v2275_v8 = vsel %vm2274_vm2, %v2273_v2, 15  ;;  %v2278_v10 = vsel %vm2277_vm3, %v2276_v5, 15  ;;  %vm2313_vm6 = vcmp.eq.s32.totalorder %v2281_v3, %v2311_v29  ;;  %v2292_v15 = vsel %vm2286_vm4, %v2291_v7, 0.0 }
 0x481   : > { %v2297_v9 = vrot.slane %v2275_v8, %v4369_v41  ;;  %v2319_v12 = vsel %vm2313_vm6, %v2317_v6, 0.0  ;;  %v2323_v13 = vrot.slane %v2278_v10, %v4369_v41  ;;  %v2293_v19 = vsel %vm2287_vm5, %v2291_v7, 0.0  ;;  %v2335_v41 = vld [vmem:[%s4341_s8 + $0x8] sm:$0xff] }
 0x482   : > { %vm2312_vm11 = vcmp.eq.s32.totalorder %v4353_v27, %v2311_v29 }
 0x483   : > { %vm2298_vm7 = vcmp.eq.s32.totalorder %v4353_v27, %v2297_v9  ;;  %vm2299_vm8 = vcmp.eq.s32.totalorder %v2281_v3, %v2297_v9  ;;  %vm2325_vm9 = vcmp.eq.s32.totalorder %v2281_v3, %v2323_v13  ;;  %vm2324_vm10 = vcmp.eq.s32.totalorder %v4353_v27, %v2323_v13 }
 0x484   : > { %v2304_v17 = vsel %vm2298_vm7, %v2303_v11, 0.0  ;;  %v2305_v18 = vsel %vm2299_vm8, %v2303_v11, 0.0  ;;  %v2331_v22 = vsel %vm2325_vm9, %v2329_v14, 0.0  ;;  %v2330_v31 = vsel %vm2324_vm10, %v2329_v14, 0.0 }
 0x485   : > { %v2306_v20 = vadd.f32 %v2304_v17, %v2292_v15  ;;  %v2307_v21 = vadd.f32 %v2305_v18, %v2293_v19  ;;  %v2333_v23 = vadd.f32 %v2331_v22, %v2319_v12  ;;  %v2318_v32 = vsel %vm2312_vm11, %v2317_v6, 0.0 }
 0x486   : > { %v2332_v34 = vadd.f32 %v2330_v31, %v2318_v32 }
 0x487   : > { %v3574_v24 = vpack.c.bf16 %v2307_v21, %v2306_v20 }
 0x489   : > { %3575 = vmatprep.subr.bf16.mxu0 %v3574_v24  ;;  %3578 = vmatprep.subr.bf16.mxu1 %v3574_v24 }
 0x48a   : > { %3577 = vmatpush3.bf16.msra.mxu0 %v3574_v24  ;;  %3579 = vmatpush3.bf16.msra.mxu1 %v3574_v24 }
 0x48d   : > { %2939 = vmatmul.mubr.msk.f32.vlgmr.msra.gmra.mrb[6].mxu0 %vm2342_vm1, %v2335_v41  ;;  %2945 = vmatmul.mubr.msk.f32.vlgmr.msra.gmra.mrb[6].mxu1 %vm2342_vm1, %v2339_v25 }
 0x48e   : > { %2941 = vmatprep.mubr.msk.f32.mxu0 %vm2342_vm1, %v2336_v26  ;;  %2947 = vmatprep.mubr.msk.f32.mxu1 %vm2342_vm1, %v2340_v28 }
 0x491   : > { %2942 = vmatmul.mubr.msk.f32.gmra.mrb[8].mxu0 %vm2342_vm1, %v2337_v16  ;;  %2948 = vmatmul.mubr.msk.f32.gmra.mrb[8].mxu1 %vm2342_vm1, %v2341_v30 }
 0x560   : > { %v2940_v61 = vpop.f32.mrb[6].mxu0  ;;  %v2946_v33 = vpop.f32.mrb[6].mxu1 }
 0x561   : > { %v2473_v40 = vmul.f32 %v2940_v61, %v2333_v23  ;;  %v2491_v35 = vmul.f32 %v2946_v33, %v2333_v23  ;;  %v2433_v51 = vpop.f32.mrb[7].mxu0  ;;  %v2453_v53 = vpop.f32.mrb[7].mxu1 }
 0x562   : > { %v2472_v36 = vmul.f32 %v2433_v51, %v2332_v34  ;;  %v2490_v37 = vmul.f32 %v2453_v53, %v2332_v34 }
 0x564   : > { %v2474_v38 = vadd.f32 %v2473_v40, %v2472_v36  ;;  %v2492_v39 = vadd.f32 %v2491_v35, %v2490_v37  ;;  %v2943_v42 = vpop.f32.mrb[8].mxu0  ;;  %v2949_v43 = vpop.f32.mrb[8].mxu1 }
 0x565   : > { %v2482_v44 = vmul.f32 %v2943_v42, %v2333_v23  ;;  %v2500_v45 = vmul.f32 %v2949_v43, %v2333_v23  ;;  %v2443_v46 = vpop.f32.mrb[9].mxu0  ;;  %v2463_v47 = vpop.f32.mrb[9].mxu1 }
 0x566   : > { %v2475_v27 = vrot.slane %v2474_v38, 4  ;;  %v2493_v48 = vrot.slane %v2492_v39, 4  ;;  %v2481_v49 = vmul.f32 %v2443_v46, %v2332_v34  ;;  %v2499_v50 = vmul.f32 %v2463_v47, %v2332_v34 }
 0x568   : > { %v2476_v52 = vadd.f32 %v2475_v27, %v2474_v38  ;;  %v2494_v54 = vadd.f32 %v2493_v48, %v2492_v39  ;;  %v2483_v55 = vadd.f32 %v2482_v44, %v2481_v49  ;;  %v2501_v56 = vadd.f32 %v2500_v45, %v2499_v50 }
 0x56a   : > { %v2477_v57 = vrot.slane %v2476_v52, 2  ;;  %v2495_v58 = vrot.slane %v2494_v54, 2  ;;  %v2484_v59 = vrot.slane %v2483_v55, 4  ;;  %v2502_v60 = vrot.slane %v2501_v56, 4 }
 0x56c   : > { %v2478_v62 = vadd.f32 %v2477_v57, %v2476_v52  ;;  %v2485_v63 = vadd.f32 %v2484_v59, %v2483_v55  ;;  %v2503_v0 = vadd.f32 %v2502_v60, %v2501_v56  ;;  %v2496_v1 = vadd.f32 %v2495_v58, %v2494_v54 }
 0x56e   : > { %v2486_v2 = vrot.slane %v2485_v63, 2  ;;  %v2504_v3 = vrot.slane %v2503_v0, 2  ;;  %v2479_v4 = vrot.slane %v2478_v62, 1  ;;  %v2497_v6 = vrot.slane %v2496_v1, 1 }
 0x570   : > { %v2487_v5 = vadd.f32 %v2486_v2, %v2485_v63  ;;  %v2505_v29 = vadd.f32 %v2504_v3, %v2503_v0  ;;  %v2480_v9 = vadd.f32 %v2479_v4, %v2478_v62  ;;  %v2498_v11 = vadd.f32 %v2497_v6, %v2496_v1 }
 0x572   : > { %v2488_v7 = vrot.slane %v2487_v5, 1  ;;  %v2506_v8 = vrot.slane %v2505_v29, 1 }
 0x574   : > { %v2489_v10 = vadd.f32 %v2488_v7, %v2487_v5  ;;  %v2507_v13 = vadd.f32 %v2506_v8, %v2505_v29 }
 0x576   : > { %v2509_v12 = vsel %vm2508_vm12, %v2480_v9, %v2489_v10 }
 0x577   : > { %v2511_v14 = vsel %vm2510_vm13, %v2509_v12, %v2498_v11 }
 0x578   : > { %v2513_v15 = vsel %vm2512_vm14, %v2511_v14, %v2507_v13 }
 0x579   : > { %2514 = vst [vmem:[%s724_s28] sm:$0xf] %v2513_v15 }
 0x57a PF: > { %s23_s22 = sadd.s32 1, %s3967_s22   ;;  %s4586_s13 = sld [smem:[#allocation16_spill]] }
 0x57b   : > { %p20_p12 = scmp.ge.s32.totalorder %s23_s22, 6   ;;  %s4587_s2 = sld [smem:[#allocation23_spill]] }
 0x57c   : > { %s4588_s19 = sld [smem:[#allocation22_spill]]  ;;  %s4589_s11 = sld [smem:[#allocation20_spill]] }
 0x57d   : > { %s4590_s12 = sld [smem:[#allocation21_spill]]  ;;  %s4591_s14 = smov %s3939_s15 }
 0x57e   : > { %s4593_s16 = smov %s3947_s17  ;;  %s4595_s18 = smov %s3959_s20 }
 0x57f   :  { %22 = sbr.rel (!%p20_p12) target bundleno = 13 (0xd), region = 216 }
 0x581   : > { %s4592_s15 = smov %s4587_s2 }
 0x582   : > { %s4594_s17 = smov %s4588_s19  ;;  %s4596_s19 = smov %s3963_s21 }
 0x583   : > { %s4597_s20 = smov %s4589_s11  ;;  %s4598_s21 = smov %s4590_s12 }
 0x586   :  { %2542 = vsyncpa [#allocation3], 1 }
 0x587   :  { %2544 = vsyncpa [#allocation3 + $0x1], 1 }
 0x588   :  { %2545 = vsyncpa [#allocation5], 1 }
 0x589   :  { %2546 = vsyncpa [#allocation8], 1 }

</bundles_post_ra>
